<compile_context>
chip_gen: v7x
topology: tpu7x:2x2x1
jax: 0.10.0
libtpu: 0.0.40
codegen_flags: <defaults>
</compile_context>

<pallas_src>
import functools

import jax
import jax.numpy as jnp
from jax.experimental import pallas as pl
from jax.experimental.pallas import tpu as pltpu


# bf16 operands (f32 accumulation) per the perf review: MXU is bf16-native on
# all three generations and the small-M layers are DMA bound.
_GEMM_COMPUTE_DTYPE = jnp.bfloat16


def _round_up(x, m):
    return (x + m - 1) // m * m


# ---------------------------------------------------------------------------
# Feature probe: deep weight-input buffering (pl.Buffered) if supported
# ---------------------------------------------------------------------------
def _buffered_or_none(depth):
    """Return pl.Buffered(depth) iff this jax/Mosaic build supports it."""
    if not hasattr(pl, "Buffered"):
        return None

    def _copy(x_ref, o_ref):
        o_ref[...] = x_ref[...]

    try:
        spec = pl.BlockSpec((None, 8, 128), lambda g, i: (g, i, 0),
                            pipeline_mode=pl.Buffered(depth))
        fn = pl.pallas_call(
            _copy,
            out_shape=jax.ShapeDtypeStruct((2, 32, 128), jnp.float32),
            grid=(2, 4),
            in_specs=[spec],
            out_specs=pl.BlockSpec((None, 8, 128), lambda g, i: (g, i, 0)),
        )
        jax.block_until_ready(fn(jnp.zeros((2, 32, 128), jnp.float32)))
        return pl.Buffered(depth)
    except Exception:
        return None


_WEIGHT_PIPELINE_MODE = _buffered_or_none(3)


# ---------------------------------------------------------------------------
# Pallas kernel: tiled grouped GEMM with fused bias + ReLU epilogue
# ---------------------------------------------------------------------------
def _matmul_bias_act_kernel(x_ref, w_ref, b_ref, o_ref, *, apply_relu):
    # x_ref: (TM, TK) bf16   w_ref: (TK, TN) bf16   b_ref: (1, TN) f32
    # o_ref: (TM, TN) f32 — doubles as the K-resident accumulator (its block
    # index is invariant across the innermost k axis, so it stays in VMEM).
    k = pl.program_id(3)

    @pl.when(k == 0)
    def _init():
        o_ref[...] = jnp.zeros_like(o_ref)

    o_ref[...] += jnp.dot(
        x_ref[...], w_ref[...], preferred_element_type=jnp.float32
    )

    @pl.when(k == pl.num_programs(3) - 1)
    def _finalize():
        out = o_ref[...] + b_ref[...]
        if apply_relu:
            out = jnp.maximum(out, 0.0)
        o_ref[...] = out


def _pick_m_tile(M):
    """TM: multiple of 8 that minimizes M padding (single block if it fits)."""
    m8 = _round_up(M, 8)
    if m8 <= 512:
        return m8, m8
    tm = min((512, 384, 256, 128), key=lambda t: (_round_up(M, t), -t))
    return tm, _round_up(M, tm)


def _pick_k_tile(K):
    """Prefer TK in {512,256}; pad K up if the extra zero rows stay <= 25%."""
    base = _round_up(K, 128)
    for tk in (512, 256):
        kp = _round_up(K, tk)
        if kp - base <= base // 4:
            return tk, kp
    return 128, base


def _grouped_gemm_bias_act(patches, w, bias, apply_relu):
    """out[g] = [relu](patches[g] @ w[g] + bias[g]) for every group, one call.

    patches: (G, M, K) compute dtype, w: (G, K, Cg) compute dtype,
    bias: (G, 1, Cg) f32.  Returns (G, M, Cg) f32.
    """
    G, M, K = patches.shape
    G2, K2, Cg = w.shape
    assert (G, K) == (G2, K2), ((G, K), (G2, K2))

    TM, Mp = _pick_m_tile(M)
    TK, Kp = _pick_k_tile(K)
    TN = 128                       # lane-dense; v5e-friendly, >=1 N block/group
    Np = _round_up(Cg, TN)

    cdt = patches.dtype
    patches = jnp.pad(patches, ((0, 0), (0, Mp - M), (0, Kp - K)))
    w = jnp.pad(w, ((0, 0), (0, Kp - K), (0, Np - Cg)))
    b = jnp.pad(bias, ((0, 0), (0, 0), (0, Np - Cg)))

    grid = (G, Mp // TM, Np // TN, Kp // TK)

    isz = jnp.dtype(cdt).itemsize
    tile_bytes = (2 * TM * TK * isz        # double-buffered patch blocks
                  + 3 * TK * TN * isz      # (up to) triple-buffered weight blocks
                  + 2 * TN * 4             # bias
                  + 2 * TM * TN * 4)       # output block (= f32 accumulator)
    # 48 MiB cap leaves headroom under v7x's 64 MiB physical VMEM; v5e/v6e have
    # 128 MiB, so it is conservative there too (tiles here are ~2 MiB anyway).
    vmem_limit = int(min(48 * 2**20, max(16 * 2**20, 8 * tile_bytes)))

    cost = pl.CostEstimate(
        flops=int(2 * G * Mp * Kp * Np),
        bytes_accessed=int(G * (Mp * Kp + Kp * Np) * isz + G * (Mp * Np + Np) * 4),
        transcendentals=0,
    )

    wspec_kwargs = {}
    if _WEIGHT_PIPELINE_MODE is not None:
        wspec_kwargs["pipeline_mode"] = _WEIGHT_PIPELINE_MODE

    kernel = functools.partial(_matmul_bias_act_kernel, apply_relu=apply_relu)
    out = pl.pallas_call(
        kernel,
        out_shape=jax.ShapeDtypeStruct((G, Mp, Np), jnp.float32),
        grid=grid,
        in_specs=[
            pl.BlockSpec((None, TM, TK), lambda g, i, j, k: (g, i, k)),
            pl.BlockSpec((None, TK, TN), lambda g, i, j, k: (g, k, j),
                         **wspec_kwargs),
            pl.BlockSpec((None, 1, TN), lambda g, i, j, k: (g, 0, j)),
        ],
        out_specs=pl.BlockSpec((None, TM, TN), lambda g, i, j, k: (g, i, j)),
        compiler_params=pltpu.CompilerParams(
            dimension_semantics=("parallel", "parallel", "parallel", "arbitrary"),
            vmem_limit_bytes=vmem_limit,
        ),
        cost_estimate=cost,
    )(patches, w, b)
    return out[:, :M, :Cg]


# ---------------------------------------------------------------------------
# JAX glue: grouped im2col, grouped weight packing, pooling
# ---------------------------------------------------------------------------
def _im2col_grouped(x_nhwc, kh, kw, sh, sw, groups, dtype):
    """Patches shaped (groups, M, Kg) with Kg ordered (c_local, i, j)."""
    N, H, W, C = x_nhwc.shape
    OH = (H - kh) // sh + 1
    OW = (W - kw) // sw + 1
    x = x_nhwc.astype(dtype)                       # emit patches in bf16 directly
    cols = []
    for i in range(kh):
        for j in range(kw):
            cols.append(
                x[:, i:i + sh * (OH - 1) + 1:sh, j:j + sw * (OW - 1) + 1:sw, :]
            )
    # (N, OH, OW, C, kh*kw): channel-major K ordering (group-contiguous)
    p = jnp.stack(cols, axis=4)
    M = N * OH * OW
    cpg = C // groups
    p = p.reshape(M, groups, cpg * kh * kw)        # Kg index = c_local*kh*kw + i*kw + j
    p = jnp.transpose(p, (1, 0, 2))                # (groups, M, Kg)
    return p, (N, OH, OW)


def _pack_grouped_weights(w_oihw, groups, dtype):
    """(Cout, Cin_g, kh, kw) -> (groups, Cin_g*kh*kw, Cout_g), K ordered like im2col."""
    Cout, cpg_in, kh, kw = w_oihw.shape
    cpg_out = Cout // groups
    w = w_oihw.reshape(groups, cpg_out, cpg_in, kh, kw).astype(dtype)
    w = jnp.transpose(w, (0, 2, 3, 4, 1))          # (g, cin_g, kh, kw, cout_g)
    return w.reshape(groups, cpg_in * kh * kw, cpg_out)


def conv2d(x_nhwc, w_oihw, bias, stride, padding, groups, apply_relu):
    """PyTorch-semantics Conv2d (weight layout (Cout, Cin/groups, kh, kw)).

    All groups are handled by ONE Pallas GEMM call via a `group` grid axis
    (no zero-padded block-diagonal weights, no wasted MXU work / weight DMA).
    """
    N, H, W, C = x_nhwc.shape
    Cout, cpg_in, kh, kw = w_oihw.shape
    sh, sw = stride
    ph, pw = padding
    if ph or pw:
        x_nhwc = jnp.pad(x_nhwc, ((0, 0), (ph, ph), (pw, pw), (0, 0)))

    patches, (N_, OH, OW) = _im2col_grouped(
        x_nhwc, kh, kw, sh, sw, groups, _GEMM_COMPUTE_DTYPE)
    w = _pack_grouped_weights(w_oihw, groups, _GEMM_COMPUTE_DTYPE)
    b = bias.astype(jnp.float32).reshape(groups, 1, Cout // groups)

    out = _grouped_gemm_bias_act(patches, w, b, apply_relu)    # (G, M, Cout_g)
    # PyTorch grouped-conv output channel order is group-major: (M, G, Cg)->Cout
    out = jnp.transpose(out, (1, 0, 2)).reshape(N_, OH, OW, Cout)
    return out


def maxpool_3x3_s2(x_nhwc):
    """MaxPool2d(kernel=3, stride=2, ceil_mode=False) as a fused XLA max over
    the 9 shifted strided windows (no stacked HBM copy, no extra kernel)."""
    N, H, W, C = x_nhwc.shape
    OH = (H - 3) // 2 + 1
    OW = (W - 3) // 2 + 1
    out = None
    for i in range(3):
        for j in range(3):
            win = x_nhwc[:, i:i + 2 * (OH - 1) + 1:2, j:j + 2 * (OW - 1) + 1:2, :]
            out = win if out is None else jnp.maximum(out, win)
    return out


# ---------------------------------------------------------------------------
# Model: parameters + forward
# ---------------------------------------------------------------------------
def init_params(key):
    def conv_param(k, cout, cin_g, kh, kw):
        kw_, kb_ = jax.random.split(k)
        w = jax.random.normal(kw_, (cout, cin_g, kh, kw), jnp.float32) * 0.02
        b = jax.random.normal(kb_, (cout,), jnp.float32) * 0.01
        return w, b

    keys = jax.random.split(key, 5)
    return {
        "conv1": conv_param(keys[0], 96, 3, 11, 11),      # groups=1
        "conv2": conv_param(keys[1], 256, 48, 5, 5),      # groups=2
        "conv3": conv_param(keys[2], 384, 256, 3, 3),     # groups=1
        "conv4": conv_param(keys[3], 384, 192, 3, 3),     # groups=2
        "conv5": conv_param(keys[4], 256, 192, 3, 3),     # groups=2
    }


def imagenet_matconvnet_alex_forward(params, x_nchw):
    x = jnp.transpose(x_nchw, (0, 2, 3, 1))  # NCHW -> NHWC (internal layout)

    w, b = params["conv1"]
    x = conv2d(x, w, b, stride=(4, 4), padding=(0, 0), groups=1, apply_relu=True)
    x = maxpool_3x3_s2(x)

    w, b = params["conv2"]
    x = conv2d(x, w, b, stride=(1, 1), padding=(2, 2), groups=2, apply_relu=True)
    x = maxpool_3x3_s2(x)

    w, b = params["conv3"]
    x = conv2d(x, w, b, stride=(1, 1), padding=(1, 1), groups=1, apply_relu=True)

    w, b = params["conv4"]
    x = conv2d(x, w, b, stride=(1, 1), padding=(1, 1), groups=2, apply_relu=True)

    w, b = params["conv5"]
    x = conv2d(x, w, b, stride=(1, 1), padding=(1, 1), groups=2, apply_relu=False)

    return jnp.transpose(x, (0, 3, 1, 2))  # NHWC -> NCHW (PyTorch output layout)


# ---------------------------------------------------------------------------
# Pure-JAX reference (XLA conv, HIGHEST precision) for correctness checking
# ---------------------------------------------------------------------------
def _reference_forward(params, x_nchw):
    def conv(x, w, b, stride, padding, groups):
        y = jax.lax.conv_general_dilated(
            x, w, window_strides=stride,
            padding=[(padding[0], padding[0]), (padding[1], padding[1])],
            dimension_numbers=("NCHW", "OIHW", "NCHW"),
            feature_group_count=groups,
            precision=jax.lax.Precision.HIGHEST)
        return y + b.reshape(1, -1, 1, 1)

    def pool(x):
        return jax.lax.reduce_window(x, -jnp.inf, jax.lax.max,
                                     (1, 1, 3, 3), (1, 1, 2, 2), "VALID")

    w, b = params["conv1"]; x = jax.nn.relu(conv(x_nchw, w, b, (4, 4), (0, 0), 1)); x = pool(x)
    w, b = params["conv2"]; x = jax.nn.relu(conv(x, w, b, (1, 1), (2, 2), 2)); x = pool(x)
    w, b = params["conv3"]; x = jax.nn.relu(conv(x, w, b, (1, 1), (1, 1), 1))
    w, b = params["conv4"]; x = jax.nn.relu(conv(x, w, b, (1, 1), (1, 1), 2))
    w, b = params["conv5"]; x = conv(x, w, b, (1, 1), (1, 1), 2)
    return x


# ---------------------------------------------------------------------------
if __name__ == "__main__":
    key = jax.random.PRNGKey(0)
    pkey, xkey = jax.random.split(key)
    params = init_params(pkey)

    # Small input consistent with the module's channel structure (3 input
    # channels).  Spatial 67 survives the strided conv/pools:
    # 67 -> conv1 -> 15 -> pool1 -> 7 -> conv2 -> 7 -> pool2 -> 3 -> conv3/4/5 -> 3
    x = jax.random.normal(xkey, (2, 3, 67, 67), jnp.float32)

    fwd = jax.jit(imagenet_matconvnet_alex_forward)
    out = fwd(params, x)
    jax.block_until_ready(out)

    assert out.shape == (2, 256, 3, 3), out.shape
    assert out.dtype == jnp.float32

    ref = jax.jit(_reference_forward)(params, x)
    jax.block_until_ready(ref)
    max_err = float(jnp.max(jnp.abs(out - ref)))
    assert jnp.allclose(out, ref, rtol=5e-2, atol=5e-2), max_err

    print("KERNEL_OK")
</pallas_src>

<mosaic_0001>
module attributes {stable_mosaic.version = 11 : i64} {
  func.func @_matmul_bias_act_kernel(%arg0: i32, %arg1: i32, %arg2: i32, %arg3: i32, %arg4: memref<1x456x128xbf16, #tpu.memory_space<vmem>>, %arg5: memref<1x128x128xbf16, #tpu.memory_space<vmem>>, %arg6: memref<1x1x128xf32, #tpu.memory_space<vmem>>, %arg7: memref<1x456x128xf32, #tpu.memory_space<vmem>>) attributes {dimension_semantics = [#tpu.dimension_semantics<parallel>, #tpu.dimension_semantics<parallel>, #tpu.dimension_semantics<parallel>, #tpu.dimension_semantics<arbitrary>], iteration_bounds = array<i64: 1, 1, 1, 3>, scalar_prefetch = 0 : i64, scratch_operands = 0 : i64, tpu.core_type = #tpu.core_type<tc>, window_params = [{transform_indices = @transform_0, window_bounds = array<i64: 1, 456, 128>}, {transform_indices = @transform_1, window_bounds = array<i64: 1, 128, 128>}, {transform_indices = @transform_2, window_bounds = array<i64: 1, 1, 128>}, {transform_indices = @transform_3, window_bounds = array<i64: 1, 456, 128>}]} {
    %c0_i32 = arith.constant 0 : i32
    %0 = arith.cmpi eq, %arg3, %c0_i32 : i32
    %1 = arith.extui %0 : i1 to i32
    %c0_i32_0 = arith.constant 0 : i32
    %2 = arith.cmpi ne, %1, %c0_i32_0 : i32
    scf.if %2 {
      %cst_13 = arith.constant 0.000000e+00 : f32
      %17 = vector.broadcast %cst_13 : f32 to vector<456x128xf32>
      %c0_14 = arith.constant 0 : index
      %c0_15 = arith.constant 0 : index
      %c0_16 = arith.constant 0 : index
      %18 = vector.load %arg7[%c0_14, %c0_15, %c0_16] : memref<1x456x128xf32, #tpu.memory_space<vmem>>, vector<1x456x128xf32>
      %19 = vector.shape_cast %18 : vector<1x456x128xf32> to vector<456x128xf32>
      %20 = vector.shape_cast %17 : vector<456x128xf32> to vector<1x456x128xf32>
      tpu.vector_store %arg7[%c0_14, %c0_15, %c0_16], %20 {strides = array<i32>} : memref<1x456x128xf32, #tpu.memory_space<vmem>>, vector<1x456x128xf32>,
    } else {
    }
    %c0 = arith.constant 0 : index
    %c0_1 = arith.constant 0 : index
    %c0_2 = arith.constant 0 : index
    %3 = vector.load %arg7[%c0, %c0_1, %c0_2] : memref<1x456x128xf32, #tpu.memory_space<vmem>>, vector<1x456x128xf32>
    %4 = vector.shape_cast %3 : vector<1x456x128xf32> to vector<456x128xf32>
    %c0_3 = arith.constant 0 : index
    %c0_4 = arith.constant 0 : index
    %c0_5 = arith.constant 0 : index
    %5 = vector.load %arg4[%c0_3, %c0_4, %c0_5] : memref<1x456x128xbf16, #tpu.memory_space<vmem>>, vector<1x456x128xbf16>
    %6 = vector.shape_cast %5 : vector<1x456x128xbf16> to vector<456x128xbf16>
    %c0_6 = arith.constant 0 : index
    %c0_7 = arith.constant 0 : index
    %c0_8 = arith.constant 0 : index
    %7 = vector.load %arg5[%c0_6, %c0_7, %c0_8] : memref<1x128x128xbf16, #tpu.memory_space<vmem>>, vector<1x128x128xbf16>
    %8 = vector.shape_cast %7 : vector<1x128x128xbf16> to vector<128x128xbf16>
    %cst = arith.constant dense<0.000000e+00> : vector<456x128xf32>
    %9 = tpu.matmul %6, %8, %cst {dimension_numbers = #tpu.dot_dimension_numbers<[1], [0], [0], [1], [0, 0, 1, 1], [], []>} : vector<456x128xbf16>, vector<128x128xbf16>, vector<456x128xf32> -> vector<456x128xf32>
    %10 = arith.addf %4, %9 : vector<456x128xf32>
    %c0_9 = arith.constant 0 : index
    %c0_10 = arith.constant 0 : index
    %c0_11 = arith.constant 0 : index
    %11 = vector.load %arg7[%c0_9, %c0_10, %c0_11] : memref<1x456x128xf32, #tpu.memory_space<vmem>>, vector<1x456x128xf32>
    %12 = vector.shape_cast %11 : vector<1x456x128xf32> to vector<456x128xf32>
    %13 = vector.shape_cast %10 : vector<456x128xf32> to vector<1x456x128xf32>
    tpu.vector_store %arg7[%c0_9, %c0_10, %c0_11], %13 {strides = array<i32>} : memref<1x456x128xf32, #tpu.memory_space<vmem>>, vector<1x456x128xf32>,
    %c2_i32 = arith.constant 2 : i32
    %14 = arith.cmpi eq, %arg3, %c2_i32 : i32
    %15 = arith.extui %14 : i1 to i32
    %c0_i32_12 = arith.constant 0 : i32
    %16 = arith.cmpi ne, %15, %c0_i32_12 : i32
    scf.if %16 {
      %c0_13 = arith.constant 0 : index
      %c0_14 = arith.constant 0 : index
      %c0_15 = arith.constant 0 : index
      %17 = vector.load %arg7[%c0_13, %c0_14, %c0_15] : memref<1x456x128xf32, #tpu.memory_space<vmem>>, vector<1x456x128xf32>
      %18 = vector.shape_cast %17 : vector<1x456x128xf32> to vector<456x128xf32>
      %c0_16 = arith.constant 0 : index
      %c0_17 = arith.constant 0 : index
      %c0_18 = arith.constant 0 : index
      %19 = vector.load %arg6[%c0_16, %c0_17, %c0_18] : memref<1x1x128xf32, #tpu.memory_space<vmem>>, vector<1x1x128xf32>
      %20 = vector.shape_cast %19 : vector<1x1x128xf32> to vector<1x128xf32>
      %21 = vector.broadcast %20 : vector<1x128xf32> to vector<456x128xf32>
      %22 = arith.addf %18, %21 : vector<456x128xf32>
      %cst_19 = arith.constant 0.000000e+00 : f32
      %23 = vector.broadcast %cst_19 : f32 to vector<456x128xf32>
      %24 = arith.maximumf %22, %23 : vector<456x128xf32>
      %c0_20 = arith.constant 0 : index
      %c0_21 = arith.constant 0 : index
      %c0_22 = arith.constant 0 : index
      %25 = vector.load %arg7[%c0_20, %c0_21, %c0_22] : memref<1x456x128xf32, #tpu.memory_space<vmem>>, vector<1x456x128xf32>
      %26 = vector.shape_cast %25 : vector<1x456x128xf32> to vector<456x128xf32>
      %27 = vector.shape_cast %24 : vector<456x128xf32> to vector<1x456x128xf32>
      tpu.vector_store %arg7[%c0_20, %c0_21, %c0_22], %27 {strides = array<i32>} : memref<1x456x128xf32, #tpu.memory_space<vmem>>, vector<1x456x128xf32>,
    } else {
    }
    return
  }
  func.func @transform_0(%arg0: i32, %arg1: i32, %arg2: i32, %arg3: i32) -> (i32, i32, i32) {
    %c0_i32 = arith.constant 0 : i32
    return %arg0, %arg1, %arg3 : i32, i32, i32
  }
  func.func @transform_1(%arg0: i32, %arg1: i32, %arg2: i32, %arg3: i32) -> (i32, i32, i32) {
    %c0_i32 = arith.constant 0 : i32
    return %arg0, %arg3, %arg2 : i32, i32, i32
  }
  func.func @transform_2(%arg0: i32, %arg1: i32, %arg2: i32, %arg3: i32) -> (i32, i32, i32) {
    %c0_i32 = arith.constant 0 : i32
    %c0_i32_0 = arith.constant 0 : i32
    return %arg0, %c0_i32, %arg2 : i32, i32, i32
  }
  func.func @transform_3(%arg0: i32, %arg1: i32, %arg2: i32, %arg3: i32) -> (i32, i32, i32) {
    %c0_i32 = arith.constant 0 : i32
    return %arg0, %arg1, %arg2 : i32, i32, i32
  }
}

module attributes {stable_mosaic.version = 11 : i64} {
  func.func @_matmul_bias_act_kernel(%arg0: i32, %arg1: i32, %arg2: i32, %arg3: i32, %arg4: memref<1x104x512xbf16, #tpu.memory_space<vmem>>, %arg5: memref<1x512x128xbf16, #tpu.memory_space<vmem>>, %arg6: memref<1x1x128xf32, #tpu.memory_space<vmem>>, %arg7: memref<1x104x128xf32, #tpu.memory_space<vmem>>) attributes {dimension_semantics = [#tpu.dimension_semantics<parallel>, #tpu.dimension_semantics<parallel>, #tpu.dimension_semantics<parallel>, #tpu.dimension_semantics<arbitrary>], iteration_bounds = array<i64: 2, 1, 1, 3>, scalar_prefetch = 0 : i64, scratch_operands = 0 : i64, tpu.core_type = #tpu.core_type<tc>, window_params = [{transform_indices = @transform_0, window_bounds = array<i64: 1, 104, 512>}, {transform_indices = @transform_1, window_bounds = array<i64: 1, 512, 128>}, {transform_indices = @transform_2, window_bounds = array<i64: 1, 1, 128>}, {transform_indices = @transform_3, window_bounds = array<i64: 1, 104, 128>}]} {
    %c0_i32 = arith.constant 0 : i32
    %0 = arith.cmpi eq, %arg3, %c0_i32 : i32
    %1 = arith.extui %0 : i1 to i32
    %c0_i32_0 = arith.constant 0 : i32
    %2 = arith.cmpi ne, %1, %c0_i32_0 : i32
    scf.if %2 {
      %cst_13 = arith.constant 0.000000e+00 : f32
      %17 = vector.broadcast %cst_13 : f32 to vector<104x128xf32>
      %c0_14 = arith.constant 0 : index
      %c0_15 = arith.constant 0 : index
      %c0_16 = arith.constant 0 : index
      %18 = vector.load %arg7[%c0_14, %c0_15, %c0_16] : memref<1x104x128xf32, #tpu.memory_space<vmem>>, vector<1x104x128xf32>
      %19 = vector.shape_cast %18 : vector<1x104x128xf32> to vector<104x128xf32>
      %20 = vector.shape_cast %17 : vector<104x128xf32> to vector<1x104x128xf32>
      tpu.vector_store %arg7[%c0_14, %c0_15, %c0_16], %20 {strides = array<i32>} : memref<1x104x128xf32, #tpu.memory_space<vmem>>, vector<1x104x128xf32>,
    } else {
    }
    %c0 = arith.constant 0 : index
    %c0_1 = arith.constant 0 : index
    %c0_2 = arith.constant 0 : index
    %3 = vector.load %arg7[%c0, %c0_1, %c0_2] : memref<1x104x128xf32, #tpu.memory_space<vmem>>, vector<1x104x128xf32>
    %4 = vector.shape_cast %3 : vector<1x104x128xf32> to vector<104x128xf32>
    %c0_3 = arith.constant 0 : index
    %c0_4 = arith.constant 0 : index
    %c0_5 = arith.constant 0 : index
    %5 = vector.load %arg4[%c0_3, %c0_4, %c0_5] : memref<1x104x512xbf16, #tpu.memory_space<vmem>>, vector<1x104x512xbf16>
    %6 = vector.shape_cast %5 : vector<1x104x512xbf16> to vector<104x512xbf16>
    %c0_6 = arith.constant 0 : index
    %c0_7 = arith.constant 0 : index
    %c0_8 = arith.constant 0 : index
    %7 = vector.load %arg5[%c0_6, %c0_7, %c0_8] : memref<1x512x128xbf16, #tpu.memory_space<vmem>>, vector<1x512x128xbf16>
    %8 = vector.shape_cast %7 : vector<1x512x128xbf16> to vector<512x128xbf16>
    %cst = arith.constant dense<0.000000e+00> : vector<104x128xf32>
    %9 = tpu.matmul %6, %8, %cst {dimension_numbers = #tpu.dot_dimension_numbers<[1], [0], [0], [1], [0, 0, 1, 1], [], []>} : vector<104x512xbf16>, vector<512x128xbf16>, vector<104x128xf32> -> vector<104x128xf32>
    %10 = arith.addf %4, %9 : vector<104x128xf32>
    %c0_9 = arith.constant 0 : index
    %c0_10 = arith.constant 0 : index
    %c0_11 = arith.constant 0 : index
    %11 = vector.load %arg7[%c0_9, %c0_10, %c0_11] : memref<1x104x128xf32, #tpu.memory_space<vmem>>, vector<1x104x128xf32>
    %12 = vector.shape_cast %11 : vector<1x104x128xf32> to vector<104x128xf32>
    %13 = vector.shape_cast %10 : vector<104x128xf32> to vector<1x104x128xf32>
    tpu.vector_store %arg7[%c0_9, %c0_10, %c0_11], %13 {strides = array<i32>} : memref<1x104x128xf32, #tpu.memory_space<vmem>>, vector<1x104x128xf32>,
    %c2_i32 = arith.constant 2 : i32
    %14 = arith.cmpi eq, %arg3, %c2_i32 : i32
    %15 = arith.extui %14 : i1 to i32
    %c0_i32_12 = arith.constant 0 : i32
    %16 = arith.cmpi ne, %15, %c0_i32_12 : i32
    scf.if %16 {
      %c0_13 = arith.constant 0 : index
      %c0_14 = arith.constant 0 : index
      %c0_15 = arith.constant 0 : index
      %17 = vector.load %arg7[%c0_13, %c0_14, %c0_15] : memref<1x104x128xf32, #tpu.memory_space<vmem>>, vector<1x104x128xf32>
      %18 = vector.shape_cast %17 : vector<1x104x128xf32> to vector<104x128xf32>
      %c0_16 = arith.constant 0 : index
      %c0_17 = arith.constant 0 : index
      %c0_18 = arith.constant 0 : index
      %19 = vector.load %arg6[%c0_16, %c0_17, %c0_18] : memref<1x1x128xf32, #tpu.memory_space<vmem>>, vector<1x1x128xf32>
      %20 = vector.shape_cast %19 : vector<1x1x128xf32> to vector<1x128xf32>
      %21 = vector.broadcast %20 : vector<1x128xf32> to vector<104x128xf32>
      %22 = arith.addf %18, %21 : vector<104x128xf32>
      %cst_19 = arith.constant 0.000000e+00 : f32
      %23 = vector.broadcast %cst_19 : f32 to vector<104x128xf32>
      %24 = arith.maximumf %22, %23 : vector<104x128xf32>
      %c0_20 = arith.constant 0 : index
      %c0_21 = arith.constant 0 : index
      %c0_22 = arith.constant 0 : index
      %25 = vector.load %arg7[%c0_20, %c0_21, %c0_22] : memref<1x104x128xf32, #tpu.memory_space<vmem>>, vector<1x104x128xf32>
      %26 = vector.shape_cast %25 : vector<1x104x128xf32> to vector<104x128xf32>
      %27 = vector.shape_cast %24 : vector<104x128xf32> to vector<1x104x128xf32>
      tpu.vector_store %arg7[%c0_20, %c0_21, %c0_22], %27 {strides = array<i32>} : memref<1x104x128xf32, #tpu.memory_space<vmem>>, vector<1x104x128xf32>,
    } else {
    }
    return
  }
  func.func @transform_0(%arg0: i32, %arg1: i32, %arg2: i32, %arg3: i32) -> (i32, i32, i32) {
    %c0_i32 = arith.constant 0 : i32
    return %arg0, %arg1, %arg3 : i32, i32, i32
  }
  func.func @transform_1(%arg0: i32, %arg1: i32, %arg2: i32, %arg3: i32) -> (i32, i32, i32) {
    %c0_i32 = arith.constant 0 : i32
    return %arg0, %arg3, %arg2 : i32, i32, i32
  }
  func.func @transform_2(%arg0: i32, %arg1: i32, %arg2: i32, %arg3: i32) -> (i32, i32, i32) {
    %c0_i32 = arith.constant 0 : i32
    %c0_i32_0 = arith.constant 0 : i32
    return %arg0, %c0_i32, %arg2 : i32, i32, i32
  }
  func.func @transform_3(%arg0: i32, %arg1: i32, %arg2: i32, %arg3: i32) -> (i32, i32, i32) {
    %c0_i32 = arith.constant 0 : i32
    return %arg0, %arg1, %arg2 : i32, i32, i32
  }
}

module attributes {stable_mosaic.version = 11 : i64} {
  func.func @_matmul_bias_act_kernel(%arg0: i32, %arg1: i32, %arg2: i32, %arg3: i32, %arg4: memref<1x24x512xbf16, #tpu.memory_space<vmem>>, %arg5: memref<1x512x128xbf16, #tpu.memory_space<vmem>>, %arg6: memref<1x1x128xf32, #tpu.memory_space<vmem>>, %arg7: memref<1x24x128xf32, #tpu.memory_space<vmem>>) attributes {dimension_semantics = [#tpu.dimension_semantics<parallel>, #tpu.dimension_semantics<parallel>, #tpu.dimension_semantics<parallel>, #tpu.dimension_semantics<arbitrary>], iteration_bounds = array<i64: 1, 1, 3, 5>, scalar_prefetch = 0 : i64, scratch_operands = 0 : i64, tpu.core_type = #tpu.core_type<tc>, window_params = [{transform_indices = @transform_0, window_bounds = array<i64: 1, 24, 512>}, {transform_indices = @transform_1, window_bounds = array<i64: 1, 512, 128>}, {transform_indices = @transform_2, window_bounds = array<i64: 1, 1, 128>}, {transform_indices = @transform_3, window_bounds = array<i64: 1, 24, 128>}]} {
    %c0_i32 = arith.constant 0 : i32
    %0 = arith.cmpi eq, %arg3, %c0_i32 : i32
    %1 = arith.extui %0 : i1 to i32
    %c0_i32_0 = arith.constant 0 : i32
    %2 = arith.cmpi ne, %1, %c0_i32_0 : i32
    scf.if %2 {
      %cst_13 = arith.constant 0.000000e+00 : f32
      %17 = vector.broadcast %cst_13 : f32 to vector<24x128xf32>
      %c0_14 = arith.constant 0 : index
      %c0_15 = arith.constant 0 : index
      %c0_16 = arith.constant 0 : index
      %18 = vector.load %arg7[%c0_14, %c0_15, %c0_16] : memref<1x24x128xf32, #tpu.memory_space<vmem>>, vector<1x24x128xf32>
      %19 = vector.shape_cast %18 : vector<1x24x128xf32> to vector<24x128xf32>
      %20 = vector.shape_cast %17 : vector<24x128xf32> to vector<1x24x128xf32>
      tpu.vector_store %arg7[%c0_14, %c0_15, %c0_16], %20 {strides = array<i32>} : memref<1x24x128xf32, #tpu.memory_space<vmem>>, vector<1x24x128xf32>,
    } else {
    }
    %c0 = arith.constant 0 : index
    %c0_1 = arith.constant 0 : index
    %c0_2 = arith.constant 0 : index
    %3 = vector.load %arg7[%c0, %c0_1, %c0_2] : memref<1x24x128xf32, #tpu.memory_space<vmem>>, vector<1x24x128xf32>
    %4 = vector.shape_cast %3 : vector<1x24x128xf32> to vector<24x128xf32>
    %c0_3 = arith.constant 0 : index
    %c0_4 = arith.constant 0 : index
    %c0_5 = arith.constant 0 : index
    %5 = vector.load %arg4[%c0_3, %c0_4, %c0_5] : memref<1x24x512xbf16, #tpu.memory_space<vmem>>, vector<1x24x512xbf16>
    %6 = vector.shape_cast %5 : vector<1x24x512xbf16> to vector<24x512xbf16>
    %c0_6 = arith.constant 0 : index
    %c0_7 = arith.constant 0 : index
    %c0_8 = arith.constant 0 : index
    %7 = vector.load %arg5[%c0_6, %c0_7, %c0_8] : memref<1x512x128xbf16, #tpu.memory_space<vmem>>, vector<1x512x128xbf16>
    %8 = vector.shape_cast %7 : vector<1x512x128xbf16> to vector<512x128xbf16>
    %cst = arith.constant dense<0.000000e+00> : vector<24x128xf32>
    %9 = tpu.matmul %6, %8, %cst {dimension_numbers = #tpu.dot_dimension_numbers<[1], [0], [0], [1], [0, 0, 1, 1], [], []>} : vector<24x512xbf16>, vector<512x128xbf16>, vector<24x128xf32> -> vector<24x128xf32>
    %10 = arith.addf %4, %9 : vector<24x128xf32>
    %c0_9 = arith.constant 0 : index
    %c0_10 = arith.constant 0 : index
    %c0_11 = arith.constant 0 : index
    %11 = vector.load %arg7[%c0_9, %c0_10, %c0_11] : memref<1x24x128xf32, #tpu.memory_space<vmem>>, vector<1x24x128xf32>
    %12 = vector.shape_cast %11 : vector<1x24x128xf32> to vector<24x128xf32>
    %13 = vector.shape_cast %10 : vector<24x128xf32> to vector<1x24x128xf32>
    tpu.vector_store %arg7[%c0_9, %c0_10, %c0_11], %13 {strides = array<i32>} : memref<1x24x128xf32, #tpu.memory_space<vmem>>, vector<1x24x128xf32>,
    %c4_i32 = arith.constant 4 : i32
    %14 = arith.cmpi eq, %arg3, %c4_i32 : i32
    %15 = arith.extui %14 : i1 to i32
    %c0_i32_12 = arith.constant 0 : i32
    %16 = arith.cmpi ne, %15, %c0_i32_12 : i32
    scf.if %16 {
      %c0_13 = arith.constant 0 : index
      %c0_14 = arith.constant 0 : index
      %c0_15 = arith.constant 0 : index
      %17 = vector.load %arg7[%c0_13, %c0_14, %c0_15] : memref<1x24x128xf32, #tpu.memory_space<vmem>>, vector<1x24x128xf32>
      %18 = vector.shape_cast %17 : vector<1x24x128xf32> to vector<24x128xf32>
      %c0_16 = arith.constant 0 : index
      %c0_17 = arith.constant 0 : index
      %c0_18 = arith.constant 0 : index
      %19 = vector.load %arg6[%c0_16, %c0_17, %c0_18] : memref<1x1x128xf32, #tpu.memory_space<vmem>>, vector<1x1x128xf32>
      %20 = vector.shape_cast %19 : vector<1x1x128xf32> to vector<1x128xf32>
      %21 = vector.broadcast %20 : vector<1x128xf32> to vector<24x128xf32>
      %22 = arith.addf %18, %21 : vector<24x128xf32>
      %cst_19 = arith.constant 0.000000e+00 : f32
      %23 = vector.broadcast %cst_19 : f32 to vector<24x128xf32>
      %24 = arith.maximumf %22, %23 : vector<24x128xf32>
      %c0_20 = arith.constant 0 : index
      %c0_21 = arith.constant 0 : index
      %c0_22 = arith.constant 0 : index
      %25 = vector.load %arg7[%c0_20, %c0_21, %c0_22] : memref<1x24x128xf32, #tpu.memory_space<vmem>>, vector<1x24x128xf32>
      %26 = vector.shape_cast %25 : vector<1x24x128xf32> to vector<24x128xf32>
      %27 = vector.shape_cast %24 : vector<24x128xf32> to vector<1x24x128xf32>
      tpu.vector_store %arg7[%c0_20, %c0_21, %c0_22], %27 {strides = array<i32>} : memref<1x24x128xf32, #tpu.memory_space<vmem>>, vector<1x24x128xf32>,
    } else {
    }
    return
  }
  func.func @transform_0(%arg0: i32, %arg1: i32, %arg2: i32, %arg3: i32) -> (i32, i32, i32) {
    %c0_i32 = arith.constant 0 : i32
    return %arg0, %arg1, %arg3 : i32, i32, i32
  }
  func.func @transform_1(%arg0: i32, %arg1: i32, %arg2: i32, %arg3: i32) -> (i32, i32, i32) {
    %c0_i32 = arith.constant 0 : i32
    return %arg0, %arg3, %arg2 : i32, i32, i32
  }
  func.func @transform_2(%arg0: i32, %arg1: i32, %arg2: i32, %arg3: i32) -> (i32, i32, i32) {
    %c0_i32 = arith.constant 0 : i32
    %c0_i32_0 = arith.constant 0 : i32
    return %arg0, %c0_i32, %arg2 : i32, i32, i32
  }
  func.func @transform_3(%arg0: i32, %arg1: i32, %arg2: i32, %arg3: i32) -> (i32, i32, i32) {
    %c0_i32 = arith.constant 0 : i32
    return %arg0, %arg1, %arg2 : i32, i32, i32
  }
}

module attributes {stable_mosaic.version = 11 : i64} {
  func.func @_matmul_bias_act_kernel(%arg0: i32, %arg1: i32, %arg2: i32, %arg3: i32, %arg4: memref<1x24x512xbf16, #tpu.memory_space<vmem>>, %arg5: memref<1x512x128xbf16, #tpu.memory_space<vmem>>, %arg6: memref<1x1x128xf32, #tpu.memory_space<vmem>>, %arg7: memref<1x24x128xf32, #tpu.memory_space<vmem>>) attributes {dimension_semantics = [#tpu.dimension_semantics<parallel>, #tpu.dimension_semantics<parallel>, #tpu.dimension_semantics<parallel>, #tpu.dimension_semantics<arbitrary>], iteration_bounds = array<i64: 2, 1, 2, 4>, scalar_prefetch = 0 : i64, scratch_operands = 0 : i64, tpu.core_type = #tpu.core_type<tc>, window_params = [{transform_indices = @transform_0, window_bounds = array<i64: 1, 24, 512>}, {transform_indices = @transform_1, window_bounds = array<i64: 1, 512, 128>}, {transform_indices = @transform_2, window_bounds = array<i64: 1, 1, 128>}, {transform_indices = @transform_3, window_bounds = array<i64: 1, 24, 128>}]} {
    %c0_i32 = arith.constant 0 : i32
    %0 = arith.cmpi eq, %arg3, %c0_i32 : i32
    %1 = arith.extui %0 : i1 to i32
    %c0_i32_0 = arith.constant 0 : i32
    %2 = arith.cmpi ne, %1, %c0_i32_0 : i32
    scf.if %2 {
      %cst_13 = arith.constant 0.000000e+00 : f32
      %17 = vector.broadcast %cst_13 : f32 to vector<24x128xf32>
      %c0_14 = arith.constant 0 : index
      %c0_15 = arith.constant 0 : index
      %c0_16 = arith.constant 0 : index
      %18 = vector.load %arg7[%c0_14, %c0_15, %c0_16] : memref<1x24x128xf32, #tpu.memory_space<vmem>>, vector<1x24x128xf32>
      %19 = vector.shape_cast %18 : vector<1x24x128xf32> to vector<24x128xf32>
      %20 = vector.shape_cast %17 : vector<24x128xf32> to vector<1x24x128xf32>
      tpu.vector_store %arg7[%c0_14, %c0_15, %c0_16], %20 {strides = array<i32>} : memref<1x24x128xf32, #tpu.memory_space<vmem>>, vector<1x24x128xf32>,
    } else {
    }
    %c0 = arith.constant 0 : index
    %c0_1 = arith.constant 0 : index
    %c0_2 = arith.constant 0 : index
    %3 = vector.load %arg7[%c0, %c0_1, %c0_2] : memref<1x24x128xf32, #tpu.memory_space<vmem>>, vector<1x24x128xf32>
    %4 = vector.shape_cast %3 : vector<1x24x128xf32> to vector<24x128xf32>
    %c0_3 = arith.constant 0 : index
    %c0_4 = arith.constant 0 : index
    %c0_5 = arith.constant 0 : index
    %5 = vector.load %arg4[%c0_3, %c0_4, %c0_5] : memref<1x24x512xbf16, #tpu.memory_space<vmem>>, vector<1x24x512xbf16>
    %6 = vector.shape_cast %5 : vector<1x24x512xbf16> to vector<24x512xbf16>
    %c0_6 = arith.constant 0 : index
    %c0_7 = arith.constant 0 : index
    %c0_8 = arith.constant 0 : index
    %7 = vector.load %arg5[%c0_6, %c0_7, %c0_8] : memref<1x512x128xbf16, #tpu.memory_space<vmem>>, vector<1x512x128xbf16>
    %8 = vector.shape_cast %7 : vector<1x512x128xbf16> to vector<512x128xbf16>
    %cst = arith.constant dense<0.000000e+00> : vector<24x128xf32>
    %9 = tpu.matmul %6, %8, %cst {dimension_numbers = #tpu.dot_dimension_numbers<[1], [0], [0], [1], [0, 0, 1, 1], [], []>} : vector<24x512xbf16>, vector<512x128xbf16>, vector<24x128xf32> -> vector<24x128xf32>
    %10 = arith.addf %4, %9 : vector<24x128xf32>
    %c0_9 = arith.constant 0 : index
    %c0_10 = arith.constant 0 : index
    %c0_11 = arith.constant 0 : index
    %11 = vector.load %arg7[%c0_9, %c0_10, %c0_11] : memref<1x24x128xf32, #tpu.memory_space<vmem>>, vector<1x24x128xf32>
    %12 = vector.shape_cast %11 : vector<1x24x128xf32> to vector<24x128xf32>
    %13 = vector.shape_cast %10 : vector<24x128xf32> to vector<1x24x128xf32>
    tpu.vector_store %arg7[%c0_9, %c0_10, %c0_11], %13 {strides = array<i32>} : memref<1x24x128xf32, #tpu.memory_space<vmem>>, vector<1x24x128xf32>,
    %c3_i32 = arith.constant 3 : i32
    %14 = arith.cmpi eq, %arg3, %c3_i32 : i32
    %15 = arith.extui %14 : i1 to i32
    %c0_i32_12 = arith.constant 0 : i32
    %16 = arith.cmpi ne, %15, %c0_i32_12 : i32
    scf.if %16 {
      %c0_13 = arith.constant 0 : index
      %c0_14 = arith.constant 0 : index
      %c0_15 = arith.constant 0 : index
      %17 = vector.load %arg7[%c0_13, %c0_14, %c0_15] : memref<1x24x128xf32, #tpu.memory_space<vmem>>, vector<1x24x128xf32>
      %18 = vector.shape_cast %17 : vector<1x24x128xf32> to vector<24x128xf32>
      %c0_16 = arith.constant 0 : index
      %c0_17 = arith.constant 0 : index
      %c0_18 = arith.constant 0 : index
      %19 = vector.load %arg6[%c0_16, %c0_17, %c0_18] : memref<1x1x128xf32, #tpu.memory_space<vmem>>, vector<1x1x128xf32>
      %20 = vector.shape_cast %19 : vector<1x1x128xf32> to vector<1x128xf32>
      %21 = vector.broadcast %20 : vector<1x128xf32> to vector<24x128xf32>
      %22 = arith.addf %18, %21 : vector<24x128xf32>
      %cst_19 = arith.constant 0.000000e+00 : f32
      %23 = vector.broadcast %cst_19 : f32 to vector<24x128xf32>
      %24 = arith.maximumf %22, %23 : vector<24x128xf32>
      %c0_20 = arith.constant 0 : index
      %c0_21 = arith.constant 0 : index
      %c0_22 = arith.constant 0 : index
      %25 = vector.load %arg7[%c0_20, %c0_21, %c0_22] : memref<1x24x128xf32, #tpu.memory_space<vmem>>, vector<1x24x128xf32>
      %26 = vector.shape_cast %25 : vector<1x24x128xf32> to vector<24x128xf32>
      %27 = vector.shape_cast %24 : vector<24x128xf32> to vector<1x24x128xf32>
      tpu.vector_store %arg7[%c0_20, %c0_21, %c0_22], %27 {strides = array<i32>} : memref<1x24x128xf32, #tpu.memory_space<vmem>>, vector<1x24x128xf32>,
    } else {
    }
    return
  }
  func.func @transform_0(%arg0: i32, %arg1: i32, %arg2: i32, %arg3: i32) -> (i32, i32, i32) {
    %c0_i32 = arith.constant 0 : i32
    return %arg0, %arg1, %arg3 : i32, i32, i32
  }
  func.func @transform_1(%arg0: i32, %arg1: i32, %arg2: i32, %arg3: i32) -> (i32, i32, i32) {
    %c0_i32 = arith.constant 0 : i32
    return %arg0, %arg3, %arg2 : i32, i32, i32
  }
  func.func @transform_2(%arg0: i32, %arg1: i32, %arg2: i32, %arg3: i32) -> (i32, i32, i32) {
    %c0_i32 = arith.constant 0 : i32
    %c0_i32_0 = arith.constant 0 : i32
    return %arg0, %c0_i32, %arg2 : i32, i32, i32
  }
  func.func @transform_3(%arg0: i32, %arg1: i32, %arg2: i32, %arg3: i32) -> (i32, i32, i32) {
    %c0_i32 = arith.constant 0 : i32
    return %arg0, %arg1, %arg2 : i32, i32, i32
  }
}

module attributes {stable_mosaic.version = 11 : i64} {
  func.func @_matmul_bias_act_kernel(%arg0: i32, %arg1: i32, %arg2: i32, %arg3: i32, %arg4: memref<1x24x512xbf16, #tpu.memory_space<vmem>>, %arg5: memref<1x512x128xbf16, #tpu.memory_space<vmem>>, %arg6: memref<1x1x128xf32, #tpu.memory_space<vmem>>, %arg7: memref<1x24x128xf32, #tpu.memory_space<vmem>>) attributes {dimension_semantics = [#tpu.dimension_semantics<parallel>, #tpu.dimension_semantics<parallel>, #tpu.dimension_semantics<parallel>, #tpu.dimension_semantics<arbitrary>], iteration_bounds = array<i64: 2, 1, 1, 4>, scalar_prefetch = 0 : i64, scratch_operands = 0 : i64, tpu.core_type = #tpu.core_type<tc>, window_params = [{transform_indices = @transform_0, window_bounds = array<i64: 1, 24, 512>}, {transform_indices = @transform_1, window_bounds = array<i64: 1, 512, 128>}, {transform_indices = @transform_2, window_bounds = array<i64: 1, 1, 128>}, {transform_indices = @transform_3, window_bounds = array<i64: 1, 24, 128>}]} {
    %c0_i32 = arith.constant 0 : i32
    %0 = arith.cmpi eq, %arg3, %c0_i32 : i32
    %1 = arith.extui %0 : i1 to i32
    %c0_i32_0 = arith.constant 0 : i32
    %2 = arith.cmpi ne, %1, %c0_i32_0 : i32
    scf.if %2 {
      %cst_13 = arith.constant 0.000000e+00 : f32
      %17 = vector.broadcast %cst_13 : f32 to vector<24x128xf32>
      %c0_14 = arith.constant 0 : index
      %c0_15 = arith.constant 0 : index
      %c0_16 = arith.constant 0 : index
      %18 = vector.load %arg7[%c0_14, %c0_15, %c0_16] : memref<1x24x128xf32, #tpu.memory_space<vmem>>, vector<1x24x128xf32>
      %19 = vector.shape_cast %18 : vector<1x24x128xf32> to vector<24x128xf32>
      %20 = vector.shape_cast %17 : vector<24x128xf32> to vector<1x24x128xf32>
      tpu.vector_store %arg7[%c0_14, %c0_15, %c0_16], %20 {strides = array<i32>} : memref<1x24x128xf32, #tpu.memory_space<vmem>>, vector<1x24x128xf32>,
    } else {
    }
    %c0 = arith.constant 0 : index
    %c0_1 = arith.constant 0 : index
    %c0_2 = arith.constant 0 : index
    %3 = vector.load %arg7[%c0, %c0_1, %c0_2] : memref<1x24x128xf32, #tpu.memory_space<vmem>>, vector<1x24x128xf32>
    %4 = vector.shape_cast %3 : vector<1x24x128xf32> to vector<24x128xf32>
    %c0_3 = arith.constant 0 : index
    %c0_4 = arith.constant 0 : index
    %c0_5 = arith.constant 0 : index
    %5 = vector.load %arg4[%c0_3, %c0_4, %c0_5] : memref<1x24x512xbf16, #tpu.memory_space<vmem>>, vector<1x24x512xbf16>
    %6 = vector.shape_cast %5 : vector<1x24x512xbf16> to vector<24x512xbf16>
    %c0_6 = arith.constant 0 : index
    %c0_7 = arith.constant 0 : index
    %c0_8 = arith.constant 0 : index
    %7 = vector.load %arg5[%c0_6, %c0_7, %c0_8] : memref<1x512x128xbf16, #tpu.memory_space<vmem>>, vector<1x512x128xbf16>
    %8 = vector.shape_cast %7 : vector<1x512x128xbf16> to vector<512x128xbf16>
    %cst = arith.constant dense<0.000000e+00> : vector<24x128xf32>
    %9 = tpu.matmul %6, %8, %cst {dimension_numbers = #tpu.dot_dimension_numbers<[1], [0], [0], [1], [0, 0, 1, 1], [], []>} : vector<24x512xbf16>, vector<512x128xbf16>, vector<24x128xf32> -> vector<24x128xf32>
    %10 = arith.addf %4, %9 : vector<24x128xf32>
    %c0_9 = arith.constant 0 : index
    %c0_10 = arith.constant 0 : index
    %c0_11 = arith.constant 0 : index
    %11 = vector.load %arg7[%c0_9, %c0_10, %c0_11] : memref<1x24x128xf32, #tpu.memory_space<vmem>>, vector<1x24x128xf32>
    %12 = vector.shape_cast %11 : vector<1x24x128xf32> to vector<24x128xf32>
    %13 = vector.shape_cast %10 : vector<24x128xf32> to vector<1x24x128xf32>
    tpu.vector_store %arg7[%c0_9, %c0_10, %c0_11], %13 {strides = array<i32>} : memref<1x24x128xf32, #tpu.memory_space<vmem>>, vector<1x24x128xf32>,
    %c3_i32 = arith.constant 3 : i32
    %14 = arith.cmpi eq, %arg3, %c3_i32 : i32
    %15 = arith.extui %14 : i1 to i32
    %c0_i32_12 = arith.constant 0 : i32
    %16 = arith.cmpi ne, %15, %c0_i32_12 : i32
    scf.if %16 {
      %c0_13 = arith.constant 0 : index
      %c0_14 = arith.constant 0 : index
      %c0_15 = arith.constant 0 : index
      %17 = vector.load %arg7[%c0_13, %c0_14, %c0_15] : memref<1x24x128xf32, #tpu.memory_space<vmem>>, vector<1x24x128xf32>
      %18 = vector.shape_cast %17 : vector<1x24x128xf32> to vector<24x128xf32>
      %c0_16 = arith.constant 0 : index
      %c0_17 = arith.constant 0 : index
      %c0_18 = arith.constant 0 : index
      %19 = vector.load %arg6[%c0_16, %c0_17, %c0_18] : memref<1x1x128xf32, #tpu.memory_space<vmem>>, vector<1x1x128xf32>
      %20 = vector.shape_cast %19 : vector<1x1x128xf32> to vector<1x128xf32>
      %21 = vector.broadcast %20 : vector<1x128xf32> to vector<24x128xf32>
      %22 = arith.addf %18, %21 : vector<24x128xf32>
      %c0_19 = arith.constant 0 : index
      %c0_20 = arith.constant 0 : index
      %c0_21 = arith.constant 0 : index
      %23 = vector.load %arg7[%c0_19, %c0_20, %c0_21] : memref<1x24x128xf32, #tpu.memory_space<vmem>>, vector<1x24x128xf32>
      %24 = vector.shape_cast %23 : vector<1x24x128xf32> to vector<24x128xf32>
      %25 = vector.shape_cast %22 : vector<24x128xf32> to vector<1x24x128xf32>
      tpu.vector_store %arg7[%c0_19, %c0_20, %c0_21], %25 {strides = array<i32>} : memref<1x24x128xf32, #tpu.memory_space<vmem>>, vector<1x24x128xf32>,
    } else {
    }
    return
  }
  func.func @transform_0(%arg0: i32, %arg1: i32, %arg2: i32, %arg3: i32) -> (i32, i32, i32) {
    %c0_i32 = arith.constant 0 : i32
    return %arg0, %arg1, %arg3 : i32, i32, i32
  }
  func.func @transform_1(%arg0: i32, %arg1: i32, %arg2: i32, %arg3: i32) -> (i32, i32, i32) {
    %c0_i32 = arith.constant 0 : i32
    return %arg0, %arg3, %arg2 : i32, i32, i32
  }
  func.func @transform_2(%arg0: i32, %arg1: i32, %arg2: i32, %arg3: i32) -> (i32, i32, i32) {
    %c0_i32 = arith.constant 0 : i32
    %c0_i32_0 = arith.constant 0 : i32
    return %arg0, %c0_i32, %arg2 : i32, i32, i32
  }
  func.func @transform_3(%arg0: i32, %arg1: i32, %arg2: i32, %arg3: i32) -> (i32, i32, i32) {
    %c0_i32 = arith.constant 0 : i32
    return %arg0, %arg1, %arg2 : i32, i32, i32
  }
}

</mosaic_0001>

<bundles_post_ra>
// kernel: imagenet_matconvnet_alex_forward.5
= control target key start
LH: loop header
LB: loop body
LE: loop exit
PB: predicated region body
PF: predicated region fallthrough
CT: control target
= control target key end

     0   :  { %s2114_s12 = smov 0   ;;  %s2116_s13 = smov 0   ;;  %s3331_s0 = inlined_call_operand.vmem [shape: bf16[1,456,384], index: 0, kind: input, shape index: {}]   ;;  %s3332_s1 = inlined_call_operand.vmem [shape: bf16[1,384,128], index: 1, kind: input, shape index: {}]   ;;  %s3333_s2 = inlined_call_operand.vmem [shape: f32[1,1,128], index: 2, kind: input, shape index: {}]   ;;  %s3334_s3 = inlined_call_operand.vmem [shape: f32[1,456,128], index: 3, kind: output, shape index: {}]  }
   0x1   :  { %s2118_s14 = smov 0   ;;  %s2120_s15 = smov 0  }
   0x2   :  { %s2122_s16 = smov 0  }
   0x3 LB: > { %s28_s17 = sadd.s32 1, %s2085_s15  ;;  %p57_p1 = scmp.ne.s32.totalorder %s2077_s13, %s2073_s12  ;;  %s2089_s16 = sphi %s2122_s16, %s13_s16   ;;  %s2085_s15 = sphi %s2120_s15, %s3338_s15   ;;  %s2081_s14 = sphi %s2118_s14, %s3337_s14   ;;  %s2077_s13 = sphi %s2116_s13, %s3336_s13   ;;  %s2073_s12 = sphi %s2114_s12, %s3335_s12  }
   0x4   : > { %p29_p0 = scmp.ge.s32.totalorder %s28_s17, 3  ;;  %p58_p2 = scmp.eq.s32.totalorder %s2089_s16, 0 }
   0x5   : > { %s50_s19 = sadd.s32 1, %s2077_s13  ;;  %p1735_p5 = scmp.ge.s32.totalorder %s2089_s16, 3 }
   0x6   : > { %s3340_s17 = smov (%p29_p0, %s28_s17), 0  ;;  %p59_p3 = por %p58_p2, %p57_p1 }
   0x7   : > { %s46_s18 = ssub.s32 %s2085_s15, %s3340_s17  ;;  %180 = sbr.rel (%p1735_p5) target bundleno = 56 (0x38), region = 20 }
   0x8   : > { %p48_p4 = scmp.eq.s32.totalorder %s46_s18, 0 }
   0xa   : > { %s2149_s20 = scalar_select %p48_p4, %s2077_s13, %s50_s19  }
   0xe   : > { %183 = sbr.rel (!%p59_p3) target bundleno = 56 (0x38), region = 24  ;;  %s185_s21 = sand.u32 (%p59_p3), 1, %s2077_s13  }
   0xf   : > { %s1736_s22 = sshll.u32 (%p59_p3), %s2085_s15, 2  ;;  %s1969_s23 = smul.u32 (%p59_p3), 228, %s185_s21 }
  0x10   : > { %s2157_s26 = scalar_lea.vmem (%p59_p3), %s3331_s0, %s1736_s22 }
  0x11   : > { %v210_v0 = vld [vmem:[%s2157_s26] sm:$0xf] (%p59_p3)  ;;  %v212_v1 = vld [vmem:[%s2157_s26 + $0xc] sm:$0xf] (%p59_p3)  ;;  %v214_v2 = vld [vmem:[%s2157_s26 + $0x18] sm:$0xf] (%p59_p3) }
  0x12   : > { %v216_v3 = vld [vmem:[%s2157_s26 + $0x24] sm:$0xf] (%p59_p3)  ;;  %v218_v4 = vld [vmem:[%s2157_s26 + $0x30] sm:$0xf] (%p59_p3)  ;;  %s2164_s27 = scalar_lea.vmem (%p59_p3), [#allocation2], %s1969_s23 }
  0x13   : > { %211 = vst [vmem:[%s2164_s27] sm:$0xf] (%p59_p3), %v210_v0  ;;  %213 = vst [vmem:[%s2164_s27 + $0x4] sm:$0xf] (%p59_p3), %v212_v1  ;;  %v220_v5 = vld [vmem:[%s2157_s26 + $0x3c] sm:$0xf] (%p59_p3) }
  0x14   : > { %215 = vst [vmem:[%s2164_s27 + $0x8] sm:$0xf] (%p59_p3), %v214_v2  ;;  %217 = vst [vmem:[%s2164_s27 + $0xc] sm:$0xf] (%p59_p3), %v216_v3  ;;  %v222_v6 = vld [vmem:[%s2157_s26 + $0x48] sm:$0xf] (%p59_p3) }
  0x15   : > { %219 = vst [vmem:[%s2164_s27 + $0x10] sm:$0xf] %v218_v4  ;;  %v224_v7 = vld [vmem:[%s2157_s26 + $0x54] sm:$0xf]  ;;  %221 = vst [vmem:[%s2164_s27 + $0x14] sm:$0xf] %v220_v5 }
  0x16   : > { %223 = vst [vmem:[%s2164_s27 + $0x18] sm:$0xf] %v222_v6  ;;  %225 = vst [vmem:[%s2164_s27 + $0x1c] sm:$0xf] %v224_v7  ;;  %v226_v8 = vld [vmem:[%s2157_s26 + $0x60] sm:$0xf] }
  0x17   : > { %v228_v9 = vld [vmem:[%s2157_s26 + $0x6c] sm:$0xf]  ;;  %v230_v10 = vld [vmem:[%s2157_s26 + $0x78] sm:$0xf]  ;;  %227 = vst [vmem:[%s2164_s27 + $0x20] sm:$0xf] %v226_v8 }
  0x18   : > { %229 = vst [vmem:[%s2164_s27 + $0x24] sm:$0xf] %v228_v9  ;;  %231 = vst [vmem:[%s2164_s27 + $0x28] sm:$0xf] %v230_v10  ;;  %v232_v11 = vld [vmem:[%s2157_s26 + $0x84] sm:$0xf] }
  0x19   : > { %v234_v12 = vld [vmem:[%s2157_s26 + $0x90] sm:$0xf]  ;;  %v236_v13 = vld [vmem:[%s2157_s26 + $0x9c] sm:$0xf]  ;;  %233 = vst [vmem:[%s2164_s27 + $0x2c] sm:$0xf] %v232_v11 }
  0x1a   : > { %235 = vst [vmem:[%s2164_s27 + $0x30] sm:$0xf] %v234_v12  ;;  %237 = vst [vmem:[%s2164_s27 + $0x34] sm:$0xf] %v236_v13  ;;  %v238_v14 = vld [vmem:[%s2157_s26 + $0xa8] sm:$0xf] }
  0x1b   : > { %v240_v15 = vld [vmem:[%s2157_s26 + $0xb4] sm:$0xf]  ;;  %v242_v16 = vld [vmem:[%s2157_s26 + $0xc0] sm:$0xf]  ;;  %239 = vst [vmem:[%s2164_s27 + $0x38] sm:$0xf] %v238_v14 }
  0x1c   : > { %241 = vst [vmem:[%s2164_s27 + $0x3c] sm:$0xf] %v240_v15  ;;  %243 = vst [vmem:[%s2164_s27 + $0x40] sm:$0xf] %v242_v16  ;;  %v244_v17 = vld [vmem:[%s2157_s26 + $0xcc] sm:$0xf] }
  0x1d   : > { %v246_v18 = vld [vmem:[%s2157_s26 + $0xd8] sm:$0xf]  ;;  %v248_v19 = vld [vmem:[%s2157_s26 + $0xe4] sm:$0xf]  ;;  %245 = vst [vmem:[%s2164_s27 + $0x44] sm:$0xf] %v244_v17 }
  0x1e   : > { %247 = vst [vmem:[%s2164_s27 + $0x48] sm:$0xf] %v246_v18  ;;  %249 = vst [vmem:[%s2164_s27 + $0x4c] sm:$0xf] %v248_v19  ;;  %v250_v20 = vld [vmem:[%s2157_s26 + $0xf0] sm:$0xf] }
  0x1f   : > { %v252_v21 = vld [vmem:[%s2157_s26 + $0xfc] sm:$0xf]  ;;  %v254_v22 = vld [vmem:[%s2157_s26 + $0x108] sm:$0xf]  ;;  %251 = vst [vmem:[%s2164_s27 + $0x50] sm:$0xf] %v250_v20 }
  0x20   : > { %253 = vst [vmem:[%s2164_s27 + $0x54] sm:$0xf] %v252_v21  ;;  %255 = vst [vmem:[%s2164_s27 + $0x58] sm:$0xf] %v254_v22  ;;  %v256_v23 = vld [vmem:[%s2157_s26 + $0x114] sm:$0xf] }
  0x21   : > { %v258_v24 = vld [vmem:[%s2157_s26 + $0x120] sm:$0xf]  ;;  %v260_v25 = vld [vmem:[%s2157_s26 + $0x12c] sm:$0xf]  ;;  %257 = vst [vmem:[%s2164_s27 + $0x5c] sm:$0xf] %v256_v23 }
  0x22   : > { %259 = vst [vmem:[%s2164_s27 + $0x60] sm:$0xf] %v258_v24  ;;  %261 = vst [vmem:[%s2164_s27 + $0x64] sm:$0xf] %v260_v25  ;;  %v262_v26 = vld [vmem:[%s2157_s26 + $0x138] sm:$0xf] }
  0x23   : > { %v264_v27 = vld [vmem:[%s2157_s26 + $0x144] sm:$0xf]  ;;  %v266_v28 = vld [vmem:[%s2157_s26 + $0x150] sm:$0xf]  ;;  %263 = vst [vmem:[%s2164_s27 + $0x68] sm:$0xf] %v262_v26 }
  0x24   : > { %265 = vst [vmem:[%s2164_s27 + $0x6c] sm:$0xf] %v264_v27  ;;  %267 = vst [vmem:[%s2164_s27 + $0x70] sm:$0xf] %v266_v28  ;;  %v268_v29 = vld [vmem:[%s2157_s26 + $0x15c] sm:$0xf] }
  0x25   : > { %v270_v30 = vld [vmem:[%s2157_s26 + $0x168] sm:$0xf]  ;;  %v272_v31 = vld [vmem:[%s2157_s26 + $0x174] sm:$0xf]  ;;  %269 = vst [vmem:[%s2164_s27 + $0x74] sm:$0xf] %v268_v29 }
  0x26   : > { %271 = vst [vmem:[%s2164_s27 + $0x78] sm:$0xf] %v270_v30  ;;  %273 = vst [vmem:[%s2164_s27 + $0x7c] sm:$0xf] %v272_v31  ;;  %v274_v32 = vld [vmem:[%s2157_s26 + $0x180] sm:$0xf] }
  0x27   : > { %v276_v33 = vld [vmem:[%s2157_s26 + $0x18c] sm:$0xf]  ;;  %v278_v34 = vld [vmem:[%s2157_s26 + $0x198] sm:$0xf]  ;;  %275 = vst [vmem:[%s2164_s27 + $0x80] sm:$0xf] %v274_v32 }
  0x28   : > { %277 = vst [vmem:[%s2164_s27 + $0x84] sm:$0xf] %v276_v33  ;;  %279 = vst [vmem:[%s2164_s27 + $0x88] sm:$0xf] %v278_v34  ;;  %v280_v35 = vld [vmem:[%s2157_s26 + $0x1a4] sm:$0xf] }
  0x29   : > { %v282_v36 = vld [vmem:[%s2157_s26 + $0x1b0] sm:$0xf]  ;;  %v284_v37 = vld [vmem:[%s2157_s26 + $0x1bc] sm:$0xf]  ;;  %281 = vst [vmem:[%s2164_s27 + $0x8c] sm:$0xf] %v280_v35 }
  0x2a   : > { %283 = vst [vmem:[%s2164_s27 + $0x90] sm:$0xf] %v282_v36  ;;  %285 = vst [vmem:[%s2164_s27 + $0x94] sm:$0xf] %v284_v37  ;;  %v286_v38 = vld [vmem:[%s2157_s26 + $0x1c8] sm:$0xf] }
  0x2b   : > { %v288_v39 = vld [vmem:[%s2157_s26 + $0x1d4] sm:$0xf]  ;;  %v290_v40 = vld [vmem:[%s2157_s26 + $0x1e0] sm:$0xf]  ;;  %287 = vst [vmem:[%s2164_s27 + $0x98] sm:$0xf] %v286_v38 }
  0x2c   : > { %289 = vst [vmem:[%s2164_s27 + $0x9c] sm:$0xf] %v288_v39  ;;  %291 = vst [vmem:[%s2164_s27 + $0xa0] sm:$0xf] %v290_v40  ;;  %v292_v41 = vld [vmem:[%s2157_s26 + $0x1ec] sm:$0xf] }
  0x2d   : > { %v294_v42 = vld [vmem:[%s2157_s26 + $0x1f8] sm:$0xf]  ;;  %v296_v43 = vld [vmem:[%s2157_s26 + $0x204] sm:$0xf]  ;;  %293 = vst [vmem:[%s2164_s27 + $0xa4] sm:$0xf] %v292_v41 }
  0x2e   : > { %295 = vst [vmem:[%s2164_s27 + $0xa8] sm:$0xf] %v294_v42  ;;  %297 = vst [vmem:[%s2164_s27 + $0xac] sm:$0xf] %v296_v43  ;;  %v298_v44 = vld [vmem:[%s2157_s26 + $0x210] sm:$0xf] }
  0x2f   : > { %v300_v45 = vld [vmem:[%s2157_s26 + $0x21c] sm:$0xf]  ;;  %v302_v46 = vld [vmem:[%s2157_s26 + $0x228] sm:$0xf]  ;;  %299 = vst [vmem:[%s2164_s27 + $0xb0] sm:$0xf] %v298_v44 }
  0x30   : > { %301 = vst [vmem:[%s2164_s27 + $0xb4] sm:$0xf] %v300_v45  ;;  %303 = vst [vmem:[%s2164_s27 + $0xb8] sm:$0xf] %v302_v46  ;;  %v304_v47 = vld [vmem:[%s2157_s26 + $0x234] sm:$0xf] }
  0x31   : > { %v306_v48 = vld [vmem:[%s2157_s26 + $0x240] sm:$0xf]  ;;  %v308_v49 = vld [vmem:[%s2157_s26 + $0x24c] sm:$0xf]  ;;  %305 = vst [vmem:[%s2164_s27 + $0xbc] sm:$0xf] %v304_v47 }
  0x32   : > { %307 = vst [vmem:[%s2164_s27 + $0xc0] sm:$0xf] %v306_v48  ;;  %309 = vst [vmem:[%s2164_s27 + $0xc4] sm:$0xf] %v308_v49  ;;  %v310_v50 = vld [vmem:[%s2157_s26 + $0x258] sm:$0xf] }
  0x33   : > { %v312_v51 = vld [vmem:[%s2157_s26 + $0x264] sm:$0xf]  ;;  %v314_v52 = vld [vmem:[%s2157_s26 + $0x270] sm:$0xf]  ;;  %311 = vst [vmem:[%s2164_s27 + $0xc8] sm:$0xf] %v310_v50 }
  0x34   : > { %313 = vst [vmem:[%s2164_s27 + $0xcc] sm:$0xf] %v312_v51  ;;  %315 = vst [vmem:[%s2164_s27 + $0xd0] sm:$0xf] %v314_v52  ;;  %v316_v53 = vld [vmem:[%s2157_s26 + $0x27c] sm:$0xf] }
  0x35   : > { %v318_v54 = vld [vmem:[%s2157_s26 + $0x288] sm:$0xf]  ;;  %v320_v55 = vld [vmem:[%s2157_s26 + $0x294] sm:$0xf]  ;;  %317 = vst [vmem:[%s2164_s27 + $0xd4] sm:$0xf] %v316_v53 }
  0x36   : > { %319 = vst [vmem:[%s2164_s27 + $0xd8] sm:$0xf] %v318_v54  ;;  %321 = vst [vmem:[%s2164_s27 + $0xdc] sm:$0xf] %v320_v55  ;;  %v322_v56 = vld [vmem:[%s2157_s26 + $0x2a0] sm:$0xf] }
  0x37   : > { %323 = vst [vmem:[%s2164_s27 + $0xe0] sm:$0xf] %v322_v56 }
  0x38 PF: > { %p1737_p6 = scmp.ge.s32.totalorder %s2089_s16, 1  ;;  %p475_p7 = scmp.lt.s32.totalorder %s2089_s16, 4 }
  0x3a   : > { %p476_p8 = pnand %p1737_p6, %p475_p7 }
  0x3b   : > { %s482_s28 = sand.u32 (!%p476_p8), 1, %s2073_s12   ;;  %s1738_s29 = sshll.u32 (!%p476_p8), %s2081_s14, 4 }
  0x3c   : > { %479 = sbr.rel (%p476_p8) target bundleno = 478 (0x1de), region = 69  ;;  %p534_p9 = scmp.lt.s32.totalorder (!%p476_p8), %s1738_s29, 47 }
  0x3d   : > { %s1970_s30 = smul.u32 (!%p476_p8), 228, %s482_s28  ;;  %p1740_p10 = scmp.ne.s32.totalorder (!%p476_p8), %s2081_s14, 0 }
  0x3f   : > { %s2284_s8 = scalar_lea.vmem (!%p476_p8), [#allocation2], %s1970_s30 }
  0x43   : > { %s3342_s29 = smov (!%p534_p9, %s1738_s29), 47  ;;  %567 = sbr.rel (%p1740_p10) target bundleno = 98 (0x62), region = 77 }
  0x44   : > { %s1739_s4 = sshll.u32 %s3342_s29, 2  ;;  %v2091_v57 = vmov (!%p1740_p10), 0.0  }
  0x45   : > { %s2282_s7 = scalar_lea.vmem %s3332_s1, %s1739_s4  ;;  %568 = vst [vmem:[%s3334_s3] sm:$0xff] (!%p1740_p10), %v2091_v57  ;;  %569 = vst [vmem:[%s3334_s3 + $0x8] sm:$0xff] (!%p1740_p10), %v2091_v57 }
  0x46   : > { %570 = vst [vmem:[%s3334_s3 + $0x10] sm:$0xff] (!%p1740_p10), %v2091_v57  ;;  %571 = vst [vmem:[%s3334_s3 + $0x18] sm:$0xff] (!%p1740_p10), %v2091_v57 }
  0x47   : > { %572 = vst [vmem:[%s3334_s3 + $0x20] sm:$0xff] (!%p1740_p10), %v2091_v57  ;;  %573 = vst [vmem:[%s3334_s3 + $0x28] sm:$0xff] (!%p1740_p10), %v2091_v57 }
  0x48   : > { %574 = vst [vmem:[%s3334_s3 + $0x30] sm:$0xff] (!%p1740_p10), %v2091_v57  ;;  %575 = vst [vmem:[%s3334_s3 + $0x38] sm:$0xff] (!%p1740_p10), %v2091_v57 }
  0x49   : > { %576 = vst [vmem:[%s3334_s3 + $0x40] sm:$0xff] (!%p1740_p10), %v2091_v57  ;;  %577 = vst [vmem:[%s3334_s3 + $0x48] sm:$0xff] (!%p1740_p10), %v2091_v57 }
  0x4a   : > { %578 = vst [vmem:[%s3334_s3 + $0x50] sm:$0xff] %v2091_v57  ;;  %579 = vst [vmem:[%s3334_s3 + $0x58] sm:$0xff] %v2091_v57 }
  0x4b   : > { %580 = vst [vmem:[%s3334_s3 + $0x60] sm:$0xff] %v2091_v57  ;;  %581 = vst [vmem:[%s3334_s3 + $0x68] sm:$0xff] %v2091_v57 }
  0x4c   : > { %582 = vst [vmem:[%s3334_s3 + $0x70] sm:$0xff] %v2091_v57  ;;  %583 = vst [vmem:[%s3334_s3 + $0x78] sm:$0xff] %v2091_v57 }
  0x4d   : > { %584 = vst [vmem:[%s3334_s3 + $0x80] sm:$0xff] %v2091_v57  ;;  %585 = vst [vmem:[%s3334_s3 + $0x88] sm:$0xff] %v2091_v57 }
  0x4e   : > { %586 = vst [vmem:[%s3334_s3 + $0x90] sm:$0xff] %v2091_v57  ;;  %587 = vst [vmem:[%s3334_s3 + $0x98] sm:$0xff] %v2091_v57 }
  0x4f   : > { %588 = vst [vmem:[%s3334_s3 + $0xa0] sm:$0xff] %v2091_v57  ;;  %589 = vst [vmem:[%s3334_s3 + $0xa8] sm:$0xff] %v2091_v57 }
  0x50   : > { %590 = vst [vmem:[%s3334_s3 + $0xb0] sm:$0xff] %v2091_v57  ;;  %591 = vst [vmem:[%s3334_s3 + $0xb8] sm:$0xff] %v2091_v57 }
  0x51   : > { %592 = vst [vmem:[%s3334_s3 + $0xc0] sm:$0xff] %v2091_v57  ;;  %593 = vst [vmem:[%s3334_s3 + $0xc8] sm:$0xff] %v2091_v57 }
  0x52   : > { %594 = vst [vmem:[%s3334_s3 + $0xd0] sm:$0xff] %v2091_v57  ;;  %595 = vst [vmem:[%s3334_s3 + $0xd8] sm:$0xff] %v2091_v57 }
  0x53   : > { %596 = vst [vmem:[%s3334_s3 + $0xe0] sm:$0xff] %v2091_v57  ;;  %597 = vst [vmem:[%s3334_s3 + $0xe8] sm:$0xff] %v2091_v57 }
  0x54   : > { %598 = vst [vmem:[%s3334_s3 + $0xf0] sm:$0xff] %v2091_v57  ;;  %599 = vst [vmem:[%s3334_s3 + $0xf8] sm:$0xff] %v2091_v57 }
  0x55   : > { %600 = vst [vmem:[%s3334_s3 + $0x100] sm:$0xff] %v2091_v57  ;;  %601 = vst [vmem:[%s3334_s3 + $0x108] sm:$0xff] %v2091_v57 }
  0x56   : > { %602 = vst [vmem:[%s3334_s3 + $0x110] sm:$0xff] %v2091_v57  ;;  %603 = vst [vmem:[%s3334_s3 + $0x118] sm:$0xff] %v2091_v57 }
  0x57   : > { %604 = vst [vmem:[%s3334_s3 + $0x120] sm:$0xff] %v2091_v57  ;;  %605 = vst [vmem:[%s3334_s3 + $0x128] sm:$0xff] %v2091_v57 }
  0x58   : > { %606 = vst [vmem:[%s3334_s3 + $0x130] sm:$0xff] %v2091_v57  ;;  %607 = vst [vmem:[%s3334_s3 + $0x138] sm:$0xff] %v2091_v57 }
  0x59   : > { %608 = vst [vmem:[%s3334_s3 + $0x140] sm:$0xff] %v2091_v57  ;;  %609 = vst [vmem:[%s3334_s3 + $0x148] sm:$0xff] %v2091_v57 }
  0x5a   : > { %610 = vst [vmem:[%s3334_s3 + $0x150] sm:$0xff] %v2091_v57  ;;  %611 = vst [vmem:[%s3334_s3 + $0x158] sm:$0xff] %v2091_v57 }
  0x5b   : > { %612 = vst [vmem:[%s3334_s3 + $0x160] sm:$0xff] %v2091_v57  ;;  %613 = vst [vmem:[%s3334_s3 + $0x168] sm:$0xff] %v2091_v57 }
  0x5c   : > { %614 = vst [vmem:[%s3334_s3 + $0x170] sm:$0xff] %v2091_v57  ;;  %615 = vst [vmem:[%s3334_s3 + $0x178] sm:$0xff] %v2091_v57 }
  0x5d   : > { %616 = vst [vmem:[%s3334_s3 + $0x180] sm:$0xff] %v2091_v57  ;;  %617 = vst [vmem:[%s3334_s3 + $0x188] sm:$0xff] %v2091_v57 }
  0x5e   : > { %618 = vst [vmem:[%s3334_s3 + $0x190] sm:$0xff] %v2091_v57  ;;  %619 = vst [vmem:[%s3334_s3 + $0x198] sm:$0xff] %v2091_v57 }
  0x5f   : > { %620 = vst [vmem:[%s3334_s3 + $0x1a0] sm:$0xff] %v2091_v57  ;;  %621 = vst [vmem:[%s3334_s3 + $0x1a8] sm:$0xff] %v2091_v57 }
  0x60   : > { %622 = vst [vmem:[%s3334_s3 + $0x1b0] sm:$0xff] %v2091_v57  ;;  %623 = vst [vmem:[%s3334_s3 + $0x1b8] sm:$0xff] %v2091_v57 }
  0x61   : > { %624 = vst [vmem:[%s3334_s3 + $0x1c0] sm:$0xff] %v2091_v57 }
  0x62 PF: > { %v2014_v58 = vld [vmem:[%s2282_s7] sm:$0xff]   ;;  %v2092_v59 = vmov 0.0   ;;  %v2015_v60 = vld [vmem:[%s2282_s7 + $0x8] sm:$0xff]   ;;  %vm2093_vm0 = vmmov 0   ;;  %v2016_v61 = vld [vmem:[%s2282_s7 + $0x10] sm:$0xff]   ;;  %p1778_p11 = scmp.ne.s32.totalorder %s2081_s14, 2 }
  0x63   : > { %1821 = vmatprep.subr.bf16.mxu0 %v2092_v59  ;;  %1953 = vmatprep.subr.bf16.mxu1 %v2092_v59  ;;  %v2017_v62 = vld [vmem:[%s2282_s7 + $0x18] sm:$0xff]   ;;  %v2018_v63 = vld [vmem:[%s2282_s7 + $0x20] sm:$0xff]   ;;  %v2019_v0 = vld [vmem:[%s2282_s7 + $0x28] sm:$0xff]  }
  0x64   : > { %1822 = vmatpush3.bf16.msra.mxu0 %v2014_v58  ;;  %1961 = vmatpush3.bf16.msra.mxu1 %v2014_v58  ;;  %v2020_v1 = vld [vmem:[%s2282_s7 + $0x30] sm:$0xff]   ;;  %v2021_v2 = vld [vmem:[%s2282_s7 + $0x38] sm:$0xff]   ;;  %v2022_v3 = vld [vmem:[%s2284_s8] sm:$0xff]  }
  0x65   : > { %1823 = vmatprep.subr.bf16.mxu0 %v2092_v59  ;;  %1954 = vmatprep.subr.bf16.mxu1 %v2092_v59  ;;  %v2023_v4 = vld [vmem:[%s2284_s8 + $0x78] sm:$0xff]   ;;  %v2024_v5 = vld [vmem:[%s2284_s8 + $0x8] sm:$0xff]   ;;  %v2025_v6 = vld [vmem:[%s2284_s8 + $0x80] sm:$0xff]  }
  0x66   : > { %1837 = vmatprep.mubr.msk.bf16.mxu0 %vm2093_vm0, %v2092_v59  ;;  %1897 = vmatprep.mubr.msk.bf16.mxu1 %vm2093_vm0, %v2092_v59  ;;  %v2026_v7 = vld [vmem:[%s2284_s8 + $0x10] sm:$0xff]   ;;  %v2027_v8 = vld [vmem:[%s2284_s8 + $0x88] sm:$0xff]   ;;  %v2028_v9 = vld [vmem:[%s2284_s8 + $0x18] sm:$0xff]  }
  0x67   : > { %v2029_v10 = vld [vmem:[%s2284_s8 + $0x90] sm:$0xff]   ;;  %v2030_v11 = vld [vmem:[%s2284_s8 + $0x20] sm:$0xff]   ;;  %v2031_v12 = vld [vmem:[%s2284_s8 + $0x98] sm:$0xff]  }
  0x68   : > { %1824 = vmatpush3.bf16.msra.mxu0 %v2015_v60  ;;  %1962 = vmatpush3.bf16.msra.mxu1 %v2015_v60  ;;  %v2032_v13 = vld [vmem:[%s2284_s8 + $0x28] sm:$0xff]   ;;  %v2033_v14 = vld [vmem:[%s2284_s8 + $0xa0] sm:$0xff]   ;;  %v2034_v15 = vld [vmem:[%s2284_s8 + $0x30] sm:$0xff]  }
  0x69   : > { %1825 = vmatprep.subr.bf16.mxu0 %v2092_v59  ;;  %1955 = vmatprep.subr.bf16.mxu1 %v2092_v59  ;;  %v2035_v16 = vld [vmem:[%s2284_s8 + $0xa8] sm:$0xff]   ;;  %v2036_v17 = vld [vmem:[%s2284_s8 + $0x38] sm:$0xff]   ;;  %v2037_v18 = vld [vmem:[%s2284_s8 + $0xb0] sm:$0xff]  }
  0x6a   : > { %v2038_v19 = vld [vmem:[%s2284_s8 + $0x40] sm:$0xff]   ;;  %v2039_v20 = vld [vmem:[%s2284_s8 + $0xb8] sm:$0xff]   ;;  %v2040_v21 = vld [vmem:[%s2284_s8 + $0x48] sm:$0xff]  }
  0x6b   : > { %v2041_v22 = vld [vmem:[%s2284_s8 + $0xc0] sm:$0xff]   ;;  %v2042_v23 = vld [vmem:[%s2284_s8 + $0x50] sm:$0xff]   ;;  %v2043_v24 = vld [vmem:[%s2284_s8 + $0xc8] sm:$0xff]  }
  0x6c   : > { %1826 = vmatpush3.bf16.msra.mxu0 %v2016_v61  ;;  %1963 = vmatpush3.bf16.msra.mxu1 %v2016_v61  ;;  %v2044_v25 = vld [vmem:[%s2284_s8 + $0x58] sm:$0xff]   ;;  %v2045_v26 = vld [vmem:[%s2284_s8 + $0xd0] sm:$0xff]   ;;  %v2046_v27 = vld [vmem:[%s2284_s8 + $0x60] sm:$0xff]  }
  0x6d   : > { %1827 = vmatprep.subr.bf16.mxu0 %v2092_v59  ;;  %1956 = vmatprep.subr.bf16.mxu1 %v2092_v59  ;;  %v2047_v28 = vld [vmem:[%s2284_s8 + $0xd8] sm:$0xff]   ;;  %v2048_v29 = vld [vmem:[%s2284_s8 + $0x68] sm:$0xff]   ;;  %v2049_v30 = vld [vmem:[%s2284_s8 + $0xe0] ss:$0 sps:$4 sm:$0xff]  }
  0x6e   : > { %v2050_v31 = vld [vmem:[%s2284_s8 + $0x70] sm:$0xff]   ;;  %v625_v32 = vld [vmem:[%s3334_s3] sm:$0xff]  ;;  %v626_v35 = vld [vmem:[%s3334_s3 + $0x8] sm:$0xff] }
  0x6f   : > { %v655_v33 = vld [vmem:[%s3334_s3 + $0xf0] sm:$0xff]  ;;  %v656_v37 = vld [vmem:[%s3334_s3 + $0xf8] sm:$0xff]  ;;  %v657_v49 = vld [vmem:[%s3334_s3 + $0x100] sm:$0xff] }
  0x70   : > { %1828 = vmatpush3.bf16.msra.mxu0 %v2017_v62  ;;  %1964 = vmatpush3.bf16.msra.mxu1 %v2017_v62  ;;  %v627_v48 = vld [vmem:[%s3334_s3 + $0x10] sm:$0xff]  ;;  %v628_v51 = vld [vmem:[%s3334_s3 + $0x18] sm:$0xff]  ;;  %v658_v53 = vld [vmem:[%s3334_s3 + $0x108] sm:$0xff] }
  0x71   : > { %1829 = vmatprep.subr.bf16.mxu0 %v2092_v59  ;;  %1957 = vmatprep.subr.bf16.mxu1 %v2092_v59 }
  0x74   : > { %1830 = vmatpush3.bf16.msra.mxu0 %v2018_v63  ;;  %1965 = vmatpush3.bf16.msra.mxu1 %v2018_v63 }
  0x75   : > { %1831 = vmatprep.subr.bf16.mxu0 %v2092_v59  ;;  %1958 = vmatprep.subr.bf16.mxu1 %v2092_v59 }
  0x78   : > { %1832 = vmatpush3.bf16.msra.mxu0 %v2019_v0  ;;  %1966 = vmatpush3.bf16.msra.mxu1 %v2019_v0  ;;  %v629_v0 = vld [vmem:[%s3334_s3 + $0x20] sm:$0xff] }
  0x79   : > { %1833 = vmatprep.subr.bf16.mxu0 %v2092_v59  ;;  %1959 = vmatprep.subr.bf16.mxu1 %v2092_v59 }
  0x7c   : > { %1834 = vmatpush3.bf16.msra.mxu0 %v2020_v1  ;;  %1967 = vmatpush3.bf16.msra.mxu1 %v2020_v1  ;;  %v659_v1 = vld [vmem:[%s3334_s3 + $0x110] sm:$0xff] }
  0x7d   : > { %1835 = vmatprep.subr.bf16.mxu0 %v2092_v59  ;;  %1960 = vmatprep.subr.bf16.mxu1 %v2092_v59 }
  0x80   : > { %1836 = vmatpush3.bf16.msra.mxu0 %v2021_v2  ;;  %1968 = vmatpush3.bf16.msra.mxu1 %v2021_v2 }
  0x83   : > { %1838 = vmatmul.mubr.bf16.vlgmr.msra.gmra.mrb[0].mxu0 %v2022_v3  ;;  %1898 = vmatmul.mubr.bf16.vlgmr.msra.gmra.mrb[0].mxu1 %v2023_v4  ;;  %v630_v3 = vld [vmem:[%s3334_s3 + $0x28] sm:$0xff] }
  0x84   : > { %1841 = vmatprep.mubr.msk.bf16.mxu0 %vm2093_vm0, %v2092_v59  ;;  %1901 = vmatprep.mubr.msk.bf16.mxu1 %vm2093_vm0, %v2092_v59 }
  0x8b   : > { %1842 = vmatmul.mubr.bf16.gmra.mrb[4].mxu0 %v2024_v5  ;;  %1902 = vmatmul.mubr.bf16.gmra.mrb[4].mxu1 %v2025_v6  ;;  %v660_v5 = vld [vmem:[%s3334_s3 + $0x118] sm:$0xff] }
  0x8c   : > { %1845 = vmatprep.mubr.msk.bf16.mxu0 %vm2093_vm0, %v2092_v59  ;;  %1905 = vmatprep.mubr.msk.bf16.mxu1 %vm2093_vm0, %v2092_v59 }
  0x93   : > { %1846 = vmatmul.mubr.bf16.gmra.mrb[8].mxu0 %v2026_v7  ;;  %1906 = vmatmul.mubr.bf16.gmra.mrb[8].mxu1 %v2027_v8 }
  0x94   : > { %1849 = vmatprep.mubr.msk.bf16.mxu0 %vm2093_vm0, %v2092_v59  ;;  %1909 = vmatprep.mubr.msk.bf16.mxu1 %vm2093_vm0, %v2092_v59 }
  0x9b   : > { %1850 = vmatmul.mubr.bf16.gmra.mrb[12].mxu0 %v2028_v9  ;;  %1910 = vmatmul.mubr.bf16.gmra.mrb[12].mxu1 %v2029_v10 }
  0x9c   : > { %1853 = vmatprep.mubr.msk.bf16.mxu0 %vm2093_vm0, %v2092_v59  ;;  %1913 = vmatprep.mubr.msk.bf16.mxu1 %vm2093_vm0, %v2092_v59 }
  0xa3   : > { %1854 = vmatmul.mubr.bf16.gmra.mrb[16].mxu0 %v2030_v11  ;;  %1914 = vmatmul.mubr.bf16.gmra.mrb[16].mxu1 %v2031_v12 }
  0xa4   : > { %1857 = vmatprep.mubr.msk.bf16.mxu0 %vm2093_vm0, %v2092_v59  ;;  %1917 = vmatprep.mubr.msk.bf16.mxu1 %vm2093_vm0, %v2092_v59 }
  0xab   : > { %1858 = vmatmul.mubr.bf16.gmra.mrb[20].mxu0 %v2032_v13  ;;  %1918 = vmatmul.mubr.bf16.gmra.mrb[20].mxu1 %v2033_v14 }
  0xac   : > { %1861 = vmatprep.mubr.msk.bf16.mxu0 %vm2093_vm0, %v2092_v59  ;;  %1921 = vmatprep.mubr.msk.bf16.mxu1 %vm2093_vm0, %v2092_v59 }
  0xb3   : > { %1862 = vmatmul.mubr.bf16.gmra.mrb[24].mxu0 %v2034_v15  ;;  %1922 = vmatmul.mubr.bf16.gmra.mrb[24].mxu1 %v2035_v16  ;;  %v631_v16 = vld [vmem:[%s3334_s3 + $0x30] sm:$0xff] }
  0xb4   : > { %1865 = vmatprep.mubr.msk.bf16.mxu0 %vm2093_vm0, %v2092_v59  ;;  %1925 = vmatprep.mubr.msk.bf16.mxu1 %vm2093_vm0, %v2092_v59 }
  0xbb   : > { %1866 = vmatmul.mubr.bf16.gmra.mrb[28].mxu0 %v2036_v17  ;;  %1926 = vmatmul.mubr.bf16.gmra.mrb[28].mxu1 %v2037_v18  ;;  %v661_v17 = vld [vmem:[%s3334_s3 + $0x120] sm:$0xff] }
  0xbc   : > { %1869 = vmatprep.mubr.msk.bf16.mxu0 %vm2093_vm0, %v2092_v59  ;;  %1929 = vmatprep.mubr.msk.bf16.mxu1 %vm2093_vm0, %v2092_v59 }
  0xc3   : > { %1870 = vmatmul.mubr.bf16.gmra.mrb[32].mxu0 %v2038_v19  ;;  %1930 = vmatmul.mubr.bf16.gmra.mrb[32].mxu1 %v2039_v20  ;;  %v632_v19 = vld [vmem:[%s3334_s3 + $0x38] sm:$0xff] }
  0xc4   : > { %1873 = vmatprep.mubr.msk.bf16.mxu0 %vm2093_vm0, %v2092_v59  ;;  %1933 = vmatprep.mubr.msk.bf16.mxu1 %vm2093_vm0, %v2092_v59 }
  0xcb   : > { %1874 = vmatmul.mubr.bf16.gmra.mrb[36].mxu0 %v2040_v21  ;;  %1934 = vmatmul.mubr.bf16.gmra.mrb[36].mxu1 %v2041_v22  ;;  %v662_v21 = vld [vmem:[%s3334_s3 + $0x128] sm:$0xff] }
  0xcc   : > { %1877 = vmatprep.mubr.msk.bf16.mxu0 %vm2093_vm0, %v2092_v59  ;;  %1937 = vmatprep.mubr.msk.bf16.mxu1 %vm2093_vm0, %v2092_v59 }
  0xd3   : > { %1878 = vmatmul.mubr.bf16.gmra.mrb[40].mxu0 %v2042_v23  ;;  %1938 = vmatmul.mubr.bf16.gmra.mrb[40].mxu1 %v2043_v24 }
  0xd4   : > { %1881 = vmatprep.mubr.msk.bf16.mxu0 %vm2093_vm0, %v2092_v59  ;;  %1941 = vmatprep.mubr.msk.bf16.mxu1 %vm2093_vm0, %v2092_v59 }
  0xdb   : > { %1882 = vmatmul.mubr.bf16.gmra.mrb[44].mxu0 %v2044_v25  ;;  %1942 = vmatmul.mubr.bf16.gmra.mrb[44].mxu1 %v2045_v26 }
  0xdc   : > { %1885 = vmatprep.mubr.msk.bf16.mxu0 %vm2093_vm0, %v2092_v59  ;;  %1945 = vmatprep.mubr.msk.bf16.mxu1 %vm2093_vm0, %v2092_v59 }
  0xe3   : > { %1886 = vmatmul.mubr.bf16.gmra.mrb[48].mxu0 %v2046_v27  ;;  %1946 = vmatmul.mubr.bf16.gmra.mrb[48].mxu1 %v2047_v28 }
  0xe4   : > { %1889 = vmatprep.mubr.msk.bf16.mxu0 %vm2093_vm0, %v2092_v59  ;;  %1949 = vmatprep.mubr.msk.bf16.mxu1 %vm2093_vm0, %v2092_v59 }
  0xeb   : > { %1890 = vmatmul.mubr.bf16.gmra.mrb[52].mxu0 %v2048_v29  ;;  %1950 = vmatmul.mubr.bf16.gmra.mrb[52].mxu1 %v2049_v30 }
  0xec   : > { %1893 = vmatprep.mubr.msk.bf16.mxu0 %vm2093_vm0, %v2092_v59 }
  0xf3   : > { %1894 = vmatmul.mubr.bf16.gmra.mrb[56].mxu0 %v2050_v31 }
 0x156   : > { %v1009_v34 = vpop.f32.mrb[0].mxu0  ;;  %v1129_v36 = vpop.f32.mrb[0].mxu1 }
 0x157   : > { %v1239_v38 = vadd.f32 %v1009_v34, %v625_v32  ;;  %v1839_v39 = vpop.f32.mrb[1].mxu0  ;;  %v1269_v40 = vadd.f32 %v1129_v36, %v655_v33  ;;  %v1899_v41 = vpop.f32.mrb[1].mxu1  ;;  %v633_v32 = vld [vmem:[%s3334_s3 + $0x40] sm:$0xff]  ;;  %v663_v33 = vld [vmem:[%s3334_s3 + $0x130] sm:$0xff] }
 0x158   : > { %v1012_v42 = vpop.f32.mrb[2].mxu0  ;;  %v1132_v43 = vpop.f32.mrb[2].mxu1 }
 0x159   : > { %1296 = vst [vmem:[%s3334_s3] sm:$0xff] %v1239_v38  ;;  %v1240_v44 = vadd.f32 %v1012_v42, %v626_v35  ;;  %v1840_v45 = vpop.f32.mrb[3].mxu0  ;;  %1326 = vst [vmem:[%s3334_s3 + $0xf0] sm:$0xff] %v1269_v40  ;;  %v1270_v46 = vadd.f32 %v1132_v43, %v656_v37  ;;  %v1900_v47 = vpop.f32.mrb[3].mxu1  ;;  %v634_v35 = vld [vmem:[%s3334_s3 + $0x48] sm:$0xff]  ;;  %v664_v37 = vld [vmem:[%s3334_s3 + $0x138] sm:$0xff] }
 0x15b   : > { %1297 = vst [vmem:[%s3334_s3 + $0x8] sm:$0xff] %v1240_v44  ;;  %1327 = vst [vmem:[%s3334_s3 + $0xf8] sm:$0xff] %v1270_v46 }
 0x15e   : > { %v1017_v50 = vpop.f32.mrb[4].mxu0  ;;  %v1137_v52 = vpop.f32.mrb[4].mxu1 }
 0x15f   : > { %v1241_v54 = vadd.f32 %v1017_v50, %v627_v48  ;;  %v1843_v55 = vpop.f32.mrb[5].mxu0  ;;  %v1271_v56 = vadd.f32 %v1137_v52, %v657_v49  ;;  %v1903_v57 = vpop.f32.mrb[5].mxu1  ;;  %v635_v48 = vld [vmem:[%s3334_s3 + $0x50] sm:$0xff]  ;;  %v665_v49 = vld [vmem:[%s3334_s3 + $0x140] sm:$0xff] }
 0x160   : > { %v1020_v58 = vpop.f32.mrb[6].mxu0  ;;  %v1140_v59 = vpop.f32.mrb[6].mxu1 }
 0x161   : > { %1298 = vst [vmem:[%s3334_s3 + $0x10] sm:$0xff] %v1241_v54  ;;  %v1242_v60 = vadd.f32 %v1020_v58, %v628_v51  ;;  %v1844_v61 = vpop.f32.mrb[7].mxu0  ;;  %1328 = vst [vmem:[%s3334_s3 + $0x100] sm:$0xff] %v1271_v56  ;;  %v1272_v62 = vadd.f32 %v1140_v59, %v658_v53  ;;  %v1904_v63 = vpop.f32.mrb[7].mxu1  ;;  %v636_v51 = vld [vmem:[%s3334_s3 + $0x58] sm:$0xff]  ;;  %v666_v53 = vld [vmem:[%s3334_s3 + $0x148] sm:$0xff] }
 0x163   : > { %1299 = vst [vmem:[%s3334_s3 + $0x18] sm:$0xff] %v1242_v60  ;;  %1329 = vst [vmem:[%s3334_s3 + $0x108] sm:$0xff] %v1272_v62 }
 0x166   : > { %v1025_v2 = vpop.f32.mrb[8].mxu0  ;;  %v1145_v4 = vpop.f32.mrb[8].mxu1 }
 0x167   : > { %v1243_v6 = vadd.f32 %v1025_v2, %v629_v0  ;;  %v1847_v7 = vpop.f32.mrb[9].mxu0  ;;  %v1273_v8 = vadd.f32 %v1145_v4, %v659_v1  ;;  %v1907_v9 = vpop.f32.mrb[9].mxu1  ;;  %v637_v0 = vld [vmem:[%s3334_s3 + $0x60] sm:$0xff]  ;;  %v667_v1 = vld [vmem:[%s3334_s3 + $0x150] sm:$0xff] }
 0x168   : > { %v1028_v10 = vpop.f32.mrb[10].mxu0  ;;  %v1148_v11 = vpop.f32.mrb[10].mxu1 }
 0x169   : > { %1300 = vst [vmem:[%s3334_s3 + $0x20] sm:$0xff] %v1243_v6  ;;  %v1244_v12 = vadd.f32 %v1028_v10, %v630_v3  ;;  %v1848_v13 = vpop.f32.mrb[11].mxu0  ;;  %1330 = vst [vmem:[%s3334_s3 + $0x110] sm:$0xff] %v1273_v8  ;;  %v1274_v14 = vadd.f32 %v1148_v11, %v660_v5  ;;  %v1908_v15 = vpop.f32.mrb[11].mxu1  ;;  %v638_v3 = vld [vmem:[%s3334_s3 + $0x68] sm:$0xff]  ;;  %v668_v5 = vld [vmem:[%s3334_s3 + $0x158] sm:$0xff] }
 0x16b   : > { %1301 = vst [vmem:[%s3334_s3 + $0x28] sm:$0xff] %v1244_v12  ;;  %1331 = vst [vmem:[%s3334_s3 + $0x118] sm:$0xff] %v1274_v14 }
 0x16e   : > { %v1033_v18 = vpop.f32.mrb[12].mxu0  ;;  %v1153_v20 = vpop.f32.mrb[12].mxu1 }
 0x16f   : > { %v1245_v22 = vadd.f32 %v1033_v18, %v631_v16  ;;  %v1851_v23 = vpop.f32.mrb[13].mxu0  ;;  %v1275_v24 = vadd.f32 %v1153_v20, %v661_v17  ;;  %v1911_v25 = vpop.f32.mrb[13].mxu1  ;;  %v639_v16 = vld [vmem:[%s3334_s3 + $0x70] sm:$0xff]  ;;  %v669_v17 = vld [vmem:[%s3334_s3 + $0x160] sm:$0xff] }
 0x170   : > { %v1036_v26 = vpop.f32.mrb[14].mxu0  ;;  %v1156_v27 = vpop.f32.mrb[14].mxu1 }
 0x171   : > { %1302 = vst [vmem:[%s3334_s3 + $0x30] sm:$0xff] %v1245_v22  ;;  %v1246_v28 = vadd.f32 %v1036_v26, %v632_v19  ;;  %v1852_v29 = vpop.f32.mrb[15].mxu0  ;;  %1332 = vst [vmem:[%s3334_s3 + $0x120] sm:$0xff] %v1275_v24  ;;  %v1276_v30 = vadd.f32 %v1156_v27, %v662_v21  ;;  %v1912_v31 = vpop.f32.mrb[15].mxu1  ;;  %v640_v19 = vld [vmem:[%s3334_s3 + $0x78] sm:$0xff]  ;;  %v670_v21 = vld [vmem:[%s3334_s3 + $0x168] sm:$0xff] }
 0x173   : > { %1303 = vst [vmem:[%s3334_s3 + $0x38] sm:$0xff] %v1246_v28  ;;  %1333 = vst [vmem:[%s3334_s3 + $0x128] sm:$0xff] %v1276_v30 }
 0x176   : > { %v1041_v34 = vpop.f32.mrb[16].mxu0  ;;  %v1161_v36 = vpop.f32.mrb[16].mxu1 }
 0x177   : > { %v1247_v38 = vadd.f32 %v1041_v34, %v633_v32  ;;  %v1855_v39 = vpop.f32.mrb[17].mxu0  ;;  %v1277_v40 = vadd.f32 %v1161_v36, %v663_v33  ;;  %v1915_v41 = vpop.f32.mrb[17].mxu1  ;;  %v641_v32 = vld [vmem:[%s3334_s3 + $0x80] sm:$0xff]  ;;  %v671_v33 = vld [vmem:[%s3334_s3 + $0x170] sm:$0xff] }
 0x178   : > { %v1044_v42 = vpop.f32.mrb[18].mxu0  ;;  %v1164_v43 = vpop.f32.mrb[18].mxu1 }
 0x179   : > { %1304 = vst [vmem:[%s3334_s3 + $0x40] sm:$0xff] %v1247_v38  ;;  %v1248_v44 = vadd.f32 %v1044_v42, %v634_v35  ;;  %v1856_v45 = vpop.f32.mrb[19].mxu0  ;;  %1334 = vst [vmem:[%s3334_s3 + $0x130] sm:$0xff] %v1277_v40  ;;  %v1278_v46 = vadd.f32 %v1164_v43, %v664_v37  ;;  %v1916_v47 = vpop.f32.mrb[19].mxu1  ;;  %v642_v35 = vld [vmem:[%s3334_s3 + $0x88] sm:$0xff]  ;;  %v672_v37 = vld [vmem:[%s3334_s3 + $0x178] sm:$0xff] }
 0x17b   : > { %1305 = vst [vmem:[%s3334_s3 + $0x48] sm:$0xff] %v1248_v44  ;;  %1335 = vst [vmem:[%s3334_s3 + $0x138] sm:$0xff] %v1278_v46 }
 0x17e   : > { %v1049_v50 = vpop.f32.mrb[20].mxu0  ;;  %v1169_v52 = vpop.f32.mrb[20].mxu1 }
 0x17f   : > { %v1249_v54 = vadd.f32 %v1049_v50, %v635_v48  ;;  %v1859_v55 = vpop.f32.mrb[21].mxu0  ;;  %v1279_v56 = vadd.f32 %v1169_v52, %v665_v49  ;;  %v1919_v57 = vpop.f32.mrb[21].mxu1  ;;  %v643_v48 = vld [vmem:[%s3334_s3 + $0x90] sm:$0xff]  ;;  %v673_v49 = vld [vmem:[%s3334_s3 + $0x180] sm:$0xff] }
 0x180   : > { %v1052_v58 = vpop.f32.mrb[22].mxu0  ;;  %v1172_v59 = vpop.f32.mrb[22].mxu1 }
 0x181   : > { %1306 = vst [vmem:[%s3334_s3 + $0x50] sm:$0xff] %v1249_v54  ;;  %v1250_v60 = vadd.f32 %v1052_v58, %v636_v51  ;;  %v1860_v61 = vpop.f32.mrb[23].mxu0  ;;  %1336 = vst [vmem:[%s3334_s3 + $0x140] sm:$0xff] %v1279_v56  ;;  %v1280_v62 = vadd.f32 %v1172_v59, %v666_v53  ;;  %v1920_v63 = vpop.f32.mrb[23].mxu1  ;;  %v644_v51 = vld [vmem:[%s3334_s3 + $0x98] sm:$0xff]  ;;  %v674_v53 = vld [vmem:[%s3334_s3 + $0x188] sm:$0xff] }
 0x183   : > { %1307 = vst [vmem:[%s3334_s3 + $0x58] sm:$0xff] %v1250_v60  ;;  %1337 = vst [vmem:[%s3334_s3 + $0x148] sm:$0xff] %v1280_v62 }
 0x186   : > { %v1057_v2 = vpop.f32.mrb[24].mxu0  ;;  %v1177_v4 = vpop.f32.mrb[24].mxu1 }
 0x187   : > { %v1251_v6 = vadd.f32 %v1057_v2, %v637_v0  ;;  %v1863_v7 = vpop.f32.mrb[25].mxu0  ;;  %v1281_v8 = vadd.f32 %v1177_v4, %v667_v1  ;;  %v1923_v9 = vpop.f32.mrb[25].mxu1  ;;  %v645_v0 = vld [vmem:[%s3334_s3 + $0xa0] sm:$0xff]  ;;  %v675_v1 = vld [vmem:[%s3334_s3 + $0x190] sm:$0xff] }
 0x188   : > { %v1060_v10 = vpop.f32.mrb[26].mxu0  ;;  %v1180_v11 = vpop.f32.mrb[26].mxu1 }
 0x189   : > { %1308 = vst [vmem:[%s3334_s3 + $0x60] sm:$0xff] %v1251_v6  ;;  %v1252_v12 = vadd.f32 %v1060_v10, %v638_v3  ;;  %v1864_v13 = vpop.f32.mrb[27].mxu0  ;;  %1338 = vst [vmem:[%s3334_s3 + $0x150] sm:$0xff] %v1281_v8  ;;  %v1282_v14 = vadd.f32 %v1180_v11, %v668_v5  ;;  %v1924_v15 = vpop.f32.mrb[27].mxu1  ;;  %v646_v3 = vld [vmem:[%s3334_s3 + $0xa8] sm:$0xff]  ;;  %v676_v5 = vld [vmem:[%s3334_s3 + $0x198] sm:$0xff] }
 0x18b   : > { %1309 = vst [vmem:[%s3334_s3 + $0x68] sm:$0xff] %v1252_v12  ;;  %1339 = vst [vmem:[%s3334_s3 + $0x158] sm:$0xff] %v1282_v14 }
 0x18e   : > { %v1065_v18 = vpop.f32.mrb[28].mxu0  ;;  %v1185_v20 = vpop.f32.mrb[28].mxu1 }
 0x18f   : > { %v1253_v22 = vadd.f32 %v1065_v18, %v639_v16  ;;  %v1867_v23 = vpop.f32.mrb[29].mxu0  ;;  %v1283_v24 = vadd.f32 %v1185_v20, %v669_v17  ;;  %v1927_v25 = vpop.f32.mrb[29].mxu1  ;;  %v647_v16 = vld [vmem:[%s3334_s3 + $0xb0] sm:$0xff]  ;;  %v677_v17 = vld [vmem:[%s3334_s3 + $0x1a0] sm:$0xff] }
 0x190   : > { %v1068_v26 = vpop.f32.mrb[30].mxu0  ;;  %v1188_v27 = vpop.f32.mrb[30].mxu1 }
 0x191   : > { %1310 = vst [vmem:[%s3334_s3 + $0x70] sm:$0xff] %v1253_v22  ;;  %v1254_v28 = vadd.f32 %v1068_v26, %v640_v19  ;;  %v1868_v29 = vpop.f32.mrb[31].mxu0  ;;  %1340 = vst [vmem:[%s3334_s3 + $0x160] sm:$0xff] %v1283_v24  ;;  %v1284_v30 = vadd.f32 %v1188_v27, %v670_v21  ;;  %v1928_v31 = vpop.f32.mrb[31].mxu1  ;;  %v648_v19 = vld [vmem:[%s3334_s3 + $0xb8] sm:$0xff]  ;;  %v678_v21 = vld [vmem:[%s3334_s3 + $0x1a8] sm:$0xff] }
 0x193   : > { %1311 = vst [vmem:[%s3334_s3 + $0x78] sm:$0xff] %v1254_v28  ;;  %1341 = vst [vmem:[%s3334_s3 + $0x168] sm:$0xff] %v1284_v30 }
 0x196   : > { %v1073_v34 = vpop.f32.mrb[32].mxu0  ;;  %v1193_v36 = vpop.f32.mrb[32].mxu1 }
 0x197   : > { %v1255_v38 = vadd.f32 %v1073_v34, %v641_v32  ;;  %v1871_v39 = vpop.f32.mrb[33].mxu0  ;;  %v1285_v40 = vadd.f32 %v1193_v36, %v671_v33  ;;  %v1931_v41 = vpop.f32.mrb[33].mxu1  ;;  %v649_v32 = vld [vmem:[%s3334_s3 + $0xc0] sm:$0xff]  ;;  %v679_v33 = vld [vmem:[%s3334_s3 + $0x1b0] sm:$0xff] }
 0x198   : > { %v1076_v42 = vpop.f32.mrb[34].mxu0  ;;  %v1196_v43 = vpop.f32.mrb[34].mxu1 }
 0x199   : > { %1312 = vst [vmem:[%s3334_s3 + $0x80] sm:$0xff] %v1255_v38  ;;  %v1256_v44 = vadd.f32 %v1076_v42, %v642_v35  ;;  %v1872_v45 = vpop.f32.mrb[35].mxu0  ;;  %1342 = vst [vmem:[%s3334_s3 + $0x170] sm:$0xff] %v1285_v40  ;;  %v1286_v46 = vadd.f32 %v1196_v43, %v672_v37  ;;  %v1932_v47 = vpop.f32.mrb[35].mxu1  ;;  %v650_v35 = vld [vmem:[%s3334_s3 + $0xc8] sm:$0xff]  ;;  %v680_v37 = vld [vmem:[%s3334_s3 + $0x1b8] sm:$0xff] }
 0x19b   : > { %1313 = vst [vmem:[%s3334_s3 + $0x88] sm:$0xff] %v1256_v44  ;;  %1343 = vst [vmem:[%s3334_s3 + $0x178] sm:$0xff] %v1286_v46 }
 0x19e   : > { %v1081_v50 = vpop.f32.mrb[36].mxu0  ;;  %v1201_v52 = vpop.f32.mrb[36].mxu1 }
 0x19f   : > { %v1257_v54 = vadd.f32 %v1081_v50, %v643_v48  ;;  %v1875_v55 = vpop.f32.mrb[37].mxu0  ;;  %v1287_v56 = vadd.f32 %v1201_v52, %v673_v49  ;;  %v1935_v57 = vpop.f32.mrb[37].mxu1  ;;  %v651_v48 = vld [vmem:[%s3334_s3 + $0xd0] sm:$0xff]  ;;  %v681_v49 = vld [vmem:[%s3334_s3 + $0x1c0] sm:$0xff] }
 0x1a0   : > { %v1084_v58 = vpop.f32.mrb[38].mxu0  ;;  %v1204_v59 = vpop.f32.mrb[38].mxu1 }
 0x1a1   : > { %1314 = vst [vmem:[%s3334_s3 + $0x90] sm:$0xff] %v1257_v54  ;;  %v1258_v60 = vadd.f32 %v1084_v58, %v644_v51  ;;  %v1876_v61 = vpop.f32.mrb[39].mxu0  ;;  %1344 = vst [vmem:[%s3334_s3 + $0x180] sm:$0xff] %v1287_v56  ;;  %v1288_v62 = vadd.f32 %v1204_v59, %v674_v53  ;;  %v1936_v63 = vpop.f32.mrb[39].mxu1  ;;  %v652_v51 = vld [vmem:[%s3334_s3 + $0xd8] sm:$0xff] }
 0x1a3   : > { %1315 = vst [vmem:[%s3334_s3 + $0x98] sm:$0xff] %v1258_v60  ;;  %1345 = vst [vmem:[%s3334_s3 + $0x188] sm:$0xff] %v1288_v62  ;;  %v653_v62 = vld [vmem:[%s3334_s3 + $0xe0] sm:$0xff] }
 0x1a6   : > { %v1089_v2 = vpop.f32.mrb[40].mxu0  ;;  %v1209_v4 = vpop.f32.mrb[40].mxu1 }
 0x1a7   : > { %v1259_v6 = vadd.f32 %v1089_v2, %v645_v0  ;;  %v1879_v7 = vpop.f32.mrb[41].mxu0  ;;  %v1289_v8 = vadd.f32 %v1209_v4, %v675_v1  ;;  %v1939_v9 = vpop.f32.mrb[41].mxu1  ;;  %v654_v0 = vld [vmem:[%s3334_s3 + $0xe8] sm:$0xff] }
 0x1a8   : > { %v1092_v10 = vpop.f32.mrb[42].mxu0  ;;  %v1212_v11 = vpop.f32.mrb[42].mxu1  ;;  %v2918_v7 = vld [vmem:[%s3333_s2] ss:$0 sm:$0xff] (!%p1778_p11) }
 0x1a9   : > { %1316 = vst [vmem:[%s3334_s3 + $0xa0] sm:$0xff] %v1259_v6  ;;  %v1260_v12 = vadd.f32 %v1092_v10, %v646_v3  ;;  %v1880_v13 = vpop.f32.mrb[43].mxu0  ;;  %1346 = vst [vmem:[%s3334_s3 + $0x190] sm:$0xff] %v1289_v8  ;;  %v1290_v14 = vadd.f32 %v1212_v11, %v676_v5  ;;  %v1940_v15 = vpop.f32.mrb[43].mxu1  ;;  %v1357_v6 = vld [vmem:[%s3334_s3] sm:$0xff] (!%p1778_p11)  ;;  %v1358_v8 = vld [vmem:[%s3334_s3 + $0x8] sm:$0xff] (!%p1778_p11) }
 0x1aa   : > { %v1421_v9 = vadd.f32 (!%p1778_p11), %v2918_v7, %v1357_v6  ;;  %v1422_v10 = vadd.f32 (!%p1778_p11), %v2918_v7, %v1358_v8  ;;  %v1359_v11 = vld [vmem:[%s3334_s3 + $0x10] sm:$0xff] (!%p1778_p11)  ;;  %v1361_v13 = vld [vmem:[%s3334_s3 + $0x20] sm:$0xff] (!%p1778_p11) }
 0x1ab   : > { %1317 = vst [vmem:[%s3334_s3 + $0xa8] sm:$0xff] %v1260_v12  ;;  %1347 = vst [vmem:[%s3334_s3 + $0x198] sm:$0xff] %v1290_v14  ;;  %v1360_v12 = vld [vmem:[%s3334_s3 + $0x18] sm:$0xff] (!%p1778_p11)  ;;  %v1423_v14 = vadd.f32 (!%p1778_p11), %v2918_v7, %v1359_v11 }
 0x1ac   : > { %v1424_v15 = vadd.f32 (!%p1778_p11), %v2918_v7, %v1360_v12 }
 0x1ae   : > { %v1097_v18 = vpop.f32.mrb[44].mxu0  ;;  %v1217_v20 = vpop.f32.mrb[44].mxu1 }
 0x1af   : > { %v1261_v22 = vadd.f32 %v1097_v18, %v647_v16  ;;  %v1883_v23 = vpop.f32.mrb[45].mxu0  ;;  %v1291_v24 = vadd.f32 %v1217_v20, %v677_v17  ;;  %v1943_v25 = vpop.f32.mrb[45].mxu1  ;;  %v1425_v16 = vadd.f32 (!%p1778_p11), %v2918_v7, %v1361_v13  ;;  %v1362_v17 = vld [vmem:[%s3334_s3 + $0x28] sm:$0xff] (!%p1778_p11)  ;;  %v1363_v18 = vld [vmem:[%s3334_s3 + $0x30] sm:$0xff] (!%p1778_p11)  ;;  %v1478_v20 = vmax.f32 (!%p1778_p11), %v1421_v9, 0.0 }
 0x1b0   : > { %v1100_v26 = vpop.f32.mrb[46].mxu0  ;;  %v1220_v27 = vpop.f32.mrb[46].mxu1  ;;  %v1427_v23 = vadd.f32 (!%p1778_p11), %v2918_v7, %v1363_v18  ;;  %v1366_v25 = vld [vmem:[%s3334_s3 + $0x48] sm:$0xff] (!%p1778_p11) }
 0x1b1   : > { %1318 = vst [vmem:[%s3334_s3 + $0xb0] sm:$0xff] %v1261_v22  ;;  %v1262_v28 = vadd.f32 %v1100_v26, %v648_v19  ;;  %v1884_v29 = vpop.f32.mrb[47].mxu0  ;;  %1348 = vst [vmem:[%s3334_s3 + $0x1a0] sm:$0xff] %v1291_v24  ;;  %v1292_v30 = vadd.f32 %v1220_v27, %v678_v21  ;;  %v1944_v31 = vpop.f32.mrb[47].mxu1  ;;  %v1364_v19 = vld [vmem:[%s3334_s3 + $0x38] sm:$0xff] (!%p1778_p11)  ;;  %v1479_v21 = vmax.f32 (!%p1778_p11), %v1422_v10, 0.0  ;;  %v1426_v22 = vadd.f32 (!%p1778_p11), %v2918_v7, %v1362_v17 }
 0x1b2   : > { %v1365_v24 = vld [vmem:[%s3334_s3 + $0x40] sm:$0xff] (!%p1778_p11)  ;;  %v1367_v26 = vld [vmem:[%s3334_s3 + $0x50] sm:$0xff] (!%p1778_p11)  ;;  %v1480_v27 = vmax.f32 (!%p1778_p11), %v1423_v14, 0.0  ;;  %v1482_v29 = vmax.f32 (!%p1778_p11), %v1425_v16, 0.0  ;;  %v1368_v31 = vld [vmem:[%s3334_s3 + $0x58] sm:$0xff] (!%p1778_p11)  ;;  %1535 = vst [vmem:[%s3334_s3] sm:$0xff] (!%p1778_p11), %v1478_v20 }
 0x1b3   : > { %1319 = vst [vmem:[%s3334_s3 + $0xb8] sm:$0xff] %v1262_v28  ;;  %1349 = vst [vmem:[%s3334_s3 + $0x1a8] sm:$0xff] %v1292_v30  ;;  %v1481_v28 = vmax.f32 (!%p1778_p11), %v1424_v15, 0.0  ;;  %v1428_v30 = vadd.f32 (!%p1778_p11), %v2918_v7, %v1364_v19  ;;  %v1387_v19 = vld [vmem:[%s3334_s3 + $0xf0] sm:$0xff] (!%p1778_p11) }
 0x1b4   : > { %1536 = vst [vmem:[%s3334_s3 + $0x8] sm:$0xff] (!%p1778_p11), %v1479_v21  ;;  %1537 = vst [vmem:[%s3334_s3 + $0x10] sm:$0xff] (!%p1778_p11), %v1480_v27 }
 0x1b5   : > { %1538 = vst [vmem:[%s3334_s3 + $0x18] sm:$0xff] (!%p1778_p11), %v1481_v28  ;;  %1539 = vst [vmem:[%s3334_s3 + $0x20] sm:$0xff] (!%p1778_p11), %v1482_v29  ;;  %v1389_v29 = vld [vmem:[%s3334_s3 + $0x100] sm:$0xff] (!%p1778_p11) }
 0x1b6   : > { %v1105_v34 = vpop.f32.mrb[48].mxu0  ;;  %v1225_v36 = vpop.f32.mrb[48].mxu1 }
 0x1b7   : > { %v1263_v38 = vadd.f32 %v1105_v34, %v649_v32  ;;  %v1887_v39 = vpop.f32.mrb[49].mxu0  ;;  %v1293_v40 = vadd.f32 %v1225_v36, %v679_v33  ;;  %v1947_v41 = vpop.f32.mrb[49].mxu1  ;;  %v1369_v32 = vld [vmem:[%s3334_s3 + $0x60] sm:$0xff] (!%p1778_p11)  ;;  %v1370_v33 = vld [vmem:[%s3334_s3 + $0x68] sm:$0xff] (!%p1778_p11)  ;;  %v1483_v34 = vmax.f32 (!%p1778_p11), %v1426_v22, 0.0  ;;  %v1429_v36 = vadd.f32 (!%p1778_p11), %v2918_v7, %v1365_v24  ;;  %v1388_v24 = vld [vmem:[%s3334_s3 + $0xf8] sm:$0xff] (!%p1778_p11) }
 0x1b8   : > { %v1108_v42 = vpop.f32.mrb[50].mxu0  ;;  %v1228_v43 = vpop.f32.mrb[50].mxu1  ;;  %v1372_v39 = vld [vmem:[%s3334_s3 + $0x78] sm:$0xff] (!%p1778_p11)  ;;  %v1431_v41 = vadd.f32 (!%p1778_p11), %v2918_v7, %v1367_v26 }
 0x1b9   : > { %1320 = vst [vmem:[%s3334_s3 + $0xc0] sm:$0xff] %v1263_v38  ;;  %v1264_v44 = vadd.f32 %v1108_v42, %v650_v35  ;;  %v1888_v45 = vpop.f32.mrb[51].mxu0  ;;  %1350 = vst [vmem:[%s3334_s3 + $0x1b0] sm:$0xff] %v1293_v40  ;;  %v1294_v46 = vadd.f32 %v1228_v43, %v680_v37  ;;  %v1948_v47 = vpop.f32.mrb[51].mxu1  ;;  %v1484_v35 = vmax.f32 (!%p1778_p11), %v1427_v23, 0.0  ;;  %v1430_v37 = vadd.f32 (!%p1778_p11), %v2918_v7, %v1366_v25  ;;  %v1371_v38 = vld [vmem:[%s3334_s3 + $0x70] sm:$0xff] (!%p1778_p11) }
 0x1ba   : > { %v1485_v40 = vmax.f32 (!%p1778_p11), %v1428_v30, 0.0  ;;  %v1432_v42 = vadd.f32 (!%p1778_p11), %v2918_v7, %v1368_v31  ;;  %v1433_v43 = vadd.f32 (!%p1778_p11), %v2918_v7, %v1369_v32  ;;  %v1374_v45 = vld [vmem:[%s3334_s3 + $0x88] sm:$0xff] (!%p1778_p11)  ;;  %1540 = vst [vmem:[%s3334_s3 + $0x28] sm:$0xff] (!%p1778_p11), %v1483_v34  ;;  %v1451_v34 = vadd.f32 (!%p1778_p11), %v2918_v7, %v1387_v19 }
 0x1bb   : > { %1321 = vst [vmem:[%s3334_s3 + $0xc8] sm:$0xff] %v1264_v44  ;;  %1351 = vst [vmem:[%s3334_s3 + $0x1b8] sm:$0xff] %v1294_v46  ;;  %v1373_v44 = vld [vmem:[%s3334_s3 + $0x80] sm:$0xff] (!%p1778_p11)  ;;  %v1486_v46 = vmax.f32 (!%p1778_p11), %v1429_v36, 0.0  ;;  %v1487_v47 = vmax.f32 (!%p1778_p11), %v1430_v37, 0.0  ;;  %v1390_v30 = vld [vmem:[%s3334_s3 + $0x108] sm:$0xff] (!%p1778_p11) }
 0x1bc   : > { %1541 = vst [vmem:[%s3334_s3 + $0x30] sm:$0xff] (!%p1778_p11), %v1484_v35  ;;  %1542 = vst [vmem:[%s3334_s3 + $0x38] sm:$0xff] (!%p1778_p11), %v1485_v40  ;;  %v1391_v35 = vld [vmem:[%s3334_s3 + $0x110] sm:$0xff] (!%p1778_p11)  ;;  %v1392_v36 = vld [vmem:[%s3334_s3 + $0x118] sm:$0xff] (!%p1778_p11) }
 0x1bd   : > { %1543 = vst [vmem:[%s3334_s3 + $0x40] sm:$0xff] (!%p1778_p11), %v1486_v46  ;;  %1544 = vst [vmem:[%s3334_s3 + $0x48] sm:$0xff] (!%p1778_p11), %v1487_v47  ;;  %v1393_v37 = vld [vmem:[%s3334_s3 + $0x120] sm:$0xff] (!%p1778_p11)  ;;  %v1453_v46 = vadd.f32 (!%p1778_p11), %v2918_v7, %v1389_v29  ;;  %v1454_v47 = vadd.f32 (!%p1778_p11), %v2918_v7, %v1390_v30 }
 0x1be   : > { %v1113_v50 = vpop.f32.mrb[52].mxu0  ;;  %v1233_v52 = vpop.f32.mrb[52].mxu1 }
 0x1bf   : > { %v1265_v53 = vadd.f32 %v1113_v50, %v651_v48  ;;  %v1891_v54 = vpop.f32.mrb[53].mxu0  ;;  %v1295_v55 = vadd.f32 %v1233_v52, %v681_v49  ;;  %v1951_v56 = vpop.f32.mrb[53].mxu1  ;;  %v1434_v48 = vadd.f32 (!%p1778_p11), %v2918_v7, %v1370_v33  ;;  %v1435_v49 = vadd.f32 (!%p1778_p11), %v2918_v7, %v1371_v38  ;;  %v1375_v50 = vld [vmem:[%s3334_s3 + $0x90] sm:$0xff] (!%p1778_p11)  ;;  %v1377_v52 = vld [vmem:[%s3334_s3 + $0xa0] sm:$0xff] (!%p1778_p11) }
 0x1c0   : > { %v1116_v57 = vpop.f32.mrb[54].mxu0  ;;  %v1236_v58 = vpop.f32.mrb[54].mxu1  ;;  %v1489_v54 = vmax.f32 (!%p1778_p11), %v1432_v42, 0.0  ;;  %v1436_v56 = vadd.f32 (!%p1778_p11), %v2918_v7, %v1372_v39  ;;  %v1394_v42 = vld [vmem:[%s3334_s3 + $0x128] sm:$0xff] (!%p1778_p11) }
 0x1c1   : > { %1322 = vst [vmem:[%s3334_s3 + $0xd0] sm:$0xff] %v1265_v53  ;;  %v1266_v59 = vadd.f32 %v1116_v57, %v652_v51  ;;  %v1892_v60 = vpop.f32.mrb[55].mxu0  ;;  %1352 = vst [vmem:[%s3334_s3 + $0x1c0] sm:$0xff] %v1295_v55  ;;  %v1952_v61 = vpop.f32.mrb[55].mxu1  ;;  %v1376_v51 = vld [vmem:[%s3334_s3 + $0x98] sm:$0xff] (!%p1778_p11)  ;;  %v1488_v53 = vmax.f32 (!%p1778_p11), %v1431_v41, 0.0  ;;  %v1452_v41 = vadd.f32 (!%p1778_p11), %v2918_v7, %v1388_v24 }
 0x1c2   : > { %v1490_v55 = vmax.f32 (!%p1778_p11), %v1433_v43, 0.0  ;;  %v1378_v57 = vld [vmem:[%s3334_s3 + $0xa8] sm:$0xff] (!%p1778_p11)  ;;  %v1379_v58 = vld [vmem:[%s3334_s3 + $0xb0] sm:$0xff] (!%p1778_p11)  ;;  %v1492_v60 = vmax.f32 (!%p1778_p11), %v1435_v49, 0.0  ;;  %v1437_v61 = vadd.f32 (!%p1778_p11), %v2918_v7, %v1373_v44  ;;  %1546 = vst [vmem:[%s3334_s3 + $0x58] sm:$0xff] (!%p1778_p11), %v1489_v54 }
 0x1c3   : > { %1323 = vst [vmem:[%s3334_s3 + $0xd8] sm:$0xff] %v1266_v59  ;;  %v1491_v59 = vmax.f32 (!%p1778_p11), %v1434_v48, 0.0  ;;  %1545 = vst [vmem:[%s3334_s3 + $0x50] sm:$0xff] (!%p1778_p11), %v1488_v53  ;;  %v1442_v9 = vadd.f32 (!%p1778_p11), %v2918_v7, %v1378_v57  ;;  %v1443_v10 = vadd.f32 (!%p1778_p11), %v2918_v7, %v1379_v58  ;;  %v1395_v43 = vld [vmem:[%s3334_s3 + $0x130] sm:$0xff] (!%p1778_p11)  ;;  %v1396_v48 = vld [vmem:[%s3334_s3 + $0x138] sm:$0xff] (!%p1778_p11)  ;;  %v1509_v49 = vmax.f32 (!%p1778_p11), %v1452_v41, 0.0 }
 0x1c4   : > { %1547 = vst [vmem:[%s3334_s3 + $0x60] sm:$0xff] (!%p1778_p11), %v1490_v55  ;;  %1549 = vst [vmem:[%s3334_s3 + $0x70] sm:$0xff] (!%p1778_p11), %v1492_v60  ;;  %v1494_v6 = vmax.f32 (!%p1778_p11), %v1437_v61, 0.0  ;;  %v1397_v53 = vld [vmem:[%s3334_s3 + $0x140] sm:$0xff] (!%p1778_p11)  ;;  %v1398_v54 = vld [vmem:[%s3334_s3 + $0x148] sm:$0xff] (!%p1778_p11)  ;;  %v1510_v55 = vmax.f32 (!%p1778_p11), %v1453_v46, 0.0  ;;  %v1458_v57 = vadd.f32 (!%p1778_p11), %v2918_v7, %v1394_v42  ;;  %v1459_v58 = vadd.f32 (!%p1778_p11), %v2918_v7, %v1395_v43 }
 0x1c5   : > { %1356 = sbr.rel (%p1778_p11) target bundleno = 478 (0x1de), region = 81  ;;  %1548 = vst [vmem:[%s3334_s3 + $0x68] sm:$0xff] (!%p1778_p11), %v1491_v59  ;;  %v1499_v20 = vmax.f32 (!%p1778_p11), %v1442_v9, 0.0  ;;  %v1500_v21 = vmax.f32 (!%p1778_p11), %v1443_v10, 0.0  ;;  %v1399_v59 = vld [vmem:[%s3334_s3 + $0x150] sm:$0xff] (!%p1778_p11)  ;;  %v1400_v60 = vld [vmem:[%s3334_s3 + $0x158] sm:$0xff] (!%p1778_p11) }
 0x1c6   : > { %v1121_v63 = vpop.f32.mrb[56].mxu0  ;;  %1551 = vst [vmem:[%s3334_s3 + $0x80] sm:$0xff] (!%p1778_p11), %v1494_v6  ;;  %v1401_v61 = vld [vmem:[%s3334_s3 + $0x160] sm:$0xff] (!%p1778_p11)  ;;  %1566 = vst [vmem:[%s3334_s3 + $0xf8] sm:$0xff] (!%p1778_p11), %v1509_v49  ;;  %v1461_v6 = vadd.f32 (!%p1778_p11), %v2918_v7, %v1397_v53  ;;  %v1404_v9 = vld [vmem:[%s3334_s3 + $0x178] sm:$0xff] (!%p1778_p11) }
 0x1c7   : > { %v1267_v1 = vadd.f32 %v1121_v63, %v653_v62  ;;  %v1895_v2 = vpop.f32.mrb[57].mxu0  ;;  %v1438_v62 = vadd.f32 (!%p1778_p11), %v2918_v7, %v1374_v45  ;;  %v1380_v63 = vld [vmem:[%s3334_s3 + $0xb8] sm:$0xff] (!%p1778_p11)  ;;  %1556 = vst [vmem:[%s3334_s3 + $0xa8] sm:$0xff] (!%p1778_p11), %v1499_v20  ;;  %1557 = vst [vmem:[%s3334_s3 + $0xb0] sm:$0xff] (!%p1778_p11), %v1500_v21  ;;  %v1508_v45 = vmax.f32 (!%p1778_p11), %v1451_v34, 0.0  ;;  %v1407_v20 = vld [vmem:[%s3334_s3 + $0x190] sm:$0xff] (!%p1778_p11) }
 0x1c8   : > { %v1124_v3 = vpop.f32.mrb[58].mxu0  ;;  %v1440_v2 = vadd.f32 (!%p1778_p11), %v2918_v7, %v1376_v51  ;;  %v1383_v11 = vld [vmem:[%s3334_s3 + $0xd0] sm:$0xff] (!%p1778_p11)  ;;  %v1444_v17 = vadd.f32 (!%p1778_p11), %v2918_v7, %v1380_v63  ;;  %v1456_v51 = vadd.f32 (!%p1778_p11), %v2918_v7, %v1392_v36  ;;  %1567 = vst [vmem:[%s3334_s3 + $0x100] sm:$0xff] (!%p1778_p11), %v1510_v55  ;;  %v1408_v21 = vld [vmem:[%s3334_s3 + $0x198] sm:$0xff] (!%p1778_p11) }
 0x1c9   : > { %1324 = vst [vmem:[%s3334_s3 + $0xe0] sm:$0xff] %v1267_v1  ;;  %v1268_v4 = vadd.f32 %v1124_v3, %v654_v0  ;;  %v1896_v5 = vpop.f32.mrb[59].mxu0  ;;  %v1493_v0 = vmax.f32 (!%p1778_p11), %v1436_v56, 0.0  ;;  %v1439_v1 = vadd.f32 (!%p1778_p11), %v2918_v7, %v1375_v50  ;;  %v1441_v3 = vadd.f32 (!%p1778_p11), %v2918_v7, %v1377_v52  ;;  %1565 = vst [vmem:[%s3334_s3 + $0xf0] sm:$0xff] (!%p1778_p11), %v1508_v45 }
 0x1ca   : > { %v1382_v5 = vld [vmem:[%s3334_s3 + $0xc8] sm:$0xff] (!%p1778_p11)  ;;  %v1495_v8 = vmax.f32 (!%p1778_p11), %v1438_v62, 0.0  ;;  %v1384_v12 = vld [vmem:[%s3334_s3 + $0xd8] sm:$0xff] (!%p1778_p11)  ;;  %v1497_v15 = vmax.f32 (!%p1778_p11), %v1440_v2, 0.0  ;;  %v1501_v25 = vmax.f32 (!%p1778_p11), %v1444_v17, 0.0  ;;  %v1447_v26 = vadd.f32 (!%p1778_p11), %v2918_v7, %v1383_v11 }
 0x1cb   : > { %1325 = vst [vmem:[%s3334_s3 + $0xe8] sm:$0xff] %v1268_v4  ;;  %v1381_v4 = vld [vmem:[%s3334_s3 + $0xc0] sm:$0xff] (!%p1778_p11)  ;;  %1550 = vst [vmem:[%s3334_s3 + $0x78] sm:$0xff] (!%p1778_p11), %v1493_v0  ;;  %v1496_v14 = vmax.f32 (!%p1778_p11), %v1439_v1, 0.0  ;;  %v1498_v16 = vmax.f32 (!%p1778_p11), %v1441_v3, 0.0  ;;  %v1446_v23 = vadd.f32 (!%p1778_p11), %v2918_v7, %v1382_v5  ;;  %v1448_v27 = vadd.f32 (!%p1778_p11), %v2918_v7, %v1384_v12  ;;  %v1402_v2 = vld [vmem:[%s3334_s3 + $0x168] sm:$0xff] (!%p1778_p11) }
 0x1cc   : > { %1552 = vst [vmem:[%s3334_s3 + $0x88] sm:$0xff] %v1495_v8  ;;  %v1445_v22 = vadd.f32 %v2918_v7, %v1381_v4  ;;  %1554 = vst [vmem:[%s3334_s3 + $0x98] sm:$0xff] %v1497_v15  ;;  %v1504_v38 = vmax.f32 %v1447_v26, 0.0  ;;  %v1455_v50 = vadd.f32 %v2918_v7, %v1391_v35  ;;  %v1457_v52 = vadd.f32 %v2918_v7, %v1393_v37  ;;  %v1403_v3 = vld [vmem:[%s3334_s3 + $0x170] sm:$0xff]  ;;  %v1406_v15 = vld [vmem:[%s3334_s3 + $0x188] sm:$0xff] }
 0x1cd   : > { %1553 = vst [vmem:[%s3334_s3 + $0x90] sm:$0xff] %v1496_v14  ;;  %1555 = vst [vmem:[%s3334_s3 + $0xa0] sm:$0xff] %v1498_v16  ;;  %v1503_v32 = vmax.f32 %v1446_v23, 0.0  ;;  %v1505_v39 = vmax.f32 %v1448_v27, 0.0  ;;  %v1511_v56 = vmax.f32 %v1454_v47, 0.0  ;;  %v1513_v63 = vmax.f32 %v1456_v51, 0.0 }
 0x1ce   : > { %v1502_v31 = vmax.f32 %v1445_v22, 0.0  ;;  %1558 = vst [vmem:[%s3334_s3 + $0xb8] sm:$0xff] %v1501_v25  ;;  %1561 = vst [vmem:[%s3334_s3 + $0xd0] sm:$0xff] %v1504_v38  ;;  %v1512_v62 = vmax.f32 %v1455_v50, 0.0  ;;  %v1514_v0 = vmax.f32 %v1457_v52, 0.0  ;;  %v1460_v1 = vadd.f32 %v2918_v7, %v1396_v48  ;;  %v1405_v14 = vld [vmem:[%s3334_s3 + $0x180] sm:$0xff] }
 0x1cf   : > { %1560 = vst [vmem:[%s3334_s3 + $0xc8] sm:$0xff] %v1503_v32  ;;  %1562 = vst [vmem:[%s3334_s3 + $0xd8] sm:$0xff] %v1505_v39  ;;  %v1515_v4 = vmax.f32 %v1458_v57, 0.0  ;;  %v1516_v5 = vmax.f32 %v1459_v58, 0.0  ;;  %v1462_v8 = vadd.f32 %v2918_v7, %v1398_v54  ;;  %v1463_v11 = vadd.f32 %v2918_v7, %v1399_v59  ;;  %v1409_v22 = vld [vmem:[%s3334_s3 + $0x1a0] sm:$0xff]  ;;  %v1410_v27 = vld [vmem:[%s3334_s3 + $0x1a8] sm:$0xff] }
 0x1d0   : > { %v1385_v13 = vld [vmem:[%s3334_s3 + $0xe0] sm:$0xff]  ;;  %1559 = vst [vmem:[%s3334_s3 + $0xc0] sm:$0xff] %v1502_v31  ;;  %1568 = vst [vmem:[%s3334_s3 + $0x108] sm:$0xff] %v1511_v56  ;;  %v1517_v10 = vmax.f32 %v1460_v1, 0.0  ;;  %v1464_v12 = vadd.f32 %v2918_v7, %v1400_v60  ;;  %v1518_v16 = vmax.f32 %v1461_v6, 0.0  ;;  %v1467_v19 = vadd.f32 %v2918_v7, %v1403_v3 }
 0x1d1   : > { %v1449_v28 = vadd.f32 %v2918_v7, %v1385_v13  ;;  %1569 = vst [vmem:[%s3334_s3 + $0x110] sm:$0xff] %v1512_v62  ;;  %1570 = vst [vmem:[%s3334_s3 + $0x118] sm:$0xff] %v1513_v63  ;;  %v1465_v13 = vadd.f32 %v2918_v7, %v1401_v61  ;;  %v1519_v17 = vmax.f32 %v1462_v8, 0.0  ;;  %v1520_v23 = vmax.f32 %v1463_v11, 0.0  ;;  %v1413_v38 = vld [vmem:[%s3334_s3 + $0x1c0] sm:$0xff] }
 0x1d2   : > { %v1386_v18 = vld [vmem:[%s3334_s3 + $0xe8] sm:$0xff]  ;;  %1571 = vst [vmem:[%s3334_s3 + $0x120] sm:$0xff] %v1514_v0  ;;  %1572 = vst [vmem:[%s3334_s3 + $0x128] sm:$0xff] %v1515_v4  ;;  %v1521_v24 = vmax.f32 %v1464_v12, 0.0  ;;  %v1468_v26 = vadd.f32 %v2918_v7, %v1404_v9  ;;  %v1524_v30 = vmax.f32 %v1467_v19, 0.0  ;;  %v1469_v31 = vadd.f32 %v2918_v7, %v1405_v14 }
 0x1d3   : > { %v1450_v33 = vadd.f32 %v2918_v7, %v1386_v18  ;;  %v1506_v40 = vmax.f32 %v1449_v28, 0.0  ;;  %1573 = vst [vmem:[%s3334_s3 + $0x130] sm:$0xff] %v1516_v5  ;;  %v1466_v18 = vadd.f32 %v2918_v7, %v1402_v2  ;;  %1574 = vst [vmem:[%s3334_s3 + $0x138] sm:$0xff] %v1517_v10  ;;  %v1522_v25 = vmax.f32 %v1465_v13, 0.0  ;;  %v1411_v28 = vld [vmem:[%s3334_s3 + $0x1b0] sm:$0xff] }
 0x1d4   : > { %1575 = vst [vmem:[%s3334_s3 + $0x140] sm:$0xff] %v1518_v16  ;;  %1576 = vst [vmem:[%s3334_s3 + $0x148] sm:$0xff] %v1519_v17  ;;  %v1470_v32 = vadd.f32 %v2918_v7, %v1406_v15  ;;  %v1525_v34 = vmax.f32 %v1468_v26, 0.0  ;;  %v1471_v35 = vadd.f32 %v2918_v7, %v1407_v20  ;;  %v1472_v36 = vadd.f32 %v2918_v7, %v1408_v21 }
 0x1d5   : > { %v1507_v44 = vmax.f32 %v1450_v33, 0.0  ;;  %1563 = vst [vmem:[%s3334_s3 + $0xe0] sm:$0xff] %v1506_v40  ;;  %v1523_v29 = vmax.f32 %v1466_v18, 0.0  ;;  %v1412_v33 = vld [vmem:[%s3334_s3 + $0x1b8] sm:$0xff]  ;;  %1577 = vst [vmem:[%s3334_s3 + $0x150] sm:$0xff] %v1520_v23  ;;  %v1473_v37 = vadd.f32 %v2918_v7, %v1409_v22  ;;  %v1526_v39 = vmax.f32 %v1469_v31, 0.0 }
 0x1d6   : > { %1578 = vst [vmem:[%s3334_s3 + $0x158] sm:$0xff] %v1521_v24  ;;  %1579 = vst [vmem:[%s3334_s3 + $0x160] sm:$0xff] %v1522_v25  ;;  %v1527_v40 = vmax.f32 %v1470_v32, 0.0  ;;  %v1474_v41 = vadd.f32 %v2918_v7, %v1410_v27  ;;  %v1475_v42 = vadd.f32 %v2918_v7, %v1411_v28  ;;  %v1528_v43 = vmax.f32 %v1471_v35, 0.0 }
 0x1d7   : > { %1564 = vst [vmem:[%s3334_s3 + $0xe8] sm:$0xff] %v1507_v44  ;;  %1580 = vst [vmem:[%s3334_s3 + $0x168] sm:$0xff] %v1523_v29  ;;  %v1529_v44 = vmax.f32 %v1472_v36, 0.0  ;;  %v1530_v45 = vmax.f32 %v1473_v37, 0.0  ;;  %v1476_v46 = vadd.f32 %v2918_v7, %v1412_v33  ;;  %v1477_v49 = vadd.f32 %v2918_v7, %v1413_v38 }
 0x1d8   : > { %1581 = vst [vmem:[%s3334_s3 + $0x170] sm:$0xff] %v1524_v30  ;;  %1582 = vst [vmem:[%s3334_s3 + $0x178] sm:$0xff] %v1525_v34  ;;  %v1531_v47 = vmax.f32 %v1474_v41, 0.0  ;;  %v1532_v48 = vmax.f32 %v1475_v42, 0.0 }
 0x1d9   : > { %1583 = vst [vmem:[%s3334_s3 + $0x180] sm:$0xff] %v1526_v39  ;;  %1584 = vst [vmem:[%s3334_s3 + $0x188] sm:$0xff] %v1527_v40  ;;  %v1533_v50 = vmax.f32 %v1476_v46, 0.0  ;;  %v1534_v7 = vmax.f32 %v1477_v49, 0.0 }
 0x1da   : > { %1585 = vst [vmem:[%s3334_s3 + $0x190] sm:$0xff] %v1528_v43  ;;  %1586 = vst [vmem:[%s3334_s3 + $0x198] sm:$0xff] %v1529_v44 }
 0x1db   : > { %1587 = vst [vmem:[%s3334_s3 + $0x1a0] sm:$0xff] %v1530_v45  ;;  %1588 = vst [vmem:[%s3334_s3 + $0x1a8] sm:$0xff] %v1531_v47 }
 0x1dc   : > { %1589 = vst [vmem:[%s3334_s3 + $0x1b0] sm:$0xff] %v1532_v48  ;;  %1590 = vst [vmem:[%s3334_s3 + $0x1b8] sm:$0xff] %v1533_v50 }
 0x1dd   : > { %1591 = vst [vmem:[%s3334_s3 + $0x1c0] sm:$0xff] %v1534_v7 }
 0x1de PF: > { %s13_s16 = sadd.s32 1, %s2089_s16   ;;  %s3335_s12 = smov %s2077_s13 }
 0x1df   : > { %p10_p12 = scmp.ge.s32.totalorder %s13_s16, 5   ;;  %s3336_s13 = smov %s2149_s20 }
 0x1e0   : > { %s3337_s14 = smov %s2085_s15  ;;  %s3338_s15 = smov %s3340_s17 }
 0x1e1   :  { %12 = sbr.rel (!%p10_p12) target bundleno = 3 (0x3), region = 122 }

// kernel: imagenet_matconvnet_alex_forward.6
= control target key start
LH: loop header
LB: loop body
LE: loop exit
PB: predicated region body
PF: predicated region fallthrough
CT: control target
= control target key end

     0   :  { %s1627_s12 = smov 0   ;;  %s1629_s13 = smov 0   ;;  %s1920_s0 = inlined_call_operand.vmem [shape: bf16[2,104,1536], index: 0, kind: input, shape index: {}]   ;;  %s1921_s1 = inlined_call_operand.vmem [shape: bf16[2,1536,128], index: 1, kind: input, shape index: {}]   ;;  %s1922_s2 = inlined_call_operand.vmem [shape: f32[2,1,128], index: 2, kind: input, shape index: {}]   ;;  %s1923_s3 = inlined_call_operand.vmem [shape: f32[2,104,128], index: 3, kind: output, shape index: {}]  }
   0x1   :  { %s1631_s14 = smov 0   ;;  %s1633_s15 = smov 0  }
   0x2   :  { %s1635_s16 = smov 0   ;;  %s1637_s17 = smov 0  }
   0x3   :  { %s1639_s18 = smov 0  }
   0x4 LB: > { %s28_s19 = sadd.s32 1, %s1596_s16  ;;  %s39_s20 = sadd.s32 1, %s1600_s17  ;;  %s1604_s18 = sphi %s1639_s18, %s13_s18   ;;  %s1600_s17 = sphi %s1637_s17, %s1929_s17   ;;  %s1596_s16 = sphi %s1635_s16, %s1928_s16   ;;  %s1592_s15 = sphi %s1633_s15, %s1927_s15   ;;  %s1588_s14 = sphi %s1631_s14, %s1926_s14   ;;  %s1584_s13 = sphi %s1629_s13, %s1925_s13   ;;  %s1580_s12 = sphi %s1627_s12, %s1924_s12  }
   0x5   : > { %p29_p0 = scmp.ge.s32.totalorder %s28_s19, 3  ;;  %p57_p1 = scmp.ne.s32.totalorder %s1584_s13, %s1580_s12 }
   0x6   : > { %p58_p2 = scmp.eq.s32.totalorder %s1604_s18, 0  ;;  %s50_s24 = sadd.s32 1, %s1584_s13 }
   0x7   : > { %s1931_s19 = smov (%p29_p0, %s28_s19), 0  ;;  %s1933_s20 = smov (!%p29_p0, %s39_s20), %s1600_s17 }
   0x8   : > { %p59_p3 = por %p58_p2, %p57_p1  ;;  %p41_p4 = scmp.ge.s32.totalorder %s1933_s20, 2 }
   0x9   : > { %s46_s21 = ssub.s32 %s1596_s16, %s1931_s19  ;;  %p1228_p6 = scmp.ge.s32.totalorder %s1604_s18, 6 }
   0xa   : > { %s1935_s20 = smov (%p41_p4, %s1933_s20), 0 }
   0xb   : > { %s43_s22 = ssub.s32 %s1600_s17, %s1935_s20  ;;  %171 = sbr.rel (%p1228_p6) target bundleno = 39 (0x27), region = 16 }
   0xc   : > { %s47_s23 = sor.u32 %s46_s21, %s43_s22 }
   0xd   : > { %p48_p5 = scmp.eq.s32.totalorder %s47_s23, 0 }
   0xf   : > { %s1678_s25 = scalar_select %p48_p5, %s1584_s13, %s50_s24  }
  0x12   : > { %174 = sbr.rel (!%p59_p3) target bundleno = 39 (0x27), region = 20  ;;  %s176_s26 = sand.u32 (%p59_p3), 1, %s1584_s13  }
  0x13   : > { %s1416_s27 = smul.u32 (%p59_p3), 208, %s176_s26  ;;  %s1229_s28 = sshll.u32 (%p59_p3), %s1596_s16, 2 }
  0x14   : > { %s1417_s29 = smul.u32 (%p59_p3), 156, %s1600_s17 }
  0x15   : > { %s1692_s8 = scalar_lea.vmem (%p59_p3), [#allocation2], %s1416_s27 }
  0x16   : > { %s184_s30 = sadd.s32 (%p59_p3), %s1417_s29, %s1229_s28 }
  0x17   : > { %s1230_s4 = sshll.u32 (%p59_p3), %s184_s30, 2 }
  0x18   : > { %s1687_s7 = scalar_lea.vmem (%p59_p3), %s1920_s0, %s1230_s4 }
  0x19   : > { %v199_v0 = vld [vmem:[%s1687_s7] sm:$0xff]  ;;  %v201_v1 = vld [vmem:[%s1687_s7 + $0x8] sm:$0xff]  ;;  %v203_v2 = vld [vmem:[%s1687_s7 + $0x30] sm:$0xff] }
  0x1a   : > { %200 = vst [vmem:[%s1692_s8] sm:$0xff] %v199_v0  ;;  %202 = vst [vmem:[%s1692_s8 + $0x8] sm:$0xff] %v201_v1  ;;  %v205_v3 = vld [vmem:[%s1687_s7 + $0x38] sm:$0xff]  ;;  %v207_v4 = vld [vmem:[%s1687_s7 + $0x60] sm:$0xff] }
  0x1b   : > { %204 = vst [vmem:[%s1692_s8 + $0x10] sm:$0xff] %v203_v2  ;;  %v209_v5 = vld [vmem:[%s1687_s7 + $0x68] sm:$0xff]  ;;  %206 = vst [vmem:[%s1692_s8 + $0x18] sm:$0xff] %v205_v3  ;;  %v211_v6 = vld [vmem:[%s1687_s7 + $0x90] sm:$0xff] }
  0x1c   : > { %208 = vst [vmem:[%s1692_s8 + $0x20] sm:$0xff] %v207_v4  ;;  %210 = vst [vmem:[%s1692_s8 + $0x28] sm:$0xff] %v209_v5  ;;  %v213_v7 = vld [vmem:[%s1687_s7 + $0x98] sm:$0xff]  ;;  %v215_v8 = vld [vmem:[%s1687_s7 + $0xc0] sm:$0xff] }
  0x1d   : > { %212 = vst [vmem:[%s1692_s8 + $0x30] sm:$0xff] %v211_v6  ;;  %214 = vst [vmem:[%s1692_s8 + $0x38] sm:$0xff] %v213_v7  ;;  %v217_v9 = vld [vmem:[%s1687_s7 + $0xc8] sm:$0xff]  ;;  %v219_v10 = vld [vmem:[%s1687_s7 + $0xf0] sm:$0xff] }
  0x1e   : > { %216 = vst [vmem:[%s1692_s8 + $0x40] sm:$0xff] %v215_v8  ;;  %v221_v11 = vld [vmem:[%s1687_s7 + $0xf8] sm:$0xff]  ;;  %218 = vst [vmem:[%s1692_s8 + $0x48] sm:$0xff] %v217_v9  ;;  %v223_v12 = vld [vmem:[%s1687_s7 + $0x120] sm:$0xff] }
  0x1f   : > { %220 = vst [vmem:[%s1692_s8 + $0x50] sm:$0xff] %v219_v10  ;;  %222 = vst [vmem:[%s1692_s8 + $0x58] sm:$0xff] %v221_v11  ;;  %v225_v13 = vld [vmem:[%s1687_s7 + $0x128] sm:$0xff]  ;;  %v227_v14 = vld [vmem:[%s1687_s7 + $0x150] sm:$0xff] }
  0x20   : > { %224 = vst [vmem:[%s1692_s8 + $0x60] sm:$0xff] %v223_v12  ;;  %226 = vst [vmem:[%s1692_s8 + $0x68] sm:$0xff] %v225_v13  ;;  %v229_v15 = vld [vmem:[%s1687_s7 + $0x158] sm:$0xff]  ;;  %v231_v16 = vld [vmem:[%s1687_s7 + $0x180] sm:$0xff] }
  0x21   : > { %228 = vst [vmem:[%s1692_s8 + $0x70] sm:$0xff] %v227_v14  ;;  %v233_v17 = vld [vmem:[%s1687_s7 + $0x188] sm:$0xff]  ;;  %230 = vst [vmem:[%s1692_s8 + $0x78] sm:$0xff] %v229_v15  ;;  %v235_v18 = vld [vmem:[%s1687_s7 + $0x1b0] sm:$0xff] }
  0x22   : > { %232 = vst [vmem:[%s1692_s8 + $0x80] sm:$0xff] %v231_v16  ;;  %234 = vst [vmem:[%s1692_s8 + $0x88] sm:$0xff] %v233_v17  ;;  %v237_v19 = vld [vmem:[%s1687_s7 + $0x1b8] sm:$0xff]  ;;  %v239_v20 = vld [vmem:[%s1687_s7 + $0x1e0] sm:$0xff] }
  0x23   : > { %236 = vst [vmem:[%s1692_s8 + $0x90] sm:$0xff] %v235_v18  ;;  %238 = vst [vmem:[%s1692_s8 + $0x98] sm:$0xff] %v237_v19  ;;  %v241_v21 = vld [vmem:[%s1687_s7 + $0x1e8] sm:$0xff]  ;;  %v243_v22 = vld [vmem:[%s1687_s7 + $0x210] sm:$0xff] }
  0x24   : > { %240 = vst [vmem:[%s1692_s8 + $0xa0] sm:$0xff] %v239_v20  ;;  %v245_v23 = vld [vmem:[%s1687_s7 + $0x218] sm:$0xff]  ;;  %242 = vst [vmem:[%s1692_s8 + $0xa8] sm:$0xff] %v241_v21  ;;  %v247_v24 = vld [vmem:[%s1687_s7 + $0x240] sm:$0xff] }
  0x25   : > { %244 = vst [vmem:[%s1692_s8 + $0xb0] sm:$0xff] %v243_v22  ;;  %246 = vst [vmem:[%s1692_s8 + $0xb8] sm:$0xff] %v245_v23  ;;  %v249_v25 = vld [vmem:[%s1687_s7 + $0x248] sm:$0xff] }
  0x26   : > { %248 = vst [vmem:[%s1692_s8 + $0xc0] sm:$0xff] %v247_v24  ;;  %250 = vst [vmem:[%s1692_s8 + $0xc8] sm:$0xff] %v249_v25 }
  0x27 PF: > { %p1231_p7 = scmp.ge.s32.totalorder %s1604_s18, 1  ;;  %p280_p8 = scmp.lt.s32.totalorder %s1604_s18, 7 }
  0x29   : > { %p281_p9 = pnand %p1231_p7, %p280_p8 }
  0x2a   : > { %s287_s9 = sand.u32 (!%p281_p9), 1, %s1580_s12   ;;  %s1232_s10 = sshll.u32 (!%p281_p9), %s1588_s14, 6 }
  0x2b   : > { %284 = sbr.rel (%p281_p9) target bundleno = 377 (0x179), region = 51  ;;  %p338_p10 = scmp.lt.s32.totalorder (!%p281_p9), %s1592_s15, 1 }
  0x2c   : > { %s1418_s11 = smul.u32 (!%p281_p9), 208, %s287_s9  ;;  %p340_p11 = scmp.lt.s32.totalorder (!%p281_p9), %s1232_s10, 191 }
  0x2d   : > { %p1235_p12 = scmp.ne.s32.totalorder (!%p281_p9), %s1588_s14, 0 }
  0x2e   : > { %s1767_s7 = scalar_lea.vmem (!%p281_p9), [#allocation2], %s1418_s11 }
  0x32   : > { %s1937_s15 = smov (!%p338_p10, %s1592_s15), 1  ;;  %s1939_s10 = smov (!%p340_p11, %s1232_s10), 191 }
  0x33   : > { %s1419_s21 = smul.u32 192, %s1937_s15  ;;  %s355_s24 = scalar_lea.vmem %s1922_s2, %s1937_s15  ;;  %v1606_v26 = vmov (!%p1235_p12), 0.0  }
  0x34   : > { %s1420_s26 = smul.u32 104, %s1937_s15 }
  0x35   : > { %s346_s27 = sadd.s32 %s1419_s21, %s1939_s10  ;;  %373 = sbr.rel (%p1235_p12) target bundleno = 62 (0x3e), region = 59 }
  0x36   : > { %s1233_s28 = sshll.u32 %s346_s27, 2  ;;  %s1760_s30 = scalar_lea.vmem %s1923_s3, %s1420_s26 }
  0x37   : > { %s1765_s6 = scalar_lea.vmem %s1921_s1, %s1233_s28  ;;  %374 = vst [vmem:[%s1760_s30] sm:$0xff] (!%p1235_p12), %v1606_v26  ;;  %375 = vst [vmem:[%s1760_s30 + $0x8] sm:$0xff] (!%p1235_p12), %v1606_v26 }
  0x38   : > { %376 = vst [vmem:[%s1760_s30 + $0x10] sm:$0xff] (!%p1235_p12), %v1606_v26  ;;  %377 = vst [vmem:[%s1760_s30 + $0x18] sm:$0xff] (!%p1235_p12), %v1606_v26 }
  0x39   : > { %378 = vst [vmem:[%s1760_s30 + $0x20] sm:$0xff] (!%p1235_p12), %v1606_v26  ;;  %379 = vst [vmem:[%s1760_s30 + $0x28] sm:$0xff] (!%p1235_p12), %v1606_v26 }
  0x3a   : > { %380 = vst [vmem:[%s1760_s30 + $0x30] sm:$0xff] (!%p1235_p12), %v1606_v26  ;;  %381 = vst [vmem:[%s1760_s30 + $0x38] sm:$0xff] (!%p1235_p12), %v1606_v26 }
  0x3b   : > { %382 = vst [vmem:[%s1760_s30 + $0x40] sm:$0xff] (!%p1235_p12), %v1606_v26  ;;  %383 = vst [vmem:[%s1760_s30 + $0x48] sm:$0xff] (!%p1235_p12), %v1606_v26 }
  0x3c   : > { %384 = vst [vmem:[%s1760_s30 + $0x50] sm:$0xff] %v1606_v26  ;;  %385 = vst [vmem:[%s1760_s30 + $0x58] sm:$0xff] %v1606_v26 }
  0x3d   : > { %386 = vst [vmem:[%s1760_s30 + $0x60] sm:$0xff] %v1606_v26 }
  0x3e PF: > { %v1478_v27 = vld [vmem:[%s1765_s6 + $0x40] sm:$0xff]   ;;  %v1482_v31 = vld [vmem:[%s1765_s6 + $0x48] sm:$0xff]   ;;  %v1486_v35 = vld [vmem:[%s1765_s6 + $0x50] sm:$0xff]   ;;  %p1296_p13 = scmp.ne.s32.totalorder %s1588_s14, 2 }
  0x3f   : > { %v1479_v28 = vld [vmem:[%s1765_s6 + $0xc0] sm:$0xff]   ;;  %1300 = vmatprep.subr.bf16.mxu0 %v1478_v27  ;;  %v1483_v32 = vld [vmem:[%s1765_s6 + $0xc8] sm:$0xff]   ;;  %v1487_v36 = vld [vmem:[%s1765_s6 + $0xd0] sm:$0xff]  }
  0x40   : > { %v1480_v29 = vld [vmem:[%s1765_s6] sm:$0xff]   ;;  %1358 = vmatprep.subr.bf16.mxu1 %v1479_v28  ;;  %v1484_v33 = vld [vmem:[%s1765_s6 + $0x8] sm:$0xff]   ;;  %v1488_v37 = vld [vmem:[%s1765_s6 + $0x10] sm:$0xff]  }
  0x41   : > { %v1481_v30 = vld [vmem:[%s1765_s6 + $0x80] sm:$0xff]   ;;  %1301 = vmatpush3.bf16.msra.mxu0 %v1480_v29  ;;  %v1485_v34 = vld [vmem:[%s1765_s6 + $0x88] sm:$0xff]   ;;  %v1489_v38 = vld [vmem:[%s1765_s6 + $0x90] sm:$0xff]  }
  0x42   : > { %1359 = vmatpush3.bf16.msra.mxu1 %v1481_v30  ;;  %1302 = vmatprep.subr.bf16.mxu0 %v1482_v31  ;;  %v1490_v39 = vld [vmem:[%s1765_s6 + $0x58] sm:$0xff]   ;;  %v1494_v43 = vld [vmem:[%s1765_s6 + $0x60] sm:$0xff]   ;;  %v1498_v47 = vld [vmem:[%s1765_s6 + $0x68] sm:$0xff]  }
  0x43   : > { %1360 = vmatprep.subr.bf16.mxu1 %v1483_v32  ;;  %v1491_v40 = vld [vmem:[%s1765_s6 + $0xd8] sm:$0xff]   ;;  %v1495_v44 = vld [vmem:[%s1765_s6 + $0xe0] sm:$0xff]   ;;  %v1499_v48 = vld [vmem:[%s1765_s6 + $0xe8] sm:$0xff]  }
  0x44   : > { %v1492_v41 = vld [vmem:[%s1765_s6 + $0x18] sm:$0xff]   ;;  %v1496_v45 = vld [vmem:[%s1765_s6 + $0x20] sm:$0xff]   ;;  %v1500_v49 = vld [vmem:[%s1765_s6 + $0x28] sm:$0xff]  }
  0x45   : > { %1303 = vmatpush3.bf16.msra.mxu0 %v1484_v33  ;;  %v1493_v42 = vld [vmem:[%s1765_s6 + $0x98] sm:$0xff]   ;;  %v1497_v46 = vld [vmem:[%s1765_s6 + $0xa0] sm:$0xff]   ;;  %v1501_v50 = vld [vmem:[%s1765_s6 + $0xa8] sm:$0xff]  }
  0x46   : > { %1361 = vmatpush3.bf16.msra.mxu1 %v1485_v34  ;;  %1304 = vmatprep.subr.bf16.mxu0 %v1486_v35  ;;  %v1502_v51 = vld [vmem:[%s1765_s6 + $0x70] sm:$0xff]   ;;  %v1506_v55 = vld [vmem:[%s1765_s6 + $0x78] sm:$0xff]   ;;  %v387_v34 = vld [vmem:[%s1760_s30] sm:$0xff] }
  0x47   : > { %1362 = vmatprep.subr.bf16.mxu1 %v1487_v36  ;;  %v1503_v52 = vld [vmem:[%s1765_s6 + $0xf0] sm:$0xff]   ;;  %v1507_v56 = vld [vmem:[%s1765_s6 + $0xf8] sm:$0xff]  }
  0x48   : > { %v1504_v53 = vld [vmem:[%s1765_s6 + $0x30] sm:$0xff]   ;;  %v1508_v57 = vld [vmem:[%s1765_s6 + $0x38] sm:$0xff]  }
  0x49   : > { %1305 = vmatpush3.bf16.msra.mxu0 %v1488_v37  ;;  %v1505_v54 = vld [vmem:[%s1765_s6 + $0xb0] sm:$0xff]   ;;  %v1509_v58 = vld [vmem:[%s1765_s6 + $0xb8] sm:$0xff]  }
  0x4a   : > { %1363 = vmatpush3.bf16.msra.mxu1 %v1489_v38  ;;  %1306 = vmatprep.subr.bf16.mxu0 %v1490_v39  ;;  %v1510_v59 = vld [vmem:[%s1767_s7] ss:$16 sps:$4 sm:$0xff]   ;;  %v1512_v60 = vld [vmem:[%s1767_s7 + $0x4] ss:$16 sps:$4 sm:$0xff]   ;;  %v1513_v61 = vld [vmem:[%s1767_s7 + $0x8] ss:$16 sps:$4 sm:$0xff]  }
  0x4b   : > { %1364 = vmatprep.subr.bf16.mxu1 %v1491_v40  ;;  %v1515_v62 = vld [vmem:[%s1767_s7 + $0xc] ss:$16 sps:$4 sm:$0xff]   ;;  %848 = vmatprep.mubr.bf16.mxu0 %v1512_v60  ;;  %v1516_v63 = vld [vmem:[%s1767_s7 + $0x24] ss:$16 sps:$4 sm:$0xff]   ;;  %v1520_v1 = vld [vmem:[%s1767_s7 + $0x20] ss:$16 sps:$4 sm:$0xff]  }
  0x4c   : > { %936 = vmatprep.mubr.bf16.mxu1 %v1515_v62  ;;  %v1518_v0 = vld [vmem:[%s1767_s7 + $0x2c] ss:$16 sps:$4 sm:$0xff]   ;;  %v1521_v2 = vld [vmem:[%s1767_s7 + $0x28] ss:$16 sps:$4 sm:$0xff]   ;;  %v1522_v3 = vld [vmem:[%s1767_s7 + $0x44] ss:$16 sps:$4 sm:$0xff]  }
  0x4d   : > { %1307 = vmatpush3.bf16.msra.mxu0 %v1492_v41  ;;  %v1524_v4 = vld [vmem:[%s1767_s7 + $0x4c] ss:$16 sps:$4 sm:$0xff]   ;;  %v1526_v5 = vld [vmem:[%s1767_s7 + $0x40] ss:$16 sps:$4 sm:$0xff]   ;;  %v1527_v6 = vld [vmem:[%s1767_s7 + $0x48] ss:$16 sps:$4 sm:$0xff]  }
  0x4e   : > { %1365 = vmatpush3.bf16.msra.mxu1 %v1493_v42  ;;  %1308 = vmatprep.subr.bf16.mxu0 %v1494_v43  ;;  %v1528_v7 = vld [vmem:[%s1767_s7 + $0x64] ss:$16 sps:$4 sm:$0xff]   ;;  %v1530_v8 = vld [vmem:[%s1767_s7 + $0x6c] ss:$16 sps:$4 sm:$0xff]   ;;  %v1532_v9 = vld [vmem:[%s1767_s7 + $0x60] ss:$16 sps:$4 sm:$0xff]  }
  0x4f   : > { %1366 = vmatprep.subr.bf16.mxu1 %v1495_v44  ;;  %v1533_v10 = vld [vmem:[%s1767_s7 + $0x68] ss:$16 sps:$4 sm:$0xff]   ;;  %v1534_v11 = vld [vmem:[%s1767_s7 + $0x84] ss:$16 sps:$4 sm:$0xff]   ;;  %v1536_v12 = vld [vmem:[%s1767_s7 + $0x8c] ss:$16 sps:$4 sm:$0xff]  }
  0x50   : > { %v1538_v13 = vld [vmem:[%s1767_s7 + $0x80] ss:$16 sps:$4 sm:$0xff]   ;;  %v1539_v14 = vld [vmem:[%s1767_s7 + $0x88] ss:$16 sps:$4 sm:$0xff]   ;;  %v1540_v15 = vld [vmem:[%s1767_s7 + $0xa4] ss:$16 sps:$4 sm:$0xff]  }
  0x51   : > { %1309 = vmatpush3.bf16.msra.mxu0 %v1496_v45  ;;  %v1542_v16 = vld [vmem:[%s1767_s7 + $0xac] ss:$16 sps:$4 sm:$0xff]   ;;  %v424_v17 = vld [vmem:[%s1767_s7 + $0xc0] sm:$0xff]  ;;  %v1545_v20 = vld [vmem:[%s1767_s7 + $0xa8] ss:$16 sps:$4 sm:$0xff]  }
  0x52   : > { %1367 = vmatpush3.bf16.msra.mxu1 %v1497_v46  ;;  %1310 = vmatprep.subr.bf16.mxu0 %v1498_v47  ;;  %v425_v18 = vld [vmem:[%s1767_s7 + $0xc8] sm:$0xff]  ;;  %v1544_v19 = vld [vmem:[%s1767_s7 + $0xa0] ss:$16 sps:$4 sm:$0xff]   ;;  %v1261_v21 = vcombine.high %v424_v17, %v424_v17  ;;  %v1260_v23 = vcombine.low %v424_v17, %v424_v17 }
  0x53   : > { %1368 = vmatprep.subr.bf16.mxu1 %v1499_v48  ;;  %v1263_v22 = vcombine.high %v425_v18, %v425_v18  ;;  %v1262_v24 = vcombine.low %v425_v18, %v425_v18  ;;  %v388_v39 = vld [vmem:[%s1760_s30 + $0x8] sm:$0xff] }
  0x55   : > { %1311 = vmatpush3.bf16.msra.mxu0 %v1500_v49 }
  0x56   : > { %1369 = vmatpush3.bf16.msra.mxu1 %v1501_v50  ;;  %1312 = vmatprep.subr.bf16.mxu0 %v1502_v51 }
  0x57   : > { %1370 = vmatprep.subr.bf16.mxu1 %v1503_v52  ;;  %v389_v52 = vld [vmem:[%s1760_s30 + $0x10] sm:$0xff] }
  0x59   : > { %1313 = vmatpush3.bf16.msra.mxu0 %v1504_v53 }
  0x5a   : > { %1371 = vmatpush3.bf16.msra.mxu1 %v1505_v54  ;;  %1314 = vmatprep.subr.bf16.mxu0 %v1506_v55 }
  0x5b   : > { %1372 = vmatprep.subr.bf16.mxu1 %v1507_v56 }
  0x5d   : > { %1315 = vmatpush3.bf16.msra.mxu0 %v1508_v57  ;;  %v390_v57 = vld [vmem:[%s1760_s30 + $0x18] sm:$0xff] }
  0x5e   : > { %1373 = vmatpush3.bf16.msra.mxu1 %v1509_v58 }
  0x60   : > { %849 = vmatmul.mubr.bf16.vlgmr.msra.gmra.mrb[0].mxu0 %v1510_v59 }
  0x61   : > { %937 = vmatmul.mubr.bf16.vlgmr.msra.gmra.mrb[0].mxu1 %v1513_v61  ;;  %856 = vmatprep.mubr.bf16.mxu0 %v1516_v63 }
  0x62   : > { %944 = vmatprep.mubr.bf16.mxu1 %v1518_v0 }
  0x68   : > { %857 = vmatmul.mubr.bf16.gmra.mrb[4].mxu0 %v1520_v1 }
  0x69   : > { %945 = vmatmul.mubr.bf16.gmra.mrb[4].mxu1 %v1521_v2  ;;  %864 = vmatprep.mubr.bf16.mxu0 %v1522_v3 }
  0x6a   : > { %952 = vmatprep.mubr.bf16.mxu1 %v1524_v4 }
  0x70   : > { %865 = vmatmul.mubr.bf16.gmra.mrb[8].mxu0 %v1526_v5 }
  0x71   : > { %953 = vmatmul.mubr.bf16.gmra.mrb[8].mxu1 %v1527_v6  ;;  %872 = vmatprep.mubr.bf16.mxu0 %v1528_v7  ;;  %v391_v6 = vld [vmem:[%s1760_s30 + $0x20] sm:$0xff] }
  0x72   : > { %960 = vmatprep.mubr.bf16.mxu1 %v1530_v8 }
  0x78   : > { %873 = vmatmul.mubr.bf16.gmra.mrb[12].mxu0 %v1532_v9 }
  0x79   : > { %961 = vmatmul.mubr.bf16.gmra.mrb[12].mxu1 %v1533_v10  ;;  %880 = vmatprep.mubr.bf16.mxu0 %v1534_v11  ;;  %v392_v11 = vld [vmem:[%s1760_s30 + $0x28] sm:$0xff] }
  0x7a   : > { %968 = vmatprep.mubr.bf16.mxu1 %v1536_v12 }
  0x80   : > { %881 = vmatmul.mubr.bf16.gmra.mrb[16].mxu0 %v1538_v13 }
  0x81   : > { %969 = vmatmul.mubr.bf16.gmra.mrb[16].mxu1 %v1539_v14  ;;  %888 = vmatprep.mubr.bf16.mxu0 %v1540_v15 }
  0x82   : > { %976 = vmatprep.mubr.bf16.mxu1 %v1542_v16 }
  0x88   : > { %889 = vmatmul.mubr.bf16.gmra.mrb[20].mxu0 %v1544_v19 }
  0x89   : > { %977 = vmatmul.mubr.bf16.gmra.mrb[20].mxu1 %v1545_v20  ;;  %896 = vmatprep.mubr.bf16.mxu0 %v1261_v21 }
  0x8a   : > { %984 = vmatprep.mubr.bf16.mxu1 %v1263_v22 }
  0x90   : > { %897 = vmatmul.mubr.bf16.gmra.mrb[24].mxu0 %v1260_v23 }
  0x91   : > { %985 = vmatmul.mubr.bf16.gmra.mrb[24].mxu1 %v1262_v24  ;;  %v393_v24 = vld [vmem:[%s1760_s30 + $0x30] sm:$0xff] }
 0x133   : > { %v1316_v25 = vpop.f32.mrb[0].mxu0 }
 0x134   : > { %v1374_v26 = vpop.f32.mrb[0].mxu1  ;;  %v1317_v27 = vpop.f32.mrb[1].mxu0 }
 0x135   : > { %v1318_v28 = vadd.f32 %v1317_v27, %v1316_v25  ;;  %v1375_v29 = vpop.f32.mrb[1].mxu1  ;;  %v1319_v30 = vpop.f32.mrb[2].mxu0 }
 0x136   : > { %v1376_v31 = vadd.f32 %v1375_v29, %v1374_v26  ;;  %v1377_v32 = vpop.f32.mrb[2].mxu1  ;;  %v1320_v33 = vpop.f32.mrb[3].mxu0  ;;  %v394_v29 = vld [vmem:[%s1760_s30 + $0x38] sm:$0xff] }
 0x137   : > { %v1321_v35 = vadd.f32 %v1320_v33, %v1319_v30  ;;  %v1378_v36 = vpop.f32.mrb[3].mxu1 }
 0x138   : > { %v939_v37 = vadd.f32 %v1376_v31, %v1318_v28  ;;  %v1379_v38 = vadd.f32 %v1378_v36, %v1377_v32 }
 0x13a   : > { %v992_v40 = vadd.f32 %v939_v37, %v387_v34  ;;  %v942_v41 = vadd.f32 %v1379_v38, %v1321_v35 }
 0x13b   : > { %v1322_v42 = vpop.f32.mrb[4].mxu0 }
 0x13c   : > { %1005 = vst [vmem:[%s1760_s30] sm:$0xff] %v992_v40  ;;  %v993_v43 = vadd.f32 %v942_v41, %v388_v39  ;;  %v1380_v44 = vpop.f32.mrb[4].mxu1  ;;  %v1323_v45 = vpop.f32.mrb[5].mxu0 }
 0x13d   : > { %v1324_v46 = vadd.f32 %v1323_v45, %v1322_v42  ;;  %v1381_v47 = vpop.f32.mrb[5].mxu1  ;;  %v1325_v48 = vpop.f32.mrb[6].mxu0  ;;  %v395_v42 = vld [vmem:[%s1760_s30 + $0x40] sm:$0xff] }
 0x13e   : > { %1006 = vst [vmem:[%s1760_s30 + $0x8] sm:$0xff] %v993_v43  ;;  %v1382_v49 = vadd.f32 %v1381_v47, %v1380_v44  ;;  %v1383_v50 = vpop.f32.mrb[6].mxu1  ;;  %v1326_v51 = vpop.f32.mrb[7].mxu0  ;;  %v396_v47 = vld [vmem:[%s1760_s30 + $0x48] sm:$0xff] }
 0x13f   : > { %v1327_v53 = vadd.f32 %v1326_v51, %v1325_v48  ;;  %v1384_v54 = vpop.f32.mrb[7].mxu1 }
 0x140   : > { %v947_v55 = vadd.f32 %v1382_v49, %v1324_v46  ;;  %v1385_v56 = vadd.f32 %v1384_v54, %v1383_v50 }
 0x142   : > { %v994_v58 = vadd.f32 %v947_v55, %v389_v52  ;;  %v950_v59 = vadd.f32 %v1385_v56, %v1327_v53 }
 0x143   : > { %v1328_v60 = vpop.f32.mrb[8].mxu0 }
 0x144   : > { %1007 = vst [vmem:[%s1760_s30 + $0x10] sm:$0xff] %v994_v58  ;;  %v995_v61 = vadd.f32 %v950_v59, %v390_v57  ;;  %v1386_v62 = vpop.f32.mrb[8].mxu1  ;;  %v1329_v63 = vpop.f32.mrb[9].mxu0 }
 0x145   : > { %v1330_v0 = vadd.f32 %v1329_v63, %v1328_v60  ;;  %v1387_v1 = vpop.f32.mrb[9].mxu1  ;;  %v1331_v2 = vpop.f32.mrb[10].mxu0  ;;  %v397_v60 = vld [vmem:[%s1760_s30 + $0x50] sm:$0xff] }
 0x146   : > { %1008 = vst [vmem:[%s1760_s30 + $0x18] sm:$0xff] %v995_v61  ;;  %v1388_v3 = vadd.f32 %v1387_v1, %v1386_v62  ;;  %v1389_v4 = vpop.f32.mrb[10].mxu1  ;;  %v1332_v5 = vpop.f32.mrb[11].mxu0  ;;  %v398_v1 = vld [vmem:[%s1760_s30 + $0x58] sm:$0xff] }
 0x147   : > { %v1333_v7 = vadd.f32 %v1332_v5, %v1331_v2  ;;  %v1390_v8 = vpop.f32.mrb[11].mxu1 }
 0x148   : > { %v955_v9 = vadd.f32 %v1388_v3, %v1330_v0  ;;  %v1391_v10 = vadd.f32 %v1390_v8, %v1389_v4 }
 0x14a   : > { %v996_v12 = vadd.f32 %v955_v9, %v391_v6  ;;  %v958_v13 = vadd.f32 %v1391_v10, %v1333_v7 }
 0x14b   : > { %v1334_v14 = vpop.f32.mrb[12].mxu0 }
 0x14c   : > { %1009 = vst [vmem:[%s1760_s30 + $0x20] sm:$0xff] %v996_v12  ;;  %v997_v15 = vadd.f32 %v958_v13, %v392_v11  ;;  %v1392_v16 = vpop.f32.mrb[12].mxu1  ;;  %v1335_v17 = vpop.f32.mrb[13].mxu0 }
 0x14d   : > { %v1336_v18 = vadd.f32 %v1335_v17, %v1334_v14  ;;  %v1393_v19 = vpop.f32.mrb[13].mxu1  ;;  %v1337_v20 = vpop.f32.mrb[14].mxu0  ;;  %v399_v14 = vld [vmem:[%s1760_s30 + $0x60] sm:$0xff] }
 0x14e   : > { %1010 = vst [vmem:[%s1760_s30 + $0x28] sm:$0xff] %v997_v15  ;;  %v1394_v21 = vadd.f32 %v1393_v19, %v1392_v16  ;;  %v1395_v22 = vpop.f32.mrb[14].mxu1  ;;  %v1338_v23 = vpop.f32.mrb[15].mxu0  ;;  %v1297_v19 = vld [vmem:[%s355_s24] ss:$0 sm:$0xff] (!%p1296_p13) }
 0x14f   : > { %v1339_v25 = vadd.f32 %v1338_v23, %v1337_v20  ;;  %v1396_v26 = vpop.f32.mrb[15].mxu1  ;;  %v1023_v20 = vld [vmem:[%s1760_s30 + $0x8] sm:$0xff] (!%p1296_p13)  ;;  %v1024_v23 = vld [vmem:[%s1760_s30 + $0x10] sm:$0xff] (!%p1296_p13) }
 0x150   : > { %v963_v27 = vadd.f32 %v1394_v21, %v1336_v18  ;;  %v1397_v28 = vadd.f32 %v1396_v26, %v1395_v22  ;;  %v1022_v18 = vld [vmem:[%s1760_s30] sm:$0xff] (!%p1296_p13)  ;;  %v1043_v22 = vadd.f32 (!%p1296_p13), %v1297_v19, %v1023_v20  ;;  %v1044_v26 = vadd.f32 (!%p1296_p13), %v1297_v19, %v1024_v23 }
 0x151   : > { %v1042_v21 = vadd.f32 (!%p1296_p13), %v1297_v19, %v1022_v18 }
 0x152   : > { %v998_v30 = vadd.f32 %v963_v27, %v393_v24  ;;  %v966_v31 = vadd.f32 %v1397_v28, %v1339_v25  ;;  %v1025_v24 = vld [vmem:[%s1760_s30 + $0x18] sm:$0xff] (!%p1296_p13) }
 0x153   : > { %v1340_v32 = vpop.f32.mrb[16].mxu0  ;;  %v1026_v25 = vld [vmem:[%s1760_s30 + $0x20] sm:$0xff] (!%p1296_p13)  ;;  %v1045_v27 = vadd.f32 (!%p1296_p13), %v1297_v19, %v1025_v24 }
 0x154   : > { %1011 = vst [vmem:[%s1760_s30 + $0x30] sm:$0xff] %v998_v30  ;;  %v999_v33 = vadd.f32 %v966_v31, %v394_v29  ;;  %v1398_v34 = vpop.f32.mrb[16].mxu1  ;;  %v1341_v35 = vpop.f32.mrb[17].mxu0  ;;  %v1046_v28 = vadd.f32 (!%p1296_p13), %v1297_v19, %v1026_v25 }
 0x155   : > { %v1342_v36 = vadd.f32 %v1341_v35, %v1340_v32  ;;  %v1399_v37 = vpop.f32.mrb[17].mxu1  ;;  %v1343_v38 = vpop.f32.mrb[18].mxu0  ;;  %v1027_v29 = vld [vmem:[%s1760_s30 + $0x28] sm:$0xff] (!%p1296_p13)  ;;  %v1055_v32 = vmax.f32 (!%p1296_p13), %v1042_v21, 0.0 }
 0x156   : > { %1012 = vst [vmem:[%s1760_s30 + $0x38] sm:$0xff] %v999_v33  ;;  %v1400_v39 = vadd.f32 %v1399_v37, %v1398_v34  ;;  %v1401_v40 = vpop.f32.mrb[18].mxu1  ;;  %v1344_v41 = vpop.f32.mrb[19].mxu0  ;;  %v1056_v33 = vmax.f32 (!%p1296_p13), %v1043_v22, 0.0  ;;  %v1047_v34 = vadd.f32 (!%p1296_p13), %v1297_v19, %v1027_v29 }
 0x157   : > { %v1345_v43 = vadd.f32 %v1344_v41, %v1343_v38  ;;  %v1402_v44 = vpop.f32.mrb[19].mxu1  ;;  %v1059_v41 = vmax.f32 (!%p1296_p13), %v1046_v28, 0.0  ;;  %1068 = vst [vmem:[%s1760_s30] sm:$0xff] (!%p1296_p13), %v1055_v32 }
 0x158   : > { %v971_v45 = vadd.f32 %v1400_v39, %v1342_v36  ;;  %v1403_v46 = vadd.f32 %v1402_v44, %v1401_v40  ;;  %v1057_v39 = vmax.f32 (!%p1296_p13), %v1044_v26, 0.0  ;;  %v1058_v40 = vmax.f32 (!%p1296_p13), %v1045_v27, 0.0  ;;  %1069 = vst [vmem:[%s1760_s30 + $0x8] sm:$0xff] (!%p1296_p13), %v1056_v33 }
 0x159   : > { %1072 = vst [vmem:[%s1760_s30 + $0x20] sm:$0xff] (!%p1296_p13), %v1059_v41 }
 0x15a   : > { %v1000_v48 = vadd.f32 %v971_v45, %v395_v42  ;;  %v974_v49 = vadd.f32 %v1403_v46, %v1345_v43  ;;  %v1060_v45 = vmax.f32 (!%p1296_p13), %v1047_v34, 0.0  ;;  %1070 = vst [vmem:[%s1760_s30 + $0x10] sm:$0xff] (!%p1296_p13), %v1057_v39  ;;  %1071 = vst [vmem:[%s1760_s30 + $0x18] sm:$0xff] (!%p1296_p13), %v1058_v40 }
 0x15b   : > { %v1346_v50 = vpop.f32.mrb[20].mxu0  ;;  %v1028_v30 = vld [vmem:[%s1760_s30 + $0x30] sm:$0xff] (!%p1296_p13) }
 0x15c   : > { %1013 = vst [vmem:[%s1760_s30 + $0x40] sm:$0xff] %v1000_v48  ;;  %v1001_v51 = vadd.f32 %v974_v49, %v396_v47  ;;  %v1404_v52 = vpop.f32.mrb[20].mxu1  ;;  %v1347_v53 = vpop.f32.mrb[21].mxu0  ;;  %v1048_v35 = vadd.f32 (!%p1296_p13), %v1297_v19, %v1028_v30  ;;  %1073 = vst [vmem:[%s1760_s30 + $0x28] sm:$0xff] (!%p1296_p13), %v1060_v45 }
 0x15d   : > { %v1348_v54 = vadd.f32 %v1347_v53, %v1346_v50  ;;  %v1405_v55 = vpop.f32.mrb[21].mxu1  ;;  %v1349_v56 = vpop.f32.mrb[22].mxu0  ;;  %v1029_v31 = vld [vmem:[%s1760_s30 + $0x38] sm:$0xff] (!%p1296_p13) }
 0x15e   : > { %1014 = vst [vmem:[%s1760_s30 + $0x48] sm:$0xff] %v1001_v51  ;;  %v1406_v57 = vadd.f32 %v1405_v55, %v1404_v52  ;;  %v1407_v58 = vpop.f32.mrb[22].mxu1  ;;  %v1350_v59 = vpop.f32.mrb[23].mxu0  ;;  %v1049_v42 = vadd.f32 (!%p1296_p13), %v1297_v19, %v1029_v31  ;;  %v1061_v46 = vmax.f32 (!%p1296_p13), %v1048_v35, 0.0 }
 0x15f   : > { %v1351_v61 = vadd.f32 %v1350_v59, %v1349_v56  ;;  %v1408_v62 = vpop.f32.mrb[23].mxu1 }
 0x160   : > { %v979_v63 = vadd.f32 %v1406_v57, %v1348_v54  ;;  %v1409_v0 = vadd.f32 %v1408_v62, %v1407_v58  ;;  %v1062_v49 = vmax.f32 (!%p1296_p13), %v1049_v42, 0.0  ;;  %1074 = vst [vmem:[%s1760_s30 + $0x30] sm:$0xff] (!%p1296_p13), %v1061_v46 }
 0x162   : > { %v1002_v2 = vadd.f32 %v979_v63, %v397_v60  ;;  %v982_v3 = vadd.f32 %v1409_v0, %v1351_v61  ;;  %1075 = vst [vmem:[%s1760_s30 + $0x38] sm:$0xff] (!%p1296_p13), %v1062_v49 }
 0x163   : > { %v1352_v4 = vpop.f32.mrb[24].mxu0  ;;  %v1030_v36 = vld [vmem:[%s1760_s30 + $0x40] sm:$0xff] (!%p1296_p13) }
 0x164   : > { %1015 = vst [vmem:[%s1760_s30 + $0x50] sm:$0xff] %v1002_v2  ;;  %v1003_v5 = vadd.f32 %v982_v3, %v398_v1  ;;  %v1410_v6 = vpop.f32.mrb[24].mxu1  ;;  %v1353_v7 = vpop.f32.mrb[25].mxu0  ;;  %v1050_v47 = vadd.f32 (!%p1296_p13), %v1297_v19, %v1030_v36 }
 0x165   : > { %v1354_v8 = vadd.f32 %v1353_v7, %v1352_v4  ;;  %v1411_v9 = vpop.f32.mrb[25].mxu1  ;;  %v1355_v10 = vpop.f32.mrb[26].mxu0  ;;  %v1031_v37 = vld [vmem:[%s1760_s30 + $0x48] sm:$0xff] (!%p1296_p13) }
 0x166   : > { %1016 = vst [vmem:[%s1760_s30 + $0x58] sm:$0xff] %v1003_v5  ;;  %v1412_v11 = vadd.f32 %v1411_v9, %v1410_v6  ;;  %v1413_v12 = vpop.f32.mrb[26].mxu1  ;;  %v1356_v13 = vpop.f32.mrb[27].mxu0  ;;  %1021 = sbr.rel (%p1296_p13) target bundleno = 377 (0x179), region = 63  ;;  %v1051_v48 = vadd.f32 (!%p1296_p13), %v1297_v19, %v1031_v37  ;;  %v1063_v53 = vmax.f32 (!%p1296_p13), %v1050_v47, 0.0 }
 0x167   : > { %v1414_v15 = vpop.f32.mrb[27].mxu1 }
 0x168   : > { %v987_v16 = vadd.f32 %v1412_v11, %v1354_v8  ;;  %v1064_v54 = vmax.f32 (!%p1296_p13), %v1051_v48, 0.0  ;;  %1076 = vst [vmem:[%s1760_s30 + $0x40] sm:$0xff] (!%p1296_p13), %v1063_v53 }
 0x16a   : > { %v1004_v17 = vadd.f32 %v987_v16, %v399_v14  ;;  %1077 = vst [vmem:[%s1760_s30 + $0x48] sm:$0xff] (!%p1296_p13), %v1064_v54 }
 0x16b   : > { %v1032_v38 = vld [vmem:[%s1760_s30 + $0x50] sm:$0xff] (!%p1296_p13) }
 0x16c   : > { %1017 = vst [vmem:[%s1760_s30 + $0x60] sm:$0xff] %v1004_v17  ;;  %v1052_v50 = vadd.f32 (!%p1296_p13), %v1297_v19, %v1032_v38 }
 0x16d   : > { %v1033_v43 = vld [vmem:[%s1760_s30 + $0x58] sm:$0xff] }
 0x16e   : > { %v1053_v51 = vadd.f32 %v1297_v19, %v1033_v43  ;;  %v1065_v55 = vmax.f32 %v1052_v50, 0.0 }
 0x170   : > { %v1066_v56 = vmax.f32 %v1053_v51, 0.0  ;;  %1078 = vst [vmem:[%s1760_s30 + $0x50] sm:$0xff] %v1065_v55 }
 0x172   : > { %1079 = vst [vmem:[%s1760_s30 + $0x58] sm:$0xff] %v1066_v56 }
 0x173   : > { %v1034_v44 = vld [vmem:[%s1760_s30 + $0x60] sm:$0xff] }
 0x174   : > { %v1054_v52 = vadd.f32 %v1297_v19, %v1034_v44 }
 0x176   : > { %v1067_v57 = vmax.f32 %v1054_v52, 0.0 }
 0x178   : > { %1080 = vst [vmem:[%s1760_s30 + $0x60] sm:$0xff] %v1067_v57 }
 0x179 PF: > { %s13_s18 = sadd.s32 1, %s1604_s18   ;;  %s1924_s12 = smov %s1584_s13 }
 0x17a   : > { %p10_p0 = scmp.ge.s32.totalorder %s13_s18, 8   ;;  %s1925_s13 = smov %s1678_s25 }
 0x17b   : > { %s1926_s14 = smov %s1596_s16  ;;  %s1927_s15 = smov %s1600_s17 }
 0x17c   : > { %s1928_s16 = smov %s1931_s19  ;;  %s1929_s17 = smov %s1935_s20 }
 0x17d   :  { %12 = sbr.rel (!%p10_p0) target bundleno = 4 (0x4), region = 104 }

// kernel: imagenet_matconvnet_alex_forward.7
= control target key start
LH: loop header
LB: loop body
LE: loop exit
PB: predicated region body
PF: predicated region fallthrough
CT: control target
= control target key end

     0   :  { %s1920_s0 = inlined_call_operand.vmem [shape: bf16[1,24,2560], index: 0, kind: input, shape index: {}]   ;;  %s1921_s1 = inlined_call_operand.vmem [shape: bf16[1,2560,384], index: 1, kind: input, shape index: {}]   ;;  %s1922_s2 = inlined_call_operand.vmem [shape: f32[1,1,384], index: 2, kind: input, shape index: {}]   ;;  %s1923_s3 = inlined_call_operand.vmem [shape: f32[1,24,384], index: 3, kind: output, shape index: {}]  }
   0x1   :  { %1925 = sst [smem:[#allocation6_spill]] %s1920_s0 }
   0x2   :  { %1926 = sst [smem:[#allocation7_spill]] %s1921_s1 }
   0x3   :  { %s1553_s12 = smov 0   ;;  %s1555_s13 = smov 0  }
   0x4   :  { %s1557_s14 = smov 0   ;;  %s1559_s15 = smov 0  }
   0x5   :  { %s1561_s16 = smov 0   ;;  %s1563_s17 = smov 0  }
   0x6   :  { %s1565_s18 = smov 0   ;;  %s1567_s19 = smov 0  }
   0x7   :  { %s1569_s20 = smov 0   ;;  %s1571_s21 = smov 0  }
   0x8   :  { %s1573_s22 = smov 0  }
   0x9 LB: > { %s1194_s23 = sadd.s32 4294967295, %s1530_s22   ;;  %s28_s24 = sadd.s32 1, %s1522_s20  ;;  %s1530_s22 = sphi %s1573_s22, %s13_s22   ;;  %s1526_s21 = sphi %s1571_s21, %s1943_s21   ;;  %s1522_s20 = sphi %s1569_s20, %s1942_s20   ;;  %s1518_s19 = sphi %s1567_s19, %s1941_s19   ;;  %s1514_s18 = sphi %s1565_s18, %s1940_s18   ;;  %s1510_s17 = sphi %s1563_s17, %s1939_s17   ;;  %s1506_s16 = sphi %s1561_s16, %s1938_s16   ;;  %s1502_s15 = sphi %s1559_s15, %s1937_s15   ;;  %s1498_s14 = sphi %s1557_s14, %s1936_s14   ;;  %s1494_s13 = sphi %s1555_s13, %s1935_s13   ;;  %s1490_s12 = sphi %s1553_s12, %s1934_s12  }
   0xa   : > { %p29_p0 = scmp.ge.s32.totalorder %s28_s24, 5  ;;  %s31_s25 = sadd.s32 1, %s1526_s21 }
   0xb   : > { %s50_s26 = sadd.s32 1, %s1510_s17  ;;  %p57_p1 = scmp.ne.s32.totalorder %s1510_s17, %s1506_s16 }
   0xc   : > { %s1945_s24 = smov (%p29_p0, %s28_s24), 0  ;;  %s1947_s25 = smov (!%p29_p0, %s31_s25), %s1526_s21 }
   0xd   : > { %s46_s27 = ssub.s32 %s1522_s20, %s1945_s24  ;;  %p58_p2 = scmp.eq.s32.totalorder %s1530_s22, 0 }
   0xe   : > { %p33_p3 = scmp.ge.s32.totalorder %s1947_s25, 3  ;;  %p48_p4 = scmp.eq.s32.totalorder %s46_s27, 0 }
   0xf   : > { %p1620_p5 = por %p58_p2, %p57_p1  ;;  %s80_s29 = sadd.s32 1, %s1502_s15 }
  0x10   : > { %s1949_s25 = smov (%p33_p3, %s1947_s25), 0  ;;  %p87_p6 = scmp.ne.s32.totalorder %s1502_s15, %s1498_s14 }
  0x11   : > { %1928 = sst [smem:[#allocation5_spill]] %s1949_s25  ;;  %s76_s4 = ssub.s32 %s1526_s21, %s1949_s25 }
  0x12   : > { %s1628_s30 = scalar_select %p48_p4, %s1510_s17, %s50_s26  }
  0x13   : > { %s77_s5 = sor.u32 %s76_s4, %s46_s27  ;;  %p136_p7 = scmp.eq.s32.totalorder %s76_s4, 0 }
  0x14   : > { %p78_p8 = scmp.eq.s32.totalorder %s77_s5, 0  ;;  %p1634_p9 = por %p87_p6, %p58_p2 }
  0x15   : > { %s138_s7 = sadd.s32 1, %s1494_s13  ;;  %p148_p10 = scmp.ne.s32.totalorder %s1494_s13, %s1490_s12 }
  0x16   : > { %s1642_s8 = scalar_select %p78_p8, %s1502_s15, %s80_s29  }
  0x17   : > { %s1645_s9 = scalar_select %p136_p7, %s1494_s13, %s138_s7  }
  0x18   : > { %p149_p11 = scmp.eq.s32.totalorder %s1194_s23, 14  ;;  %p1197_p13 = scmp.ge.s32.totalorder %s1530_s22, 15 }
  0x1a   : > { %p1647_p12 = por %p149_p11, %p148_p10  ;;  %171 = sbr.rel (%p1197_p13) target bundleno = 99 (0x63), region = 16 }
  0x21   : > { %174 = sbr.rel (!%p1620_p5) target bundleno = 47 (0x2f), region = 20  ;;  %s176_s11 = sand.u32 (%p1620_p5), 1, %s1510_s17  }
  0x22   : > { %s1252_s26 = sshll.u32 (%p1620_p5), %s1522_s20, 4  ;;  %s1309_s27 = smul.u32 (%p1620_p5), 48, %s176_s11 }
  0x23   : > { %s1931_s0 = sld [smem:[#allocation6_spill]] (%p1620_p5) }
  0x24   : > { %s178_s23 = scalar_lea.vmem (%p1620_p5), [#allocation2], %s1309_s27 }
  0x29   : > { %s186_s5 = scalar_lea.vmem %s1931_s0, %s1252_s26 }
  0x2a   : > { %v199_v0 = vld [vmem:[%s186_s5] sm:$0xff]  ;;  %v201_v1 = vld [vmem:[%s186_s5 + $0x8] sm:$0xff]  ;;  %v203_v2 = vld [vmem:[%s186_s5 + $0x50] sm:$0xff] }
  0x2b   : > { %v205_v3 = vld [vmem:[%s186_s5 + $0x58] sm:$0xff]  ;;  %v207_v4 = vld [vmem:[%s186_s5 + $0xa0] sm:$0xff]  ;;  %v209_v5 = vld [vmem:[%s186_s5 + $0xa8] sm:$0xff]  ;;  %200 = vst [vmem:[%s178_s23] sm:$0xff] %v199_v0 }
  0x2c   : > { %202 = vst [vmem:[%s178_s23 + $0x8] sm:$0xff] %v201_v1  ;;  %204 = vst [vmem:[%s178_s23 + $0x10] sm:$0xff] %v203_v2 }
  0x2d   : > { %206 = vst [vmem:[%s178_s23 + $0x18] sm:$0xff] %v205_v3  ;;  %208 = vst [vmem:[%s178_s23 + $0x20] sm:$0xff] %v207_v4 }
  0x2e   : > { %210 = vst [vmem:[%s178_s23 + $0x28] sm:$0xff] %v209_v5 }
  0x2f PF: > { %216 = sbr.rel (!%p1634_p9) target bundleno = 99 (0x63), region = 43  ;;  %s218_s28 = sand.u32 (%p1634_p9), 1, %s1502_s15  }
  0x30   : > { %s1310_s7 = smul.u32 (%p1634_p9), 192, %s1522_s20  ;;  %s1200_s11 = sshll.u32 (%p1634_p9), %s218_s28, 8 }
  0x31   : > { %s1932_s1 = sld [smem:[#allocation7_spill]] (%p1634_p9)  ;;  %s1672_s6 = scalar_lea.vmem (%p1634_p9), [#allocation3], %s1200_s11 }
  0x32   : > { %s223_s26 = sadd.s32 (%p1634_p9), %s1526_s21, %s1310_s7 }
  0x33   : > { %s1203_s29 = sshll.u32 (%p1634_p9), %s223_s26, 2 }
  0x37   : > { %s1667_s5 = scalar_lea.vmem %s1932_s1, %s1203_s29 }
  0x38   : > { %v243_v6 = vld [vmem:[%s1667_s5] sm:$0xf]  ;;  %v245_v7 = vld [vmem:[%s1667_s5 + $0xc] sm:$0xf]  ;;  %v247_v8 = vld [vmem:[%s1667_s5 + $0x18] sm:$0xf] }
  0x39   : > { %244 = vst [vmem:[%s1672_s6] sm:$0xf] %v243_v6  ;;  %246 = vst [vmem:[%s1672_s6 + $0x4] sm:$0xf] %v245_v7  ;;  %v249_v9 = vld [vmem:[%s1667_s5 + $0x24] sm:$0xf] }
  0x3a   : > { %248 = vst [vmem:[%s1672_s6 + $0x8] sm:$0xf] %v247_v8  ;;  %v251_v10 = vld [vmem:[%s1667_s5 + $0x30] sm:$0xf]  ;;  %v253_v11 = vld [vmem:[%s1667_s5 + $0x3c] sm:$0xf] }
  0x3b   : > { %250 = vst [vmem:[%s1672_s6 + $0xc] sm:$0xf] %v249_v9  ;;  %252 = vst [vmem:[%s1672_s6 + $0x10] sm:$0xf] %v251_v10  ;;  %v255_v12 = vld [vmem:[%s1667_s5 + $0x48] sm:$0xf] }
  0x3c   : > { %254 = vst [vmem:[%s1672_s6 + $0x14] sm:$0xf] %v253_v11  ;;  %v257_v13 = vld [vmem:[%s1667_s5 + $0x54] sm:$0xf]  ;;  %v259_v14 = vld [vmem:[%s1667_s5 + $0x60] sm:$0xf] }
  0x3d   : > { %256 = vst [vmem:[%s1672_s6 + $0x18] sm:$0xf] %v255_v12  ;;  %258 = vst [vmem:[%s1672_s6 + $0x1c] sm:$0xf] %v257_v13  ;;  %v261_v15 = vld [vmem:[%s1667_s5 + $0x6c] sm:$0xf] }
  0x3e   : > { %260 = vst [vmem:[%s1672_s6 + $0x20] sm:$0xf] %v259_v14  ;;  %v263_v16 = vld [vmem:[%s1667_s5 + $0x78] sm:$0xf]  ;;  %v265_v17 = vld [vmem:[%s1667_s5 + $0x84] sm:$0xf] }
  0x3f   : > { %262 = vst [vmem:[%s1672_s6 + $0x24] sm:$0xf] %v261_v15  ;;  %264 = vst [vmem:[%s1672_s6 + $0x28] sm:$0xf] %v263_v16  ;;  %v267_v18 = vld [vmem:[%s1667_s5 + $0x90] sm:$0xf] }
  0x40   : > { %266 = vst [vmem:[%s1672_s6 + $0x2c] sm:$0xf] %v265_v17  ;;  %v269_v19 = vld [vmem:[%s1667_s5 + $0x9c] sm:$0xf]  ;;  %v271_v20 = vld [vmem:[%s1667_s5 + $0xa8] sm:$0xf] }
  0x41   : > { %268 = vst [vmem:[%s1672_s6 + $0x30] sm:$0xf] %v267_v18  ;;  %270 = vst [vmem:[%s1672_s6 + $0x34] sm:$0xf] %v269_v19  ;;  %v273_v21 = vld [vmem:[%s1667_s5 + $0xb4] sm:$0xf] }
  0x42   : > { %272 = vst [vmem:[%s1672_s6 + $0x38] sm:$0xf] %v271_v20  ;;  %v275_v22 = vld [vmem:[%s1667_s5 + $0xc0] sm:$0xf]  ;;  %v277_v23 = vld [vmem:[%s1667_s5 + $0xcc] sm:$0xf] }
  0x43   : > { %274 = vst [vmem:[%s1672_s6 + $0x3c] sm:$0xf] %v273_v21  ;;  %276 = vst [vmem:[%s1672_s6 + $0x40] sm:$0xf] %v275_v22  ;;  %v279_v24 = vld [vmem:[%s1667_s5 + $0xd8] sm:$0xf] }
  0x44   : > { %278 = vst [vmem:[%s1672_s6 + $0x44] sm:$0xf] %v277_v23  ;;  %v281_v25 = vld [vmem:[%s1667_s5 + $0xe4] sm:$0xf]  ;;  %v283_v26 = vld [vmem:[%s1667_s5 + $0xf0] sm:$0xf] }
  0x45   : > { %280 = vst [vmem:[%s1672_s6 + $0x48] sm:$0xf] %v279_v24  ;;  %282 = vst [vmem:[%s1672_s6 + $0x4c] sm:$0xf] %v281_v25  ;;  %v285_v27 = vld [vmem:[%s1667_s5 + $0xfc] sm:$0xf] }
  0x46   : > { %284 = vst [vmem:[%s1672_s6 + $0x50] sm:$0xf] %v283_v26  ;;  %v287_v28 = vld [vmem:[%s1667_s5 + $0x108] sm:$0xf]  ;;  %v289_v29 = vld [vmem:[%s1667_s5 + $0x114] sm:$0xf] }
  0x47   : > { %286 = vst [vmem:[%s1672_s6 + $0x54] sm:$0xf] %v285_v27  ;;  %288 = vst [vmem:[%s1672_s6 + $0x58] sm:$0xf] %v287_v28  ;;  %v291_v30 = vld [vmem:[%s1667_s5 + $0x120] sm:$0xf] }
  0x48   : > { %290 = vst [vmem:[%s1672_s6 + $0x5c] sm:$0xf] %v289_v29  ;;  %v293_v31 = vld [vmem:[%s1667_s5 + $0x12c] sm:$0xf]  ;;  %v295_v32 = vld [vmem:[%s1667_s5 + $0x138] sm:$0xf] }
  0x49   : > { %292 = vst [vmem:[%s1672_s6 + $0x60] sm:$0xf] %v291_v30  ;;  %294 = vst [vmem:[%s1672_s6 + $0x64] sm:$0xf] %v293_v31  ;;  %v297_v33 = vld [vmem:[%s1667_s5 + $0x144] sm:$0xf] }
  0x4a   : > { %296 = vst [vmem:[%s1672_s6 + $0x68] sm:$0xf] %v295_v32  ;;  %v299_v34 = vld [vmem:[%s1667_s5 + $0x150] sm:$0xf]  ;;  %v301_v35 = vld [vmem:[%s1667_s5 + $0x15c] sm:$0xf] }
  0x4b   : > { %298 = vst [vmem:[%s1672_s6 + $0x6c] sm:$0xf] %v297_v33  ;;  %300 = vst [vmem:[%s1672_s6 + $0x70] sm:$0xf] %v299_v34  ;;  %v303_v36 = vld [vmem:[%s1667_s5 + $0x168] sm:$0xf] }
  0x4c   : > { %302 = vst [vmem:[%s1672_s6 + $0x74] sm:$0xf] %v301_v35  ;;  %v305_v37 = vld [vmem:[%s1667_s5 + $0x174] sm:$0xf]  ;;  %v307_v38 = vld [vmem:[%s1667_s5 + $0x180] sm:$0xf] }
  0x4d   : > { %304 = vst [vmem:[%s1672_s6 + $0x78] sm:$0xf] %v303_v36  ;;  %306 = vst [vmem:[%s1672_s6 + $0x7c] sm:$0xf] %v305_v37  ;;  %v309_v39 = vld [vmem:[%s1667_s5 + $0x18c] sm:$0xf] }
  0x4e   : > { %308 = vst [vmem:[%s1672_s6 + $0x80] sm:$0xf] %v307_v38  ;;  %v311_v40 = vld [vmem:[%s1667_s5 + $0x198] sm:$0xf]  ;;  %v313_v41 = vld [vmem:[%s1667_s5 + $0x1a4] sm:$0xf] }
  0x4f   : > { %310 = vst [vmem:[%s1672_s6 + $0x84] sm:$0xf] %v309_v39  ;;  %312 = vst [vmem:[%s1672_s6 + $0x88] sm:$0xf] %v311_v40  ;;  %v315_v42 = vld [vmem:[%s1667_s5 + $0x1b0] sm:$0xf] }
  0x50   : > { %314 = vst [vmem:[%s1672_s6 + $0x8c] sm:$0xf] %v313_v41  ;;  %v317_v43 = vld [vmem:[%s1667_s5 + $0x1bc] sm:$0xf]  ;;  %v319_v44 = vld [vmem:[%s1667_s5 + $0x1c8] sm:$0xf] }
  0x51   : > { %316 = vst [vmem:[%s1672_s6 + $0x90] sm:$0xf] %v315_v42  ;;  %318 = vst [vmem:[%s1672_s6 + $0x94] sm:$0xf] %v317_v43  ;;  %v321_v45 = vld [vmem:[%s1667_s5 + $0x1d4] sm:$0xf] }
  0x52   : > { %320 = vst [vmem:[%s1672_s6 + $0x98] sm:$0xf] %v319_v44  ;;  %v323_v46 = vld [vmem:[%s1667_s5 + $0x1e0] sm:$0xf]  ;;  %v325_v47 = vld [vmem:[%s1667_s5 + $0x1ec] sm:$0xf] }
  0x53   : > { %322 = vst [vmem:[%s1672_s6 + $0x9c] sm:$0xf] %v321_v45  ;;  %324 = vst [vmem:[%s1672_s6 + $0xa0] sm:$0xf] %v323_v46  ;;  %v327_v48 = vld [vmem:[%s1667_s5 + $0x1f8] sm:$0xf] }
  0x54   : > { %326 = vst [vmem:[%s1672_s6 + $0xa4] sm:$0xf] %v325_v47  ;;  %v329_v49 = vld [vmem:[%s1667_s5 + $0x204] sm:$0xf]  ;;  %v331_v50 = vld [vmem:[%s1667_s5 + $0x210] sm:$0xf] }
  0x55   : > { %328 = vst [vmem:[%s1672_s6 + $0xa8] sm:$0xf] %v327_v48  ;;  %330 = vst [vmem:[%s1672_s6 + $0xac] sm:$0xf] %v329_v49  ;;  %v333_v51 = vld [vmem:[%s1667_s5 + $0x21c] sm:$0xf] }
  0x56   : > { %332 = vst [vmem:[%s1672_s6 + $0xb0] sm:$0xf] %v331_v50  ;;  %v335_v52 = vld [vmem:[%s1667_s5 + $0x228] sm:$0xf]  ;;  %v337_v53 = vld [vmem:[%s1667_s5 + $0x234] sm:$0xf] }
  0x57   : > { %334 = vst [vmem:[%s1672_s6 + $0xb4] sm:$0xf] %v333_v51  ;;  %336 = vst [vmem:[%s1672_s6 + $0xb8] sm:$0xf] %v335_v52  ;;  %v339_v54 = vld [vmem:[%s1667_s5 + $0x240] sm:$0xf] }
  0x58   : > { %338 = vst [vmem:[%s1672_s6 + $0xbc] sm:$0xf] %v337_v53  ;;  %v341_v55 = vld [vmem:[%s1667_s5 + $0x24c] sm:$0xf]  ;;  %v343_v56 = vld [vmem:[%s1667_s5 + $0x258] sm:$0xf] }
  0x59   : > { %340 = vst [vmem:[%s1672_s6 + $0xc0] sm:$0xf] %v339_v54  ;;  %342 = vst [vmem:[%s1672_s6 + $0xc4] sm:$0xf] %v341_v55  ;;  %v345_v57 = vld [vmem:[%s1667_s5 + $0x264] sm:$0xf] }
  0x5a   : > { %344 = vst [vmem:[%s1672_s6 + $0xc8] sm:$0xf] %v343_v56  ;;  %v347_v58 = vld [vmem:[%s1667_s5 + $0x270] sm:$0xf]  ;;  %v349_v59 = vld [vmem:[%s1667_s5 + $0x27c] sm:$0xf] }
  0x5b   : > { %346 = vst [vmem:[%s1672_s6 + $0xcc] sm:$0xf] %v345_v57  ;;  %348 = vst [vmem:[%s1672_s6 + $0xd0] sm:$0xf] %v347_v58  ;;  %v351_v60 = vld [vmem:[%s1667_s5 + $0x288] sm:$0xf] }
  0x5c   : > { %350 = vst [vmem:[%s1672_s6 + $0xd4] sm:$0xf] %v349_v59  ;;  %v353_v61 = vld [vmem:[%s1667_s5 + $0x294] sm:$0xf]  ;;  %v355_v62 = vld [vmem:[%s1667_s5 + $0x2a0] sm:$0xf] }
  0x5d   : > { %352 = vst [vmem:[%s1672_s6 + $0xd8] sm:$0xf] %v351_v60  ;;  %354 = vst [vmem:[%s1672_s6 + $0xdc] sm:$0xf] %v353_v61  ;;  %v357_v63 = vld [vmem:[%s1667_s5 + $0x2ac] sm:$0xf] }
  0x5e   : > { %356 = vst [vmem:[%s1672_s6 + $0xe0] sm:$0xf] %v355_v62  ;;  %v359_v0 = vld [vmem:[%s1667_s5 + $0x2b8] sm:$0xf]  ;;  %v361_v1 = vld [vmem:[%s1667_s5 + $0x2c4] sm:$0xf] }
  0x5f   : > { %358 = vst [vmem:[%s1672_s6 + $0xe4] sm:$0xf] %v357_v63  ;;  %360 = vst [vmem:[%s1672_s6 + $0xe8] sm:$0xf] %v359_v0  ;;  %v363_v2 = vld [vmem:[%s1667_s5 + $0x2d0] sm:$0xf] }
  0x60   : > { %362 = vst [vmem:[%s1672_s6 + $0xec] sm:$0xf] %v361_v1  ;;  %v365_v3 = vld [vmem:[%s1667_s5 + $0x2dc] sm:$0xf]  ;;  %v367_v4 = vld [vmem:[%s1667_s5 + $0x2e8] sm:$0xf] }
  0x61   : > { %364 = vst [vmem:[%s1672_s6 + $0xf0] sm:$0xf] %v363_v2  ;;  %366 = vst [vmem:[%s1672_s6 + $0xf4] sm:$0xf] %v365_v3  ;;  %v369_v5 = vld [vmem:[%s1667_s5 + $0x2f4] sm:$0xf] }
  0x62   : > { %368 = vst [vmem:[%s1672_s6 + $0xf8] sm:$0xf] %v367_v4  ;;  %370 = vst [vmem:[%s1672_s6 + $0xfc] sm:$0xf] %v369_v5 }
  0x63 PF: > { %p1204_p0 = scmp.ge.s32.totalorder %s1530_s22, 1  ;;  %p530_p1 = scmp.lt.s32.totalorder %s1530_s22, 16 }
  0x65   : > { %p531_p2 = pnand %p1204_p0, %p530_p1 }
  0x66   : > { %s537_s23 = sand.u32 (!%p531_p2), 1, %s1506_s16   ;;  %s544_s28 = sand.u32 (!%p531_p2), 1, %s1498_s14  }
  0x67   : > { %534 = sbr.rel (%p531_p2) target bundleno = 401 (0x191), region = 88  ;;  %s1205_s11 = sshll.u32 (!%p531_p2), %s544_s28, 8 }
  0x68   : > { %s1311_s7 = smul.u32 (!%p531_p2), 48, %s537_s23  ;;  %s574_s26 = sand.u32 (!%p531_p2), 1, %s1490_s12  }
  0x69   : > { %s1312_s29 = smul.u32 (!%p531_p2), 24, %s574_s26  ;;  %p582_p3 = scmp.lt.s32.totalorder (!%p531_p2), %s1518_s19, 2 }
  0x6a   : > { %s1812_s0 = scalar_lea.vmem (!%p531_p2), [#allocation2], %s1311_s7  ;;  %s1814_s1 = scalar_lea.vmem (!%p531_p2), [#allocation3], %s1205_s11 }
  0x6b   : > { %s1816_s25 = scalar_lea.vmem (!%p531_p2), [#allocation4], %s1312_s29  ;;  %p1206_p4 = scmp.ne.s32.totalorder (!%p531_p2), %s1514_s18, 0 }
  0x6e   : > { %s1806_s4 = scalar_select %p582_p3, %s1518_s19, 2 }
  0x6f   : > { %592 = sbr.rel (%p1206_p4) target bundleno = 118 (0x76), region = 100  ;;  %v1532_v6 = vmov (!%p1206_p4), 0.0  }
  0x70   : > { %s586_s6 = scalar_lea.vmem %s1922_s2, %s1806_s4  ;;  %593 = vst [vmem:[%s1816_s25] sm:$0xff] (!%p1206_p4), %v1532_v6  ;;  %594 = vst [vmem:[%s1816_s25 + $0x8] sm:$0xff] (!%p1206_p4), %v1532_v6 }
  0x71   : > { %595 = vst [vmem:[%s1816_s25 + $0x10] sm:$0xff] (!%p1206_p4), %v1532_v6 }
  0x76 PF: > { %v1402_v7 = vld [vmem:[%s1814_s1 + $0x40] sm:$0xff]   ;;  %v1406_v11 = vld [vmem:[%s1814_s1 + $0x48] sm:$0xff]   ;;  %v1410_v15 = vld [vmem:[%s1814_s1 + $0x50] sm:$0xff]   ;;  %p1247_p5 = scmp.ne.s32.totalorder %s1514_s18, 4 }
  0x77   : > { %v1403_v8 = vld [vmem:[%s1814_s1 + $0xc0] sm:$0xff]   ;;  %1253 = vmatprep.subr.bf16.mxu0 %v1402_v7  ;;  %v1407_v12 = vld [vmem:[%s1814_s1 + $0xc8] sm:$0xff]   ;;  %v1411_v16 = vld [vmem:[%s1814_s1 + $0xd0] sm:$0xff]  }
  0x78   : > { %v1404_v9 = vld [vmem:[%s1814_s1] sm:$0xff]   ;;  %1281 = vmatprep.subr.bf16.mxu1 %v1403_v8  ;;  %v1408_v13 = vld [vmem:[%s1814_s1 + $0x8] sm:$0xff]   ;;  %v1412_v17 = vld [vmem:[%s1814_s1 + $0x10] sm:$0xff]  }
  0x79   : > { %v1405_v10 = vld [vmem:[%s1814_s1 + $0x80] sm:$0xff]   ;;  %1254 = vmatpush3.bf16.msra.mxu0 %v1404_v9  ;;  %v1409_v14 = vld [vmem:[%s1814_s1 + $0x88] sm:$0xff]   ;;  %v1413_v18 = vld [vmem:[%s1814_s1 + $0x90] sm:$0xff]  }
  0x7a   : > { %1282 = vmatpush3.bf16.msra.mxu1 %v1405_v10  ;;  %1255 = vmatprep.subr.bf16.mxu0 %v1406_v11  ;;  %v1414_v19 = vld [vmem:[%s1814_s1 + $0x58] sm:$0xff]   ;;  %v1418_v23 = vld [vmem:[%s1814_s1 + $0x60] sm:$0xff]   ;;  %v1422_v27 = vld [vmem:[%s1814_s1 + $0x68] sm:$0xff]  }
  0x7b   : > { %1283 = vmatprep.subr.bf16.mxu1 %v1407_v12  ;;  %v1415_v20 = vld [vmem:[%s1814_s1 + $0xd8] sm:$0xff]   ;;  %v1419_v24 = vld [vmem:[%s1814_s1 + $0xe0] sm:$0xff]   ;;  %v1423_v28 = vld [vmem:[%s1814_s1 + $0xe8] sm:$0xff]  }
  0x7c   : > { %v1416_v21 = vld [vmem:[%s1814_s1 + $0x18] sm:$0xff]   ;;  %v1420_v25 = vld [vmem:[%s1814_s1 + $0x20] sm:$0xff]   ;;  %v1424_v29 = vld [vmem:[%s1814_s1 + $0x28] sm:$0xff]  }
  0x7d   : > { %1256 = vmatpush3.bf16.msra.mxu0 %v1408_v13  ;;  %v1417_v22 = vld [vmem:[%s1814_s1 + $0x98] sm:$0xff]   ;;  %v1421_v26 = vld [vmem:[%s1814_s1 + $0xa0] sm:$0xff]   ;;  %v1425_v30 = vld [vmem:[%s1814_s1 + $0xa8] sm:$0xff]  }
  0x7e   : > { %1284 = vmatpush3.bf16.msra.mxu1 %v1409_v14  ;;  %1257 = vmatprep.subr.bf16.mxu0 %v1410_v15  ;;  %v1426_v31 = vld [vmem:[%s1814_s1 + $0x70] sm:$0xff]   ;;  %v1430_v35 = vld [vmem:[%s1814_s1 + $0x78] sm:$0xff]   ;;  %v597_v63 = vld [vmem:[%s1816_s25 + $0x8] sm:$0xff] }
  0x7f   : > { %1285 = vmatprep.subr.bf16.mxu1 %v1411_v16  ;;  %v1427_v32 = vld [vmem:[%s1814_s1 + $0xf0] sm:$0xff]   ;;  %v1431_v36 = vld [vmem:[%s1814_s1 + $0xf8] sm:$0xff]  }
  0x80   : > { %v1428_v33 = vld [vmem:[%s1814_s1 + $0x30] sm:$0xff]   ;;  %v1432_v37 = vld [vmem:[%s1814_s1 + $0x38] sm:$0xff]  }
  0x81   : > { %1258 = vmatpush3.bf16.msra.mxu0 %v1412_v17  ;;  %v1429_v34 = vld [vmem:[%s1814_s1 + $0xb0] sm:$0xff]   ;;  %v1433_v38 = vld [vmem:[%s1814_s1 + $0xb8] sm:$0xff]   ;;  %v1248_v17 = vld [vmem:[%s586_s6] ss:$0 sm:$0xff] (!%p1247_p5) }
  0x82   : > { %1286 = vmatpush3.bf16.msra.mxu1 %v1413_v18  ;;  %1259 = vmatprep.subr.bf16.mxu0 %v1414_v19  ;;  %v1434_v39 = vld [vmem:[%s1812_s0] ss:$16 sps:$4 sm:$0xff]   ;;  %v1436_v40 = vld [vmem:[%s1812_s0 + $0x4] ss:$16 sps:$4 sm:$0xff]   ;;  %v1437_v41 = vld [vmem:[%s1812_s0 + $0x8] ss:$16 sps:$4 sm:$0xff]  }
  0x83   : > { %1287 = vmatprep.subr.bf16.mxu1 %v1415_v20  ;;  %v1439_v42 = vld [vmem:[%s1812_s0 + $0xc] ss:$16 sps:$4 sm:$0xff]   ;;  %v603_v43 = vld [vmem:[%s1812_s0 + $0x20] sm:$0xff]  ;;  %927 = vmatprep.mubr.bf16.mxu0 %v1436_v40 }
  0x84   : > { %v1212_v44 = vcombine.high %v603_v43, %v603_v43  ;;  %v604_v45 = vld [vmem:[%s1812_s0 + $0x28] sm:$0xff]  ;;  %975 = vmatprep.mubr.bf16.mxu1 %v1439_v42  ;;  %v1211_v47 = vcombine.low %v603_v43, %v603_v43  ;;  %v598_v12 = vld [vmem:[%s1816_s25 + $0x10] sm:$0xff] }
  0x85   : > { %1260 = vmatpush3.bf16.msra.mxu0 %v1416_v21  ;;  %v1214_v46 = vcombine.high %v604_v45, %v604_v45  ;;  %v1213_v48 = vcombine.low %v604_v45, %v604_v45  ;;  %v596_v58 = vld [vmem:[%s1816_s25] sm:$0xff] }
  0x86   : > { %1288 = vmatpush3.bf16.msra.mxu1 %v1417_v22  ;;  %1261 = vmatprep.subr.bf16.mxu0 %v1418_v23 }
  0x87   : > { %1289 = vmatprep.subr.bf16.mxu1 %v1419_v24 }
  0x89   : > { %1262 = vmatpush3.bf16.msra.mxu0 %v1420_v25 }
  0x8a   : > { %1290 = vmatpush3.bf16.msra.mxu1 %v1421_v26  ;;  %1263 = vmatprep.subr.bf16.mxu0 %v1422_v27 }
  0x8b   : > { %1291 = vmatprep.subr.bf16.mxu1 %v1423_v28 }
  0x8d   : > { %1264 = vmatpush3.bf16.msra.mxu0 %v1424_v29 }
  0x8e   : > { %1292 = vmatpush3.bf16.msra.mxu1 %v1425_v30  ;;  %1265 = vmatprep.subr.bf16.mxu0 %v1426_v31 }
  0x8f   : > { %1293 = vmatprep.subr.bf16.mxu1 %v1427_v32 }
  0x91   : > { %1266 = vmatpush3.bf16.msra.mxu0 %v1428_v33 }
  0x92   : > { %1294 = vmatpush3.bf16.msra.mxu1 %v1429_v34  ;;  %1267 = vmatprep.subr.bf16.mxu0 %v1430_v35 }
  0x93   : > { %1295 = vmatprep.subr.bf16.mxu1 %v1431_v36 }
  0x95   : > { %1268 = vmatpush3.bf16.msra.mxu0 %v1432_v37 }
  0x96   : > { %1296 = vmatpush3.bf16.msra.mxu1 %v1433_v38 }
  0x98   : > { %928 = vmatmul.mubr.bf16.vlgmr.msra.gmra.mrb[0].mxu0 %v1434_v39 }
  0x99   : > { %976 = vmatmul.mubr.bf16.vlgmr.msra.gmra.mrb[0].mxu1 %v1437_v41  ;;  %935 = vmatprep.mubr.bf16.mxu0 %v1212_v44 }
  0x9a   : > { %983 = vmatprep.mubr.bf16.mxu1 %v1214_v46 }
  0xa0   : > { %936 = vmatmul.mubr.bf16.gmra.mrb[4].mxu0 %v1211_v47 }
  0xa1   : > { %984 = vmatmul.mubr.bf16.gmra.mrb[4].mxu1 %v1213_v48 }
 0x16b   : > { %v1269_v49 = vpop.f32.mrb[0].mxu0 }
 0x16c   : > { %v1297_v50 = vpop.f32.mrb[0].mxu1  ;;  %v1270_v51 = vpop.f32.mrb[1].mxu0 }
 0x16d   : > { %v1271_v52 = vadd.f32 %v1270_v51, %v1269_v49  ;;  %v1298_v53 = vpop.f32.mrb[1].mxu1  ;;  %v1272_v54 = vpop.f32.mrb[2].mxu0 }
 0x16e   : > { %v1299_v55 = vadd.f32 %v1298_v53, %v1297_v50  ;;  %v1300_v56 = vpop.f32.mrb[2].mxu1  ;;  %v1273_v57 = vpop.f32.mrb[3].mxu0 }
 0x16f   : > { %v1274_v59 = vadd.f32 %v1273_v57, %v1272_v54  ;;  %v1301_v60 = vpop.f32.mrb[3].mxu1 }
 0x170   : > { %v978_v61 = vadd.f32 %v1299_v55, %v1271_v52  ;;  %v1302_v62 = vadd.f32 %v1301_v60, %v1300_v56 }
 0x172   : > { %v991_v0 = vadd.f32 %v978_v61, %v596_v58  ;;  %v981_v1 = vadd.f32 %v1302_v62, %v1274_v59 }
 0x173   : > { %v1275_v2 = vpop.f32.mrb[4].mxu0 }
 0x174   : > { %994 = vst [vmem:[%s1816_s25] sm:$0xff] %v991_v0  ;;  %v992_v3 = vadd.f32 %v981_v1, %v597_v63  ;;  %v1303_v4 = vpop.f32.mrb[4].mxu1  ;;  %v1276_v5 = vpop.f32.mrb[5].mxu0 }
 0x175   : > { %v1277_v6 = vadd.f32 %v1276_v5, %v1275_v2  ;;  %v1304_v7 = vpop.f32.mrb[5].mxu1  ;;  %v1278_v8 = vpop.f32.mrb[6].mxu0 }
 0x176   : > { %995 = vst [vmem:[%s1816_s25 + $0x8] sm:$0xff] %v992_v3  ;;  %v1305_v9 = vadd.f32 %v1304_v7, %v1303_v4  ;;  %v1306_v10 = vpop.f32.mrb[6].mxu1  ;;  %v1279_v11 = vpop.f32.mrb[7].mxu0  ;;  %1000 = sbr.rel (%p1247_p5) target bundleno = 393 (0x189), region = 104 }
 0x177   : > { %v1307_v13 = vpop.f32.mrb[7].mxu1 }
 0x178   : > { %v986_v14 = vadd.f32 %v1305_v9, %v1277_v6 }
 0x17a   : > { %v993_v15 = vadd.f32 %v986_v14, %v598_v12 }
 0x17b   : > { %v1001_v16 = vld [vmem:[%s1816_s25] sm:$0xff] (!%p1247_p5) }
 0x17c   : > { %996 = vst [vmem:[%s1816_s25 + $0x10] sm:$0xff] %v993_v15  ;;  %v1011_v19 = vadd.f32 (!%p1247_p5), %v1248_v17, %v1001_v16 }
 0x17d   : > { %v1002_v18 = vld [vmem:[%s1816_s25 + $0x8] sm:$0xff] }
 0x17e   : > { %v1012_v20 = vadd.f32 %v1248_v17, %v1002_v18  ;;  %v1014_v23 = vmax.f32 %v1011_v19, 0.0 }
 0x180   : > { %v1015_v24 = vmax.f32 %v1012_v20, 0.0  ;;  %1017 = vst [vmem:[%s1816_s25] sm:$0xff] %v1014_v23 }
 0x182   : > { %1018 = vst [vmem:[%s1816_s25 + $0x8] sm:$0xff] %v1015_v24 }
 0x183   : > { %v1003_v21 = vld [vmem:[%s1816_s25 + $0x10] sm:$0xff] }
 0x184   : > { %v1013_v22 = vadd.f32 %v1248_v17, %v1003_v21 }
 0x186   : > { %v1016_v25 = vmax.f32 %v1013_v22, 0.0 }
 0x188   : > { %1019 = vst [vmem:[%s1816_s25 + $0x10] sm:$0xff] %v1016_v25 }
 0x189 PF: > { %1026 = sbr.rel (!%p1647_p12) target bundleno = 401 (0x191), region = 108  ;;  %s1249_s12 = sshll.u32 (%p1647_p12), %s1518_s19, 3  ;;  %v1065_v26 = vld [vmem:[%s1816_s25] sm:$0xff] (%p1647_p12)  ;;  %v1067_v27 = vld [vmem:[%s1816_s25 + $0x8] sm:$0xff] (%p1647_p12) }
 0x18a   : > { %s1033_s18 = scalar_lea.vmem (%p1647_p12), %s1923_s3, %s1249_s12 }
 0x18b   : > { %1066 = vst [vmem:[%s1033_s18] sm:$0xff] (%p1647_p12), %v1065_v26  ;;  %1068 = vst [vmem:[%s1033_s18 + $0x18] sm:$0xff] (%p1647_p12), %v1067_v27 }
 0x18f   : > { %v1069_v28 = vld [vmem:[%s1816_s25 + $0x10] sm:$0xff] (%p1647_p12) }
 0x190   : > { %1070 = vst [vmem:[%s1033_s18 + $0x30] sm:$0xff] %v1069_v28 }
 0x191 PF: > { %s13_s22 = sadd.s32 1, %s1530_s22   ;;  %s1933_s25 = sld [smem:[#allocation5_spill]] }
 0x192   : > { %p10_p6 = scmp.ge.s32.totalorder %s13_s22, 17   ;;  %s1934_s12 = smov %s1494_s13 }
 0x193   : > { %s1935_s13 = smov %s1645_s9  ;;  %s1936_s14 = smov %s1502_s15 }
 0x194   : > { %s1937_s15 = smov %s1642_s8  ;;  %s1938_s16 = smov %s1510_s17 }
 0x195   : > { %s1939_s17 = smov %s1628_s30  ;;  %s1940_s18 = smov %s1522_s20 }
 0x196   : > { %s1941_s19 = smov %s1526_s21  ;;  %s1942_s20 = smov %s1945_s24 }
 0x197   : > { %s1943_s21 = smov %s1933_s25  ;;  %12 = sbr.rel (!%p10_p6) target bundleno = 9 (0x9), region = 188 }

// kernel: imagenet_matconvnet_alex_forward.8
= control target key start
LH: loop header
LB: loop body
LE: loop exit
PB: predicated region body
PF: predicated region fallthrough
CT: control target
= control target key end

     0   :  { %s1991_s0 = inlined_call_operand.vmem [shape: bf16[2,24,2048], index: 0, kind: input, shape index: {}]   ;;  %s1992_s1 = inlined_call_operand.vmem [shape: bf16[2,2048,256], index: 1, kind: input, shape index: {}]   ;;  %s1993_s2 = inlined_call_operand.vmem [shape: f32[2,1,256], index: 2, kind: input, shape index: {}]   ;;  %s1994_s3 = inlined_call_operand.vmem [shape: f32[2,24,256], index: 3, kind: output, shape index: {}]  }
   0x1   :  { %1998 = sst [smem:[#allocation9_spill]] %s1991_s0 }
   0x2   :  { %1999 = sst [smem:[#allocation10_spill]] %s1992_s1 }
   0x3   :  { %2000 = sst [smem:[#allocation11_spill]] %s1993_s2 }
   0x4   :  { %2001 = sst [smem:[#allocation12_spill]] %s1994_s3 }
   0x5   :  { %s1591_s12 = smov 0   ;;  %s1593_s13 = smov 0  }
   0x6   :  { %s1595_s14 = smov 0   ;;  %s1597_s15 = smov 0  }
   0x7   :  { %s1599_s16 = smov 0   ;;  %s1601_s17 = smov 0  }
   0x8   :  { %s1603_s18 = smov 0   ;;  %s1605_s19 = smov 0  }
   0x9   :  { %s1607_s20 = smov 0   ;;  %s1609_s21 = smov 0  }
   0xa   :  { %s1611_s22 = smov 0   ;;  %s1613_s23 = smov 0  }
   0xb   :  { %s1615_s24 = smov 0  }
   0xc LB: > { %2002 = sst [smem:[#allocation5_spill]] %s1544_s18  ;;  %s28_s25 = sadd.s32 1, %s1556_s21  ;;  %s1568_s24 = sphi %s1615_s24, %s13_s24   ;;  %s1564_s23 = sphi %s1613_s23, %s2031_s23   ;;  %s1560_s22 = sphi %s1611_s22, %s2030_s22   ;;  %s1556_s21 = sphi %s1609_s21, %s2029_s21   ;;  %s1552_s20 = sphi %s1607_s20, %s2028_s20   ;;  %s1548_s19 = sphi %s1605_s19, %s2027_s19   ;;  %s1544_s18 = sphi %s1603_s18, %s2026_s18   ;;  %s1540_s17 = sphi %s1601_s17, %s2025_s17   ;;  %s1536_s16 = sphi %s1599_s16, %s2024_s16   ;;  %s1532_s15 = sphi %s1597_s15, %s2023_s15   ;;  %s1528_s14 = sphi %s1595_s14, %s2022_s14   ;;  %s1524_s13 = sphi %s1593_s13, %s2021_s13   ;;  %s1520_s12 = sphi %s1591_s12, %s2020_s12  }
   0xd   : > { %p29_p0 = scmp.ge.s32.totalorder %s28_s25, 4  ;;  %s31_s26 = sadd.s32 1, %s1560_s22 }
   0xe   : > { %s1197_s27 = sadd.s32 4294967295, %s1568_s24   ;;  %s39_s28 = sadd.s32 1, %s1564_s23 }
   0xf   : > { %s2033_s25 = smov (%p29_p0, %s28_s25), 0  ;;  %s2035_s26 = smov (!%p29_p0, %s31_s26), %s1560_s22 }
  0x10   : > { %2003 = sst [smem:[#allocation6_spill]] %s2033_s25  ;;  %p57_p1 = scmp.ne.s32.totalorder %s1540_s17, %s1536_s16 }
  0x11   : > { %p33_p2 = scmp.ge.s32.totalorder %s2035_s26, 2  ;;  %p58_p3 = scmp.eq.s32.totalorder %s1568_s24, 0 }
  0x12   : > { %s50_s29 = sadd.s32 1, %s1540_s17  ;;  %p87_p4 = scmp.ne.s32.totalorder %s1532_s15, %s1528_s14 }
  0x13   : > { %s2037_s26 = smov (%p33_p2, %s2035_s26), 0  ;;  %s2039_s28 = smov (!%p33_p2, %s39_s28), %s1564_s23 }
  0x14   : > { %2004 = sst [smem:[#allocation7_spill]] %s2037_s26  ;;  %s46_s30 = ssub.s32 %s1556_s21, %s2033_s25 }
  0x15   : > { %p1674_p5 = por %p58_p3, %p57_p1  ;;  %p41_p6 = scmp.ge.s32.totalorder %s2039_s28, 2 }
  0x16   : > { %p1678_p7 = por %p87_p4, %p58_p3  ;;  %s76_s6 = ssub.s32 %s1560_s22, %s2037_s26 }
  0x17   : > { %s80_s7 = sadd.s32 1, %s1532_s15  ;;  %s2041_s28 = smov (%p41_p6, %s2039_s28), 0 }
  0x18   : > { %2007 = sst [smem:[#allocation8_spill]] %s2041_s28  ;;  %s138_s8 = sadd.s32 1, %s1524_s13 }
  0x19   : > { %p148_p8 = scmp.ne.s32.totalorder %s1524_s13, %s1520_s12  ;;  %s43_s9 = ssub.s32 %s1564_s23, %s2041_s28 }
  0x1a   : > { %p149_p9 = scmp.eq.s32.totalorder %s1197_s27, 15  ;;  %s47_s10 = sor.u32 %s46_s30, %s43_s9 }
  0x1b   : > { %s135_s11 = sor.u32 %s76_s6, %s43_s9  ;;  %p48_p10 = scmp.eq.s32.totalorder %s47_s10, 0 }
  0x1c   : > { %s77_s25 = sor.u32 %s76_s6, %s47_s10  ;;  %p136_p12 = scmp.eq.s32.totalorder %s135_s11, 0 }
  0x1d   : > { %p78_p11 = scmp.eq.s32.totalorder %s77_s25, 0  ;;  %p1701_p13 = por %p149_p9, %p148_p8 }
  0x1e   : > { %s1693_s3 = scalar_select %p48_p10, %s1540_s17, %s50_s29  }
  0x1f   : > { %s1696_s18 = scalar_select %p78_p11, %s1532_s15, %s80_s7  }
  0x20   : > { %s1699_s2 = scalar_select %p136_p12, %s1524_s13, %s138_s8  }
  0x21   : > { %p1200_p0 = scmp.ge.s32.totalorder %s1568_s24, 16 }
  0x23   : > { %171 = sbr.rel (%p1200_p0) target bundleno = 108 (0x6c), region = 16 }
  0x2a   : > { %174 = sbr.rel (!%p1674_p5) target bundleno = 55 (0x37), region = 20  ;;  %s176_s25 = sand.u32 (%p1674_p5), 1, %s1540_s17  }
  0x2b   : > { %s1314_s27 = smul.u32 (%p1674_p5), 48, %s176_s25  ;;  %s1201_s29 = sshll.u32 (%p1674_p5), %s1556_s21, 2 }
  0x2c   : > { %s1315_s30 = smul.u32 (%p1674_p5), 48, %s1564_s23  ;;  %s2009_s0 = sld [smem:[#allocation9_spill]] (%p1674_p5) }
  0x2d   : > { %s178_s11 = scalar_lea.vmem (%p1674_p5), [#allocation2], %s1314_s27 }
  0x2e   : > { %s184_s6 = sadd.s32 (%p1674_p5), %s1315_s30, %s1201_s29 }
  0x2f   : > { %s1202_s7 = sshll.u32 (%p1674_p5), %s184_s6, 2 }
  0x32   : > { %s186_s10 = scalar_lea.vmem %s2009_s0, %s1202_s7 }
  0x33   : > { %v199_v0 = vld [vmem:[%s186_s10] sm:$0xff]  ;;  %v201_v1 = vld [vmem:[%s186_s10 + $0x8] sm:$0xff] }
  0x34   : > { %v203_v2 = vld [vmem:[%s186_s10 + $0x40] sm:$0xff]  ;;  %200 = vst [vmem:[%s178_s11] sm:$0xff] %v199_v0  ;;  %202 = vst [vmem:[%s178_s11 + $0x8] sm:$0xff] %v201_v1  ;;  %v205_v3 = vld [vmem:[%s186_s10 + $0x48] sm:$0xff] }
  0x35   : > { %204 = vst [vmem:[%s178_s11 + $0x10] sm:$0xff] %v203_v2  ;;  %v207_v4 = vld [vmem:[%s186_s10 + $0x80] sm:$0xff]  ;;  %v209_v5 = vld [vmem:[%s186_s10 + $0x88] sm:$0xff]  ;;  %206 = vst [vmem:[%s178_s11 + $0x18] sm:$0xff] %v205_v3 }
  0x36   : > { %208 = vst [vmem:[%s178_s11 + $0x20] sm:$0xff] %v207_v4  ;;  %210 = vst [vmem:[%s178_s11 + $0x28] sm:$0xff] %v209_v5 }
  0x37 PF: > { %216 = sbr.rel (!%p1678_p7) target bundleno = 108 (0x6c), region = 43  ;;  %s218_s4 = sand.u32 (%p1678_p7), 1, %s1532_s15  }
  0x38   : > { %s1257_s25 = sshll.u32 (%p1678_p7), %s1556_s21, 7  ;;  %s1203_s27 = sshll.u32 (%p1678_p7), %s218_s4, 8 }
  0x39   : > { %s223_s29 = sadd.s32 (%p1678_p7), %s1560_s22, %s1257_s25  ;;  %s1206_s30 = sshll.u32 (%p1678_p7), %s1564_s23, 9 }
  0x3a   : > { %s225_s6 = sadd.s32 (%p1678_p7), %s1206_s30, %s223_s29  ;;  %s2010_s1 = sld [smem:[#allocation10_spill]] (%p1678_p7) }
  0x3b   : > { %s1207_s7 = sshll.u32 (%p1678_p7), %s225_s6, 2  ;;  %s1728_s5 = scalar_lea.vmem (%p1678_p7), [#allocation3], %s1203_s27 }
  0x40   : > { %s1723_s10 = scalar_lea.vmem %s2010_s1, %s1207_s7 }
  0x41   : > { %v243_v6 = vld [vmem:[%s1723_s10] sm:$0xf]  ;;  %v245_v7 = vld [vmem:[%s1723_s10 + $0x8] sm:$0xf]  ;;  %v247_v8 = vld [vmem:[%s1723_s10 + $0x10] sm:$0xf] }
  0x42   : > { %244 = vst [vmem:[%s1728_s5] sm:$0xf] %v243_v6  ;;  %246 = vst [vmem:[%s1728_s5 + $0x4] sm:$0xf] %v245_v7  ;;  %v249_v9 = vld [vmem:[%s1723_s10 + $0x18] sm:$0xf] }
  0x43   : > { %248 = vst [vmem:[%s1728_s5 + $0x8] sm:$0xf] %v247_v8  ;;  %v251_v10 = vld [vmem:[%s1723_s10 + $0x20] sm:$0xf]  ;;  %v253_v11 = vld [vmem:[%s1723_s10 + $0x28] sm:$0xf] }
  0x44   : > { %250 = vst [vmem:[%s1728_s5 + $0xc] sm:$0xf] %v249_v9  ;;  %252 = vst [vmem:[%s1728_s5 + $0x10] sm:$0xf] %v251_v10  ;;  %v255_v12 = vld [vmem:[%s1723_s10 + $0x30] sm:$0xf] }
  0x45   : > { %254 = vst [vmem:[%s1728_s5 + $0x14] sm:$0xf] %v253_v11  ;;  %v257_v13 = vld [vmem:[%s1723_s10 + $0x38] sm:$0xf]  ;;  %v259_v14 = vld [vmem:[%s1723_s10 + $0x40] sm:$0xf] }
  0x46   : > { %256 = vst [vmem:[%s1728_s5 + $0x18] sm:$0xf] %v255_v12  ;;  %258 = vst [vmem:[%s1728_s5 + $0x1c] sm:$0xf] %v257_v13  ;;  %v261_v15 = vld [vmem:[%s1723_s10 + $0x48] sm:$0xf] }
  0x47   : > { %260 = vst [vmem:[%s1728_s5 + $0x20] sm:$0xf] %v259_v14  ;;  %v263_v16 = vld [vmem:[%s1723_s10 + $0x50] sm:$0xf]  ;;  %v265_v17 = vld [vmem:[%s1723_s10 + $0x58] sm:$0xf] }
  0x48   : > { %262 = vst [vmem:[%s1728_s5 + $0x24] sm:$0xf] %v261_v15  ;;  %264 = vst [vmem:[%s1728_s5 + $0x28] sm:$0xf] %v263_v16  ;;  %v267_v18 = vld [vmem:[%s1723_s10 + $0x60] sm:$0xf] }
  0x49   : > { %266 = vst [vmem:[%s1728_s5 + $0x2c] sm:$0xf] %v265_v17  ;;  %v269_v19 = vld [vmem:[%s1723_s10 + $0x68] sm:$0xf]  ;;  %v271_v20 = vld [vmem:[%s1723_s10 + $0x70] sm:$0xf] }
  0x4a   : > { %268 = vst [vmem:[%s1728_s5 + $0x30] sm:$0xf] %v267_v18  ;;  %270 = vst [vmem:[%s1728_s5 + $0x34] sm:$0xf] %v269_v19  ;;  %v273_v21 = vld [vmem:[%s1723_s10 + $0x78] sm:$0xf] }
  0x4b   : > { %272 = vst [vmem:[%s1728_s5 + $0x38] sm:$0xf] %v271_v20  ;;  %v275_v22 = vld [vmem:[%s1723_s10 + $0x80] sm:$0xf]  ;;  %v277_v23 = vld [vmem:[%s1723_s10 + $0x88] sm:$0xf] }
  0x4c   : > { %274 = vst [vmem:[%s1728_s5 + $0x3c] sm:$0xf] %v273_v21  ;;  %276 = vst [vmem:[%s1728_s5 + $0x40] sm:$0xf] %v275_v22  ;;  %v279_v24 = vld [vmem:[%s1723_s10 + $0x90] sm:$0xf] }
  0x4d   : > { %278 = vst [vmem:[%s1728_s5 + $0x44] sm:$0xf] %v277_v23  ;;  %v281_v25 = vld [vmem:[%s1723_s10 + $0x98] sm:$0xf]  ;;  %v283_v26 = vld [vmem:[%s1723_s10 + $0xa0] sm:$0xf] }
  0x4e   : > { %280 = vst [vmem:[%s1728_s5 + $0x48] sm:$0xf] %v279_v24  ;;  %282 = vst [vmem:[%s1728_s5 + $0x4c] sm:$0xf] %v281_v25  ;;  %v285_v27 = vld [vmem:[%s1723_s10 + $0xa8] sm:$0xf] }
  0x4f   : > { %284 = vst [vmem:[%s1728_s5 + $0x50] sm:$0xf] %v283_v26  ;;  %v287_v28 = vld [vmem:[%s1723_s10 + $0xb0] sm:$0xf]  ;;  %v289_v29 = vld [vmem:[%s1723_s10 + $0xb8] sm:$0xf] }
  0x50   : > { %286 = vst [vmem:[%s1728_s5 + $0x54] sm:$0xf] %v285_v27  ;;  %288 = vst [vmem:[%s1728_s5 + $0x58] sm:$0xf] %v287_v28  ;;  %v291_v30 = vld [vmem:[%s1723_s10 + $0xc0] sm:$0xf] }
  0x51   : > { %290 = vst [vmem:[%s1728_s5 + $0x5c] sm:$0xf] %v289_v29  ;;  %v293_v31 = vld [vmem:[%s1723_s10 + $0xc8] sm:$0xf]  ;;  %v295_v32 = vld [vmem:[%s1723_s10 + $0xd0] sm:$0xf] }
  0x52   : > { %292 = vst [vmem:[%s1728_s5 + $0x60] sm:$0xf] %v291_v30  ;;  %294 = vst [vmem:[%s1728_s5 + $0x64] sm:$0xf] %v293_v31  ;;  %v297_v33 = vld [vmem:[%s1723_s10 + $0xd8] sm:$0xf] }
  0x53   : > { %296 = vst [vmem:[%s1728_s5 + $0x68] sm:$0xf] %v295_v32  ;;  %v299_v34 = vld [vmem:[%s1723_s10 + $0xe0] sm:$0xf]  ;;  %v301_v35 = vld [vmem:[%s1723_s10 + $0xe8] sm:$0xf] }
  0x54   : > { %298 = vst [vmem:[%s1728_s5 + $0x6c] sm:$0xf] %v297_v33  ;;  %300 = vst [vmem:[%s1728_s5 + $0x70] sm:$0xf] %v299_v34  ;;  %v303_v36 = vld [vmem:[%s1723_s10 + $0xf0] sm:$0xf] }
  0x55   : > { %302 = vst [vmem:[%s1728_s5 + $0x74] sm:$0xf] %v301_v35  ;;  %v305_v37 = vld [vmem:[%s1723_s10 + $0xf8] sm:$0xf]  ;;  %v307_v38 = vld [vmem:[%s1723_s10 + $0x100] sm:$0xf] }
  0x56   : > { %304 = vst [vmem:[%s1728_s5 + $0x78] sm:$0xf] %v303_v36  ;;  %306 = vst [vmem:[%s1728_s5 + $0x7c] sm:$0xf] %v305_v37  ;;  %v309_v39 = vld [vmem:[%s1723_s10 + $0x108] sm:$0xf] }
  0x57   : > { %308 = vst [vmem:[%s1728_s5 + $0x80] sm:$0xf] %v307_v38  ;;  %v311_v40 = vld [vmem:[%s1723_s10 + $0x110] sm:$0xf]  ;;  %v313_v41 = vld [vmem:[%s1723_s10 + $0x118] sm:$0xf] }
  0x58   : > { %310 = vst [vmem:[%s1728_s5 + $0x84] sm:$0xf] %v309_v39  ;;  %312 = vst [vmem:[%s1728_s5 + $0x88] sm:$0xf] %v311_v40  ;;  %v315_v42 = vld [vmem:[%s1723_s10 + $0x120] sm:$0xf] }
  0x59   : > { %314 = vst [vmem:[%s1728_s5 + $0x8c] sm:$0xf] %v313_v41  ;;  %v317_v43 = vld [vmem:[%s1723_s10 + $0x128] sm:$0xf]  ;;  %v319_v44 = vld [vmem:[%s1723_s10 + $0x130] sm:$0xf] }
  0x5a   : > { %316 = vst [vmem:[%s1728_s5 + $0x90] sm:$0xf] %v315_v42  ;;  %318 = vst [vmem:[%s1728_s5 + $0x94] sm:$0xf] %v317_v43  ;;  %v321_v45 = vld [vmem:[%s1723_s10 + $0x138] sm:$0xf] }
  0x5b   : > { %320 = vst [vmem:[%s1728_s5 + $0x98] sm:$0xf] %v319_v44  ;;  %v323_v46 = vld [vmem:[%s1723_s10 + $0x140] sm:$0xf]  ;;  %v325_v47 = vld [vmem:[%s1723_s10 + $0x148] sm:$0xf] }
  0x5c   : > { %322 = vst [vmem:[%s1728_s5 + $0x9c] sm:$0xf] %v321_v45  ;;  %324 = vst [vmem:[%s1728_s5 + $0xa0] sm:$0xf] %v323_v46  ;;  %v327_v48 = vld [vmem:[%s1723_s10 + $0x150] sm:$0xf] }
  0x5d   : > { %326 = vst [vmem:[%s1728_s5 + $0xa4] sm:$0xf] %v325_v47  ;;  %v329_v49 = vld [vmem:[%s1723_s10 + $0x158] sm:$0xf]  ;;  %v331_v50 = vld [vmem:[%s1723_s10 + $0x160] sm:$0xf] }
  0x5e   : > { %328 = vst [vmem:[%s1728_s5 + $0xa8] sm:$0xf] %v327_v48  ;;  %330 = vst [vmem:[%s1728_s5 + $0xac] sm:$0xf] %v329_v49  ;;  %v333_v51 = vld [vmem:[%s1723_s10 + $0x168] sm:$0xf] }
  0x5f   : > { %332 = vst [vmem:[%s1728_s5 + $0xb0] sm:$0xf] %v331_v50  ;;  %v335_v52 = vld [vmem:[%s1723_s10 + $0x170] sm:$0xf]  ;;  %v337_v53 = vld [vmem:[%s1723_s10 + $0x178] sm:$0xf] }
  0x60   : > { %334 = vst [vmem:[%s1728_s5 + $0xb4] sm:$0xf] %v333_v51  ;;  %336 = vst [vmem:[%s1728_s5 + $0xb8] sm:$0xf] %v335_v52  ;;  %v339_v54 = vld [vmem:[%s1723_s10 + $0x180] sm:$0xf] }
  0x61   : > { %338 = vst [vmem:[%s1728_s5 + $0xbc] sm:$0xf] %v337_v53  ;;  %v341_v55 = vld [vmem:[%s1723_s10 + $0x188] sm:$0xf]  ;;  %v343_v56 = vld [vmem:[%s1723_s10 + $0x190] sm:$0xf] }
  0x62   : > { %340 = vst [vmem:[%s1728_s5 + $0xc0] sm:$0xf] %v339_v54  ;;  %342 = vst [vmem:[%s1728_s5 + $0xc4] sm:$0xf] %v341_v55  ;;  %v345_v57 = vld [vmem:[%s1723_s10 + $0x198] sm:$0xf] }
  0x63   : > { %344 = vst [vmem:[%s1728_s5 + $0xc8] sm:$0xf] %v343_v56  ;;  %v347_v58 = vld [vmem:[%s1723_s10 + $0x1a0] sm:$0xf]  ;;  %v349_v59 = vld [vmem:[%s1723_s10 + $0x1a8] sm:$0xf] }
  0x64   : > { %346 = vst [vmem:[%s1728_s5 + $0xcc] sm:$0xf] %v345_v57  ;;  %348 = vst [vmem:[%s1728_s5 + $0xd0] sm:$0xf] %v347_v58  ;;  %v351_v60 = vld [vmem:[%s1723_s10 + $0x1b0] sm:$0xf] }
  0x65   : > { %350 = vst [vmem:[%s1728_s5 + $0xd4] sm:$0xf] %v349_v59  ;;  %v353_v61 = vld [vmem:[%s1723_s10 + $0x1b8] sm:$0xf]  ;;  %v355_v62 = vld [vmem:[%s1723_s10 + $0x1c0] sm:$0xf] }
  0x66   : > { %352 = vst [vmem:[%s1728_s5 + $0xd8] sm:$0xf] %v351_v60  ;;  %354 = vst [vmem:[%s1728_s5 + $0xdc] sm:$0xf] %v353_v61  ;;  %v357_v63 = vld [vmem:[%s1723_s10 + $0x1c8] sm:$0xf] }
  0x67   : > { %356 = vst [vmem:[%s1728_s5 + $0xe0] sm:$0xf] %v355_v62  ;;  %v359_v0 = vld [vmem:[%s1723_s10 + $0x1d0] sm:$0xf]  ;;  %v361_v1 = vld [vmem:[%s1723_s10 + $0x1d8] sm:$0xf] }
  0x68   : > { %358 = vst [vmem:[%s1728_s5 + $0xe4] sm:$0xf] %v357_v63  ;;  %360 = vst [vmem:[%s1728_s5 + $0xe8] sm:$0xf] %v359_v0  ;;  %v363_v2 = vld [vmem:[%s1723_s10 + $0x1e0] sm:$0xf] }
  0x69   : > { %362 = vst [vmem:[%s1728_s5 + $0xec] sm:$0xf] %v361_v1  ;;  %v365_v3 = vld [vmem:[%s1723_s10 + $0x1e8] sm:$0xf]  ;;  %v367_v4 = vld [vmem:[%s1723_s10 + $0x1f0] sm:$0xf] }
  0x6a   : > { %364 = vst [vmem:[%s1728_s5 + $0xf0] sm:$0xf] %v363_v2  ;;  %366 = vst [vmem:[%s1728_s5 + $0xf4] sm:$0xf] %v365_v3  ;;  %v369_v5 = vld [vmem:[%s1723_s10 + $0x1f8] sm:$0xf] }
  0x6b   : > { %368 = vst [vmem:[%s1728_s5 + $0xf8] sm:$0xf] %v367_v4  ;;  %370 = vst [vmem:[%s1728_s5 + $0xfc] sm:$0xf] %v369_v5 }
  0x6c PF: > { %p1208_p1 = scmp.ge.s32.totalorder %s1568_s24, 1  ;;  %p530_p2 = scmp.lt.s32.totalorder %s1568_s24, 17 }
  0x6e   : > { %p531_p3 = pnand %p1208_p1, %p530_p2 }
  0x6f   : > { %s537_s11 = sand.u32 (!%p531_p3), 1, %s1536_s16   ;;  %s544_s4 = sand.u32 (!%p531_p3), 1, %s1528_s14  }
  0x70   : > { %534 = sbr.rel (%p531_p3) target bundleno = 416 (0x1a0), region = 88  ;;  %s1209_s27 = sshll.u32 (!%p531_p3), %s544_s4, 8 }
  0x71   : > { %s1316_s25 = smul.u32 (!%p531_p3), 48, %s537_s11  ;;  %s574_s29 = sand.u32 (!%p531_p3), 1, %s1520_s12  }
  0x72   : > { %s1317_s30 = smul.u32 (!%p531_p3), 24, %s574_s29  ;;  %p580_p4 = scmp.lt.s32.totalorder (!%p531_p3), %s1552_s20, 1 }
  0x73   : > { %p582_p5 = scmp.lt.s32.totalorder (!%p531_p3), %s1548_s19, 1  ;;  %s2011_s0 = sld [smem:[#allocation11_spill]] (!%p531_p3) }
  0x74   : > { %s1870_s28 = scalar_lea.vmem (!%p531_p3), [#allocation2], %s1316_s25  ;;  %s1872_s16 = scalar_lea.vmem (!%p531_p3), [#allocation3], %s1209_s27 }
  0x75   : > { %s1874_s14 = scalar_lea.vmem (!%p531_p3), [#allocation4], %s1317_s30  ;;  %s2012_s12 = sld [smem:[#allocation5_spill]] (!%p531_p3) }
  0x77   : > { %s581_s6 = scalar_select %p580_p4, %s1552_s20, 1 }
  0x78   : > { %s583_s7 = scalar_select %p582_p5, %s1548_s19, 1 }
  0x79   : > { %s1210_s8 = sshll.u32 %s581_s6, 1 }
  0x7a   : > { %s1864_s9 = sadd.s32 %s1210_s8, %s583_s7 }
  0x7b   : > { %s586_s1 = scalar_lea.vmem %s2011_s0, %s1864_s9  ;;  %p1211_p6 = scmp.ne.s32.totalorder %s2012_s12, 0 }
  0x7c   : > { %v1570_v6 = vmov (!%p1211_p6), 0.0  }
  0x7d   : > { %592 = sbr.rel (%p1211_p6) target bundleno = 132 (0x84), region = 100  ;;  %593 = vst [vmem:[%s1874_s14] sm:$0xff] (!%p1211_p6), %v1570_v6  ;;  %594 = vst [vmem:[%s1874_s14 + $0x8] sm:$0xff] (!%p1211_p6), %v1570_v6 }
  0x7e   : > { %595 = vst [vmem:[%s1874_s14 + $0x10] sm:$0xff] (!%p1211_p6), %v1570_v6 }
  0x84 PF: > { %v1424_v7 = vld [vmem:[%s1872_s16 + $0x40] sm:$0xff]   ;;  %v1428_v11 = vld [vmem:[%s1872_s16 + $0x48] sm:$0xff]   ;;  %v1432_v15 = vld [vmem:[%s1872_s16 + $0x50] sm:$0xff]   ;;  %s2013_s0 = sld [smem:[#allocation5_spill]] }
  0x85   : > { %v1425_v8 = vld [vmem:[%s1872_s16 + $0xc0] sm:$0xff]   ;;  %1258 = vmatprep.subr.bf16.mxu0 %v1424_v7  ;;  %v1429_v12 = vld [vmem:[%s1872_s16 + $0xc8] sm:$0xff]   ;;  %v1433_v16 = vld [vmem:[%s1872_s16 + $0xd0] sm:$0xff]  }
  0x86   : > { %v1426_v9 = vld [vmem:[%s1872_s16] sm:$0xff]   ;;  %1286 = vmatprep.subr.bf16.mxu1 %v1425_v8  ;;  %v1430_v13 = vld [vmem:[%s1872_s16 + $0x8] sm:$0xff]   ;;  %v1434_v17 = vld [vmem:[%s1872_s16 + $0x10] sm:$0xff]  }
  0x87   : > { %v1427_v10 = vld [vmem:[%s1872_s16 + $0x80] sm:$0xff]   ;;  %1259 = vmatpush3.bf16.msra.mxu0 %v1426_v9  ;;  %v1431_v14 = vld [vmem:[%s1872_s16 + $0x88] sm:$0xff]   ;;  %v1435_v18 = vld [vmem:[%s1872_s16 + $0x90] sm:$0xff]  }
  0x88   : > { %1287 = vmatpush3.bf16.msra.mxu1 %v1427_v10  ;;  %1260 = vmatprep.subr.bf16.mxu0 %v1428_v11  ;;  %v1436_v19 = vld [vmem:[%s1872_s16 + $0x58] sm:$0xff]   ;;  %v1440_v23 = vld [vmem:[%s1872_s16 + $0x60] sm:$0xff]   ;;  %v1444_v27 = vld [vmem:[%s1872_s16 + $0x68] sm:$0xff]  }
  0x89   : > { %1288 = vmatprep.subr.bf16.mxu1 %v1429_v12  ;;  %v1437_v20 = vld [vmem:[%s1872_s16 + $0xd8] sm:$0xff]   ;;  %v1441_v24 = vld [vmem:[%s1872_s16 + $0xe0] sm:$0xff]   ;;  %v1445_v28 = vld [vmem:[%s1872_s16 + $0xe8] sm:$0xff]  }
  0x8a   : > { %v1438_v21 = vld [vmem:[%s1872_s16 + $0x18] sm:$0xff]   ;;  %v1442_v25 = vld [vmem:[%s1872_s16 + $0x20] sm:$0xff]   ;;  %v1446_v29 = vld [vmem:[%s1872_s16 + $0x28] sm:$0xff]   ;;  %p1252_p7 = scmp.ne.s32.totalorder %s2013_s0, 3 }
  0x8b   : > { %1261 = vmatpush3.bf16.msra.mxu0 %v1430_v13  ;;  %v1439_v22 = vld [vmem:[%s1872_s16 + $0x98] sm:$0xff]   ;;  %v1443_v26 = vld [vmem:[%s1872_s16 + $0xa0] sm:$0xff]   ;;  %v1447_v30 = vld [vmem:[%s1872_s16 + $0xa8] sm:$0xff]  }
  0x8c   : > { %1289 = vmatpush3.bf16.msra.mxu1 %v1431_v14  ;;  %1262 = vmatprep.subr.bf16.mxu0 %v1432_v15  ;;  %v1448_v31 = vld [vmem:[%s1872_s16 + $0x70] sm:$0xff]   ;;  %v1452_v35 = vld [vmem:[%s1872_s16 + $0x78] sm:$0xff]   ;;  %v597_v63 = vld [vmem:[%s1874_s14 + $0x8] sm:$0xff] }
  0x8d   : > { %1290 = vmatprep.subr.bf16.mxu1 %v1433_v16  ;;  %v1449_v32 = vld [vmem:[%s1872_s16 + $0xf0] sm:$0xff]   ;;  %v1453_v36 = vld [vmem:[%s1872_s16 + $0xf8] sm:$0xff]  }
  0x8e   : > { %v1450_v33 = vld [vmem:[%s1872_s16 + $0x30] sm:$0xff]   ;;  %v1454_v37 = vld [vmem:[%s1872_s16 + $0x38] sm:$0xff]  }
  0x8f   : > { %1263 = vmatpush3.bf16.msra.mxu0 %v1434_v17  ;;  %v1451_v34 = vld [vmem:[%s1872_s16 + $0xb0] sm:$0xff]   ;;  %v1455_v38 = vld [vmem:[%s1872_s16 + $0xb8] sm:$0xff]   ;;  %v1253_v17 = vld [vmem:[%s586_s1] ss:$0 sm:$0xff] (!%p1252_p7) }
  0x90   : > { %1291 = vmatpush3.bf16.msra.mxu1 %v1435_v18  ;;  %1264 = vmatprep.subr.bf16.mxu0 %v1436_v19  ;;  %v1456_v39 = vld [vmem:[%s1870_s28] ss:$16 sps:$4 sm:$0xff]   ;;  %v1458_v40 = vld [vmem:[%s1870_s28 + $0x4] ss:$16 sps:$4 sm:$0xff]   ;;  %v1459_v41 = vld [vmem:[%s1870_s28 + $0x8] ss:$16 sps:$4 sm:$0xff]  }
  0x91   : > { %1292 = vmatprep.subr.bf16.mxu1 %v1437_v20  ;;  %v1461_v42 = vld [vmem:[%s1870_s28 + $0xc] ss:$16 sps:$4 sm:$0xff]   ;;  %v603_v43 = vld [vmem:[%s1870_s28 + $0x20] sm:$0xff]  ;;  %927 = vmatprep.mubr.bf16.mxu0 %v1458_v40 }
  0x92   : > { %v1217_v44 = vcombine.high %v603_v43, %v603_v43  ;;  %v604_v45 = vld [vmem:[%s1870_s28 + $0x28] sm:$0xff]  ;;  %975 = vmatprep.mubr.bf16.mxu1 %v1461_v42  ;;  %v1216_v47 = vcombine.low %v603_v43, %v603_v43  ;;  %v598_v12 = vld [vmem:[%s1874_s14 + $0x10] sm:$0xff] }
  0x93   : > { %1265 = vmatpush3.bf16.msra.mxu0 %v1438_v21  ;;  %v1219_v46 = vcombine.high %v604_v45, %v604_v45  ;;  %v1218_v48 = vcombine.low %v604_v45, %v604_v45  ;;  %v596_v58 = vld [vmem:[%s1874_s14] sm:$0xff] }
  0x94   : > { %1293 = vmatpush3.bf16.msra.mxu1 %v1439_v22  ;;  %1266 = vmatprep.subr.bf16.mxu0 %v1440_v23 }
  0x95   : > { %1294 = vmatprep.subr.bf16.mxu1 %v1441_v24 }
  0x97   : > { %1267 = vmatpush3.bf16.msra.mxu0 %v1442_v25 }
  0x98   : > { %1295 = vmatpush3.bf16.msra.mxu1 %v1443_v26  ;;  %1268 = vmatprep.subr.bf16.mxu0 %v1444_v27 }
  0x99   : > { %1296 = vmatprep.subr.bf16.mxu1 %v1445_v28 }
  0x9b   : > { %1269 = vmatpush3.bf16.msra.mxu0 %v1446_v29 }
  0x9c   : > { %1297 = vmatpush3.bf16.msra.mxu1 %v1447_v30  ;;  %1270 = vmatprep.subr.bf16.mxu0 %v1448_v31 }
  0x9d   : > { %1298 = vmatprep.subr.bf16.mxu1 %v1449_v32 }
  0x9f   : > { %1271 = vmatpush3.bf16.msra.mxu0 %v1450_v33 }
  0xa0   : > { %1299 = vmatpush3.bf16.msra.mxu1 %v1451_v34  ;;  %1272 = vmatprep.subr.bf16.mxu0 %v1452_v35 }
  0xa1   : > { %1300 = vmatprep.subr.bf16.mxu1 %v1453_v36 }
  0xa3   : > { %1273 = vmatpush3.bf16.msra.mxu0 %v1454_v37 }
  0xa4   : > { %1301 = vmatpush3.bf16.msra.mxu1 %v1455_v38 }
  0xa6   : > { %928 = vmatmul.mubr.bf16.vlgmr.msra.gmra.mrb[0].mxu0 %v1456_v39 }
  0xa7   : > { %976 = vmatmul.mubr.bf16.vlgmr.msra.gmra.mrb[0].mxu1 %v1459_v41  ;;  %935 = vmatprep.mubr.bf16.mxu0 %v1217_v44 }
  0xa8   : > { %983 = vmatprep.mubr.bf16.mxu1 %v1219_v46 }
  0xae   : > { %936 = vmatmul.mubr.bf16.gmra.mrb[4].mxu0 %v1216_v47 }
  0xaf   : > { %984 = vmatmul.mubr.bf16.gmra.mrb[4].mxu1 %v1218_v48 }
 0x179   : > { %v1274_v49 = vpop.f32.mrb[0].mxu0 }
 0x17a   : > { %v1302_v50 = vpop.f32.mrb[0].mxu1  ;;  %v1275_v51 = vpop.f32.mrb[1].mxu0 }
 0x17b   : > { %v1276_v52 = vadd.f32 %v1275_v51, %v1274_v49  ;;  %v1303_v53 = vpop.f32.mrb[1].mxu1  ;;  %v1277_v54 = vpop.f32.mrb[2].mxu0 }
 0x17c   : > { %v1304_v55 = vadd.f32 %v1303_v53, %v1302_v50  ;;  %v1305_v56 = vpop.f32.mrb[2].mxu1  ;;  %v1278_v57 = vpop.f32.mrb[3].mxu0 }
 0x17d   : > { %v1279_v59 = vadd.f32 %v1278_v57, %v1277_v54  ;;  %v1306_v60 = vpop.f32.mrb[3].mxu1 }
 0x17e   : > { %v978_v61 = vadd.f32 %v1304_v55, %v1276_v52  ;;  %v1307_v62 = vadd.f32 %v1306_v60, %v1305_v56 }
 0x180   : > { %v991_v0 = vadd.f32 %v978_v61, %v596_v58  ;;  %v981_v1 = vadd.f32 %v1307_v62, %v1279_v59 }
 0x181   : > { %v1280_v2 = vpop.f32.mrb[4].mxu0 }
 0x182   : > { %994 = vst [vmem:[%s1874_s14] sm:$0xff] %v991_v0  ;;  %v992_v3 = vadd.f32 %v981_v1, %v597_v63  ;;  %v1308_v4 = vpop.f32.mrb[4].mxu1  ;;  %v1281_v5 = vpop.f32.mrb[5].mxu0 }
 0x183   : > { %v1282_v6 = vadd.f32 %v1281_v5, %v1280_v2  ;;  %v1309_v7 = vpop.f32.mrb[5].mxu1  ;;  %v1283_v8 = vpop.f32.mrb[6].mxu0 }
 0x184   : > { %995 = vst [vmem:[%s1874_s14 + $0x8] sm:$0xff] %v992_v3  ;;  %v1310_v9 = vadd.f32 %v1309_v7, %v1308_v4  ;;  %v1311_v10 = vpop.f32.mrb[6].mxu1  ;;  %v1284_v11 = vpop.f32.mrb[7].mxu0  ;;  %1000 = sbr.rel (%p1252_p7) target bundleno = 407 (0x197), region = 104 }
 0x185   : > { %v1312_v13 = vpop.f32.mrb[7].mxu1 }
 0x186   : > { %v986_v14 = vadd.f32 %v1310_v9, %v1282_v6 }
 0x188   : > { %v993_v15 = vadd.f32 %v986_v14, %v598_v12 }
 0x189   : > { %v1001_v16 = vld [vmem:[%s1874_s14] sm:$0xff] (!%p1252_p7) }
 0x18a   : > { %996 = vst [vmem:[%s1874_s14 + $0x10] sm:$0xff] %v993_v15  ;;  %v1011_v19 = vadd.f32 (!%p1252_p7), %v1253_v17, %v1001_v16 }
 0x18b   : > { %v1002_v18 = vld [vmem:[%s1874_s14 + $0x8] sm:$0xff] }
 0x18c   : > { %v1012_v20 = vadd.f32 %v1253_v17, %v1002_v18  ;;  %v1014_v23 = vmax.f32 %v1011_v19, 0.0 }
 0x18e   : > { %v1015_v24 = vmax.f32 %v1012_v20, 0.0  ;;  %1017 = vst [vmem:[%s1874_s14] sm:$0xff] %v1014_v23 }
 0x190   : > { %1018 = vst [vmem:[%s1874_s14 + $0x8] sm:$0xff] %v1015_v24 }
 0x191   : > { %v1003_v21 = vld [vmem:[%s1874_s14 + $0x10] sm:$0xff] }
 0x192   : > { %v1013_v22 = vadd.f32 %v1253_v17, %v1003_v21 }
 0x194   : > { %v1016_v25 = vmax.f32 %v1013_v22, 0.0 }
 0x196   : > { %1019 = vst [vmem:[%s1874_s14 + $0x10] sm:$0xff] %v1016_v25 }
 0x197 PF: > { %1026 = sbr.rel (!%p1701_p13) target bundleno = 416 (0x1a0), region = 108  ;;  %v1065_v26 = vld [vmem:[%s1874_s14] sm:$0xff] (%p1701_p13)  ;;  %v1067_v27 = vld [vmem:[%s1874_s14 + $0x8] sm:$0xff] (%p1701_p13)  ;;  %s2015_s6 = sld [smem:[#allocation12_spill]] (%p1701_p13) }
 0x198   : > { %s1318_s1 = smul.u32 (%p1701_p13), 6, %s1552_s20 }
 0x19a   : > { %s1031_s25 = sadd.s32 (%p1701_p13), %s1548_s19, %s1318_s1 }
 0x19b   : > { %s1254_s27 = sshll.u32 (%p1701_p13), %s1031_s25, 3 }
 0x19d   : > { %v1069_v28 = vld [vmem:[%s1874_s14 + $0x10] sm:$0xff] (%p1701_p13)  ;;  %s1033_s7 = scalar_lea.vmem (%p1701_p13), %s2015_s6, %s1254_s27 }
 0x19e   : > { %1066 = vst [vmem:[%s1033_s7] sm:$0xff] %v1065_v26  ;;  %1068 = vst [vmem:[%s1033_s7 + $0x10] sm:$0xff] %v1067_v27 }
 0x19f   : > { %1070 = vst [vmem:[%s1033_s7 + $0x20] sm:$0xff] %v1069_v28 }
 0x1a0 PF: > { %s13_s24 = sadd.s32 1, %s1568_s24   ;;  %s2017_s8 = sld [smem:[#allocation6_spill]] }
 0x1a1   : > { %p1947_p8 = scmp.ge.s32.totalorder %s13_s24, 18   ;;  %s2018_s9 = sld [smem:[#allocation7_spill]] }
 0x1a2   : > { %s2019_s10 = sld [smem:[#allocation8_spill]]  ;;  %s2020_s12 = smov %s1524_s13 }
 0x1a3   : > { %s2021_s13 = smov %s1699_s2  ;;  %s2022_s14 = smov %s1532_s15 }
 0x1a4   : > { %s2023_s15 = smov %s1696_s18  ;;  %s2024_s16 = smov %s1540_s17 }
 0x1a5   : > { %s2025_s17 = smov %s1693_s3  ;;  %s2026_s18 = smov %s1556_s21 }
 0x1a6   : > { %s2027_s19 = smov %s1560_s22  ;;  %s2028_s20 = smov %s1564_s23 }
 0x1a7   : > { %s2029_s21 = smov %s2017_s8  ;;  %s2030_s22 = smov %s2018_s9 }
 0x1a8   : > { %s2031_s23 = smov %s2019_s10  ;;  %12 = sbr.rel (!%p1947_p8) target bundleno = 12 (0xc), region = 188 }

// kernel: imagenet_matconvnet_alex_forward.9
= control target key start
LH: loop header
LB: loop body
LE: loop exit
PB: predicated region body
PF: predicated region fallthrough
CT: control target
= control target key end

     0   :  { %s1194_s12 = smov 0   ;;  %s1196_s13 = smov 0   ;;  %s1361_s0 = inlined_call_operand.vmem [shape: bf16[2,24,2048], index: 0, kind: input, shape index: {}]   ;;  %s1362_s1 = inlined_call_operand.vmem [shape: bf16[2,2048,128], index: 1, kind: input, shape index: {}]   ;;  %s1363_s2 = inlined_call_operand.vmem [shape: f32[2,1,128], index: 2, kind: input, shape index: {}]   ;;  %s1364_s3 = inlined_call_operand.vmem [shape: f32[2,24,128], index: 3, kind: output, shape index: {}]  }
   0x1   :  { %s1198_s14 = smov 0   ;;  %s1200_s15 = smov 0  }
   0x2   :  { %s1202_s16 = smov 0   ;;  %s1204_s17 = smov 0  }
   0x3   :  { %s1206_s18 = smov 0  }
   0x4 LB: > { %s28_s19 = sadd.s32 1, %s1163_s16  ;;  %s39_s20 = sadd.s32 1, %s1167_s17  ;;  %s1171_s18 = sphi %s1206_s18, %s13_s18   ;;  %s1167_s17 = sphi %s1204_s17, %s1370_s17   ;;  %s1163_s16 = sphi %s1202_s16, %s1369_s16   ;;  %s1159_s15 = sphi %s1200_s15, %s1368_s15   ;;  %s1155_s14 = sphi %s1198_s14, %s1367_s14   ;;  %s1151_s13 = sphi %s1196_s13, %s1366_s13   ;;  %s1147_s12 = sphi %s1194_s12, %s1365_s12  }
   0x5   : > { %p29_p0 = scmp.ge.s32.totalorder %s28_s19, 4  ;;  %p57_p1 = scmp.ne.s32.totalorder %s1151_s13, %s1147_s12 }
   0x6   : > { %p58_p2 = scmp.eq.s32.totalorder %s1171_s18, 0  ;;  %s50_s24 = sadd.s32 1, %s1151_s13 }
   0x7   : > { %s1372_s19 = smov (%p29_p0, %s28_s19), 0  ;;  %s1374_s20 = smov (!%p29_p0, %s39_s20), %s1167_s17 }
   0x8   : > { %p59_p3 = por %p58_p2, %p57_p1  ;;  %p41_p4 = scmp.ge.s32.totalorder %s1374_s20, 2 }
   0x9   : > { %s46_s21 = ssub.s32 %s1163_s16, %s1372_s19  ;;  %p905_p6 = scmp.ge.s32.totalorder %s1171_s18, 8 }
   0xa   : > { %s1376_s20 = smov (%p41_p4, %s1374_s20), 0 }
   0xb   : > { %s43_s22 = ssub.s32 %s1167_s17, %s1376_s20  ;;  %171 = sbr.rel (%p905_p6) target bundleno = 29 (0x1d), region = 16 }
   0xc   : > { %s47_s23 = sor.u32 %s46_s21, %s43_s22 }
   0xd   : > { %p48_p5 = scmp.eq.s32.totalorder %s47_s23, 0 }
   0xf   : > { %s1245_s25 = scalar_select %p48_p5, %s1151_s13, %s50_s24  }
  0x12   : > { %174 = sbr.rel (!%p59_p3) target bundleno = 29 (0x1d), region = 20  ;;  %s176_s26 = sand.u32 (%p59_p3), 1, %s1151_s13  }
  0x13   : > { %s1014_s27 = smul.u32 (%p59_p3), 48, %s176_s26  ;;  %s906_s28 = sshll.u32 (%p59_p3), %s1163_s16, 2 }
  0x14   : > { %s1015_s29 = smul.u32 (%p59_p3), 48, %s1167_s17 }
  0x15   : > { %s178_s8 = scalar_lea.vmem (%p59_p3), [#allocation2], %s1014_s27 }
  0x16   : > { %s184_s30 = sadd.s32 (%p59_p3), %s1015_s29, %s906_s28 }
  0x17   : > { %s907_s4 = sshll.u32 (%p59_p3), %s184_s30, 2 }
  0x18   : > { %s186_s7 = scalar_lea.vmem (%p59_p3), %s1361_s0, %s907_s4 }
  0x19   : > { %v199_v0 = vld [vmem:[%s186_s7] sm:$0xff]  ;;  %v201_v1 = vld [vmem:[%s186_s7 + $0x8] sm:$0xff] }
  0x1a   : > { %v203_v2 = vld [vmem:[%s186_s7 + $0x40] sm:$0xff]  ;;  %200 = vst [vmem:[%s178_s8] sm:$0xff] %v199_v0  ;;  %202 = vst [vmem:[%s178_s8 + $0x8] sm:$0xff] %v201_v1  ;;  %v205_v3 = vld [vmem:[%s186_s7 + $0x48] sm:$0xff] }
  0x1b   : > { %204 = vst [vmem:[%s178_s8 + $0x10] sm:$0xff] %v203_v2  ;;  %v207_v4 = vld [vmem:[%s186_s7 + $0x80] sm:$0xff]  ;;  %v209_v5 = vld [vmem:[%s186_s7 + $0x88] sm:$0xff]  ;;  %206 = vst [vmem:[%s178_s8 + $0x18] sm:$0xff] %v205_v3 }
  0x1c   : > { %208 = vst [vmem:[%s178_s8 + $0x20] sm:$0xff] %v207_v4  ;;  %210 = vst [vmem:[%s178_s8 + $0x28] sm:$0xff] %v209_v5 }
  0x1d PF: > { %p908_p7 = scmp.ge.s32.totalorder %s1171_s18, 1  ;;  %p240_p8 = scmp.lt.s32.totalorder %s1171_s18, 9 }
  0x1f   : > { %p241_p9 = pnand %p908_p7, %p240_p8 }
  0x20   : > { %s247_s9 = sand.u32 (!%p241_p9), 1, %s1147_s12   ;;  %s909_s10 = sshll.u32 (!%p241_p9), %s1155_s14, 6 }
  0x21   : > { %244 = sbr.rel (%p241_p9) target bundleno = 323 (0x143), region = 51  ;;  %p298_p10 = scmp.lt.s32.totalorder (!%p241_p9), %s1159_s15, 1 }
  0x22   : > { %s1016_s11 = smul.u32 (!%p241_p9), 48, %s247_s9  ;;  %p300_p11 = scmp.lt.s32.totalorder (!%p241_p9), %s909_s10, 255 }
  0x23   : > { %p913_p12 = scmp.ne.s32.totalorder (!%p241_p9), %s1155_s14, 0 }
  0x24   : > { %s1278_s7 = scalar_lea.vmem (!%p241_p9), [#allocation2], %s1016_s11 }
  0x28   : > { %s1378_s15 = smov (!%p298_p10, %s1159_s15), 1  ;;  %s1380_s10 = smov (!%p300_p11, %s909_s10), 255 }
  0x29   : > { %s910_s21 = sshll.u32 %s1378_s15, 8  ;;  %s315_s24 = scalar_lea.vmem %s1363_s2, %s1378_s15  ;;  %v1173_v6 = vmov (!%p913_p12), 0.0  }
  0x2a   : > { %s306_s26 = sadd.s32 %s910_s21, %s1380_s10  ;;  %s1017_s27 = smul.u32 24, %s1378_s15 }
  0x2b   : > { %s911_s28 = sshll.u32 %s306_s26, 2  ;;  %333 = sbr.rel (%p913_p12) target bundleno = 50 (0x32), region = 59 }
  0x2c   : > { %s1271_s30 = scalar_lea.vmem %s1362_s1, %s911_s28  ;;  %s1276_s6 = scalar_lea.vmem %s1364_s3, %s1017_s27 }
  0x2d   : > { %334 = vst [vmem:[%s1276_s6] sm:$0xff] (!%p913_p12), %v1173_v6  ;;  %335 = vst [vmem:[%s1276_s6 + $0x8] sm:$0xff] (!%p913_p12), %v1173_v6 }
  0x2e   : > { %336 = vst [vmem:[%s1276_s6 + $0x10] sm:$0xff] (!%p913_p12), %v1173_v6 }
  0x32 PF: > { %v1075_v7 = vld [vmem:[%s1271_s30 + $0x40] sm:$0xff]   ;;  %v1079_v11 = vld [vmem:[%s1271_s30 + $0x48] sm:$0xff]   ;;  %v1083_v15 = vld [vmem:[%s1271_s30 + $0x50] sm:$0xff]   ;;  %p954_p13 = scmp.ne.s32.totalorder %s1155_s14, 3 }
  0x33   : > { %v1076_v8 = vld [vmem:[%s1271_s30 + $0xc0] sm:$0xff]   ;;  %958 = vmatprep.subr.bf16.mxu0 %v1075_v7  ;;  %v1080_v12 = vld [vmem:[%s1271_s30 + $0xc8] sm:$0xff]   ;;  %v1084_v16 = vld [vmem:[%s1271_s30 + $0xd0] sm:$0xff]  }
  0x34   : > { %v1077_v9 = vld [vmem:[%s1271_s30] sm:$0xff]   ;;  %986 = vmatprep.subr.bf16.mxu1 %v1076_v8  ;;  %v1081_v13 = vld [vmem:[%s1271_s30 + $0x8] sm:$0xff]   ;;  %v1085_v17 = vld [vmem:[%s1271_s30 + $0x10] sm:$0xff]  }
  0x35   : > { %v1078_v10 = vld [vmem:[%s1271_s30 + $0x80] sm:$0xff]   ;;  %959 = vmatpush3.bf16.msra.mxu0 %v1077_v9  ;;  %v1082_v14 = vld [vmem:[%s1271_s30 + $0x88] sm:$0xff]   ;;  %v1086_v18 = vld [vmem:[%s1271_s30 + $0x90] sm:$0xff]  }
  0x36   : > { %987 = vmatpush3.bf16.msra.mxu1 %v1078_v10  ;;  %960 = vmatprep.subr.bf16.mxu0 %v1079_v11  ;;  %v1087_v19 = vld [vmem:[%s1271_s30 + $0x58] sm:$0xff]   ;;  %v1091_v23 = vld [vmem:[%s1271_s30 + $0x60] sm:$0xff]   ;;  %v1095_v27 = vld [vmem:[%s1271_s30 + $0x68] sm:$0xff]  }
  0x37   : > { %988 = vmatprep.subr.bf16.mxu1 %v1080_v12  ;;  %v1088_v20 = vld [vmem:[%s1271_s30 + $0xd8] sm:$0xff]   ;;  %v1092_v24 = vld [vmem:[%s1271_s30 + $0xe0] sm:$0xff]   ;;  %v1096_v28 = vld [vmem:[%s1271_s30 + $0xe8] sm:$0xff]  }
  0x38   : > { %v1089_v21 = vld [vmem:[%s1271_s30 + $0x18] sm:$0xff]   ;;  %v1093_v25 = vld [vmem:[%s1271_s30 + $0x20] sm:$0xff]   ;;  %v1097_v29 = vld [vmem:[%s1271_s30 + $0x28] sm:$0xff]  }
  0x39   : > { %961 = vmatpush3.bf16.msra.mxu0 %v1081_v13  ;;  %v1090_v22 = vld [vmem:[%s1271_s30 + $0x98] sm:$0xff]   ;;  %v1094_v26 = vld [vmem:[%s1271_s30 + $0xa0] sm:$0xff]   ;;  %v1098_v30 = vld [vmem:[%s1271_s30 + $0xa8] sm:$0xff]  }
  0x3a   : > { %989 = vmatpush3.bf16.msra.mxu1 %v1082_v14  ;;  %962 = vmatprep.subr.bf16.mxu0 %v1083_v15  ;;  %v1099_v31 = vld [vmem:[%s1271_s30 + $0x70] sm:$0xff]   ;;  %v1103_v35 = vld [vmem:[%s1271_s30 + $0x78] sm:$0xff]   ;;  %v337_v58 = vld [vmem:[%s1276_s6] sm:$0xff] }
  0x3b   : > { %990 = vmatprep.subr.bf16.mxu1 %v1084_v16  ;;  %v1100_v32 = vld [vmem:[%s1271_s30 + $0xf0] sm:$0xff]   ;;  %v1104_v36 = vld [vmem:[%s1271_s30 + $0xf8] sm:$0xff]   ;;  %v338_v63 = vld [vmem:[%s1276_s6 + $0x8] sm:$0xff] }
  0x3c   : > { %v1101_v33 = vld [vmem:[%s1271_s30 + $0x30] sm:$0xff]   ;;  %v1105_v37 = vld [vmem:[%s1271_s30 + $0x38] sm:$0xff]  }
  0x3d   : > { %963 = vmatpush3.bf16.msra.mxu0 %v1085_v17  ;;  %v1102_v34 = vld [vmem:[%s1271_s30 + $0xb0] sm:$0xff]   ;;  %v1106_v38 = vld [vmem:[%s1271_s30 + $0xb8] sm:$0xff]   ;;  %v955_v17 = vld [vmem:[%s315_s24] ss:$0 sm:$0xff] (!%p954_p13) }
  0x3e   : > { %991 = vmatpush3.bf16.msra.mxu1 %v1086_v18  ;;  %964 = vmatprep.subr.bf16.mxu0 %v1087_v19  ;;  %v1107_v39 = vld [vmem:[%s1278_s7] ss:$16 sps:$4 sm:$0xff]   ;;  %v1109_v40 = vld [vmem:[%s1278_s7 + $0x4] ss:$16 sps:$4 sm:$0xff]   ;;  %v1110_v41 = vld [vmem:[%s1278_s7 + $0x8] ss:$16 sps:$4 sm:$0xff]  }
  0x3f   : > { %992 = vmatprep.subr.bf16.mxu1 %v1088_v20  ;;  %v1112_v42 = vld [vmem:[%s1278_s7 + $0xc] ss:$16 sps:$4 sm:$0xff]   ;;  %v344_v43 = vld [vmem:[%s1278_s7 + $0x20] sm:$0xff]  ;;  %668 = vmatprep.mubr.bf16.mxu0 %v1109_v40 }
  0x40   : > { %v919_v44 = vcombine.high %v344_v43, %v344_v43  ;;  %v345_v45 = vld [vmem:[%s1278_s7 + $0x28] sm:$0xff]  ;;  %716 = vmatprep.mubr.bf16.mxu1 %v1112_v42  ;;  %v918_v47 = vcombine.low %v344_v43, %v344_v43  ;;  %v339_v12 = vld [vmem:[%s1276_s6 + $0x10] sm:$0xff] }
  0x41   : > { %965 = vmatpush3.bf16.msra.mxu0 %v1089_v21  ;;  %v921_v46 = vcombine.high %v345_v45, %v345_v45  ;;  %v920_v48 = vcombine.low %v345_v45, %v345_v45 }
  0x42   : > { %993 = vmatpush3.bf16.msra.mxu1 %v1090_v22  ;;  %966 = vmatprep.subr.bf16.mxu0 %v1091_v23 }
  0x43   : > { %994 = vmatprep.subr.bf16.mxu1 %v1092_v24 }
  0x45   : > { %967 = vmatpush3.bf16.msra.mxu0 %v1093_v25 }
  0x46   : > { %995 = vmatpush3.bf16.msra.mxu1 %v1094_v26  ;;  %968 = vmatprep.subr.bf16.mxu0 %v1095_v27 }
  0x47   : > { %996 = vmatprep.subr.bf16.mxu1 %v1096_v28 }
  0x49   : > { %969 = vmatpush3.bf16.msra.mxu0 %v1097_v29 }
  0x4a   : > { %997 = vmatpush3.bf16.msra.mxu1 %v1098_v30  ;;  %970 = vmatprep.subr.bf16.mxu0 %v1099_v31 }
  0x4b   : > { %998 = vmatprep.subr.bf16.mxu1 %v1100_v32 }
  0x4d   : > { %971 = vmatpush3.bf16.msra.mxu0 %v1101_v33 }
  0x4e   : > { %999 = vmatpush3.bf16.msra.mxu1 %v1102_v34  ;;  %972 = vmatprep.subr.bf16.mxu0 %v1103_v35 }
  0x4f   : > { %1000 = vmatprep.subr.bf16.mxu1 %v1104_v36 }
  0x51   : > { %973 = vmatpush3.bf16.msra.mxu0 %v1105_v37 }
  0x52   : > { %1001 = vmatpush3.bf16.msra.mxu1 %v1106_v38 }
  0x54   : > { %669 = vmatmul.mubr.bf16.vlgmr.msra.gmra.mrb[0].mxu0 %v1107_v39 }
  0x55   : > { %717 = vmatmul.mubr.bf16.vlgmr.msra.gmra.mrb[0].mxu1 %v1110_v41  ;;  %676 = vmatprep.mubr.bf16.mxu0 %v919_v44 }
  0x56   : > { %724 = vmatprep.mubr.bf16.mxu1 %v921_v46 }
  0x5c   : > { %677 = vmatmul.mubr.bf16.gmra.mrb[4].mxu0 %v918_v47 }
  0x5d   : > { %725 = vmatmul.mubr.bf16.gmra.mrb[4].mxu1 %v920_v48 }
 0x127   : > { %v974_v49 = vpop.f32.mrb[0].mxu0 }
 0x128   : > { %v1002_v50 = vpop.f32.mrb[0].mxu1  ;;  %v975_v51 = vpop.f32.mrb[1].mxu0 }
 0x129   : > { %v976_v52 = vadd.f32 %v975_v51, %v974_v49  ;;  %v1003_v53 = vpop.f32.mrb[1].mxu1  ;;  %v977_v54 = vpop.f32.mrb[2].mxu0 }
 0x12a   : > { %v1004_v55 = vadd.f32 %v1003_v53, %v1002_v50  ;;  %v1005_v56 = vpop.f32.mrb[2].mxu1  ;;  %v978_v57 = vpop.f32.mrb[3].mxu0 }
 0x12b   : > { %v979_v59 = vadd.f32 %v978_v57, %v977_v54  ;;  %v1006_v60 = vpop.f32.mrb[3].mxu1 }
 0x12c   : > { %v719_v61 = vadd.f32 %v1004_v55, %v976_v52  ;;  %v1007_v62 = vadd.f32 %v1006_v60, %v1005_v56 }
 0x12e   : > { %v732_v0 = vadd.f32 %v719_v61, %v337_v58  ;;  %v722_v1 = vadd.f32 %v1007_v62, %v979_v59 }
 0x12f   : > { %v980_v2 = vpop.f32.mrb[4].mxu0 }
 0x130   : > { %735 = vst [vmem:[%s1276_s6] sm:$0xff] %v732_v0  ;;  %v733_v3 = vadd.f32 %v722_v1, %v338_v63  ;;  %v1008_v4 = vpop.f32.mrb[4].mxu1  ;;  %v981_v5 = vpop.f32.mrb[5].mxu0 }
 0x131   : > { %v982_v6 = vadd.f32 %v981_v5, %v980_v2  ;;  %v1009_v7 = vpop.f32.mrb[5].mxu1  ;;  %v983_v8 = vpop.f32.mrb[6].mxu0 }
 0x132   : > { %736 = vst [vmem:[%s1276_s6 + $0x8] sm:$0xff] %v733_v3  ;;  %v1010_v9 = vadd.f32 %v1009_v7, %v1008_v4  ;;  %v1011_v10 = vpop.f32.mrb[6].mxu1  ;;  %v984_v11 = vpop.f32.mrb[7].mxu0  ;;  %741 = sbr.rel (%p954_p13) target bundleno = 323 (0x143), region = 63 }
 0x133   : > { %v1012_v13 = vpop.f32.mrb[7].mxu1 }
 0x134   : > { %v727_v14 = vadd.f32 %v1010_v9, %v982_v6 }
 0x136   : > { %v734_v15 = vadd.f32 %v727_v14, %v339_v12 }
 0x137   : > { %v742_v16 = vld [vmem:[%s1276_s6] sm:$0xff] (!%p954_p13) }
 0x138   : > { %737 = vst [vmem:[%s1276_s6 + $0x10] sm:$0xff] %v734_v15  ;;  %v752_v19 = vadd.f32 (!%p954_p13), %v955_v17, %v742_v16 }
 0x139   : > { %v743_v18 = vld [vmem:[%s1276_s6 + $0x8] sm:$0xff] }
 0x13a   : > { %v753_v20 = vadd.f32 %v955_v17, %v743_v18  ;;  %755 = vst [vmem:[%s1276_s6] sm:$0xff] %v752_v19 }
 0x13c   : > { %756 = vst [vmem:[%s1276_s6 + $0x8] sm:$0xff] %v753_v20 }
 0x13f   : > { %v744_v21 = vld [vmem:[%s1276_s6 + $0x10] sm:$0xff] }
 0x140   : > { %v754_v22 = vadd.f32 %v955_v17, %v744_v21 }
 0x142   : > { %757 = vst [vmem:[%s1276_s6 + $0x10] sm:$0xff] %v754_v22 }
 0x143 PF: > { %s13_s18 = sadd.s32 1, %s1171_s18   ;;  %s1365_s12 = smov %s1151_s13 }
 0x144   : > { %p10_p0 = scmp.ge.s32.totalorder %s13_s18, 10   ;;  %s1366_s13 = smov %s1245_s25 }
 0x145   : > { %s1367_s14 = smov %s1163_s16  ;;  %s1368_s15 = smov %s1167_s17 }
 0x146   : > { %s1369_s16 = smov %s1372_s19  ;;  %s1370_s17 = smov %s1376_s20 }
 0x147   :  { %12 = sbr.rel (!%p10_p0) target bundleno = 4 (0x4), region = 104 }

</bundles_post_ra>
